<compile_context>
chip_gen: v7x
topology: tpu7x:2x2x1
jax: 0.10.0
libtpu: 0.0.40
codegen_flags: <defaults>
</compile_context>

<pallas_src>
import functools

import jax
import jax.numpy as jnp
from jax.experimental import pallas as pl
from jax.experimental.pallas import tpu as pltpu


def _round_up(x, m):
    return ((x + m - 1) // m) * m


# ----------------------------------------------------------------------------
# Fused kernel: whole forward pass for one batch tile (batch on lanes).
# ----------------------------------------------------------------------------
def _discriminator_kernel(xz_ref, w1_ref, b1_ref, w2_ref, b2_ref, w3_ref,
                          b3_ref, o_ref, *, act_dtype):
    xz = xz_ref[...].astype(jnp.bfloat16)                       # (Din, Bt)

    # Layer 1: (1024, Din) @ (Din, Bt), MXU, f32 accumulate.
    h = jnp.dot(w1_ref[...], xz, preferred_element_type=jnp.float32)
    h = h.astype(act_dtype) + b1_ref[...].astype(act_dtype)     # (1024, Bt)
    h = jnp.maximum(h, 0.2 * h)                                  # LeakyReLU(0.2)

    # Layer 2: (512, 1024) @ (1024, Bt), MXU, f32 accumulate.
    h = jnp.dot(w2_ref[...], h.astype(jnp.bfloat16),
                preferred_element_type=jnp.float32)
    h = h.astype(act_dtype) + b2_ref[...].astype(act_dtype)     # (512, Bt)
    h = jnp.maximum(h, 0.2 * h)

    # Layer 3 (512 -> 1): VPU multiply + sublane reduce (skip the 1-wide MXU
    # matmul); result is already a lane-dense (1, Bt) row.
    prod = h.astype(jnp.float32) * w3_ref[...].astype(jnp.float32)   # (512, Bt)
    o_ref[...] = jnp.sum(prod, axis=0, keepdims=True) + b3_ref[0]


# ----------------------------------------------------------------------------
# Wrapper
# ----------------------------------------------------------------------------
def discriminator_forward(params, x, z, *, tile_b=1024, act_dtype=jnp.bfloat16):
    """x: (B, x_channels) f32, z: (B, z_channels) f32  ->  (B, 1) f32 logits.

    act_dtype: epilogue dtype for bias+LeakyReLU.  Use jnp.bfloat16 on
    v6e/v7x (default), jnp.float32 on v5e (no bf16 VALU there).
    """
    B = x.shape[0]
    d_in = x.shape[1] + z.shape[1]
    h1 = params["w1"].shape[0]
    h2 = params["w2"].shape[0]

    # Fold torch.cat([x, z], dim=1) and put batch on the lane (last) dim.
    xz_t = jnp.concatenate([x, z], axis=1).T                     # (d_in, B)

    tile_b = max(128, (tile_b // 128) * 128)
    if B <= 256:
        # Small batch: one tile, block shape == full array dims, no padding.
        tile = B
        Bp = B
    else:
        # >= 2 lane-aligned tiles so the "parallel" axis shards across both
        # v7x TensorCores; capped at tile_b to bound VMEM (<~10 MiB @ 1024).
        tile = min(tile_b, _round_up(pl.cdiv(B, 2), 128))
        Bp = _round_up(B, tile)
        if Bp != B:
            xz_t = jnp.pad(xz_t, ((0, 0), (0, Bp - B)))
    grid = (Bp // tile,)

    flops = 2 * Bp * (d_in * h1 + h1 * h2 + h2)
    bytes_accessed = (xz_t.size * xz_t.dtype.itemsize
                      + params["w1"].size * 2 + params["w2"].size * 2
                      + params["w3"].size * 2 + (h1 + h2 + 1) * 4 + Bp * 4)

    kernel = functools.partial(_discriminator_kernel, act_dtype=act_dtype)

    out = pl.pallas_call(
        kernel,
        out_shape=jax.ShapeDtypeStruct((1, Bp), jnp.float32),
        grid=grid,
        in_specs=[
            pl.BlockSpec((d_in, tile), lambda i: (0, i)),        # xz (batch tile)
            pl.BlockSpec((h1, d_in), lambda i: (0, 0)),          # W1 (1024, Din)
            pl.BlockSpec((h1, 1), lambda i: (0, 0)),             # b1 (1024, 1)
            pl.BlockSpec((h2, h1), lambda i: (0, 0)),            # W2 (512, 1024)
            pl.BlockSpec((h2, 1), lambda i: (0, 0)),             # b2 (512, 1)
            pl.BlockSpec((h2, 1), lambda i: (0, 0)),             # W3 column (512, 1)
            pl.BlockSpec(memory_space=pltpu.MemorySpace.SMEM),   # b3 scalar
        ],
        out_specs=pl.BlockSpec((1, tile), lambda i: (0, i)),     # lane-dense row
        compiler_params=pltpu.CompilerParams(
            dimension_semantics=("parallel",),
            vmem_limit_bytes=48 * 1024 * 1024,
        ),
        cost_estimate=pl.CostEstimate(flops=flops, transcendentals=0,
                                      bytes_accessed=bytes_accessed),
    )(xz_t, params["w1"], params["b1"], params["w2"], params["b2"],
      params["w3"], params["b3"])

    out = out[0]
    if Bp != B:
        out = out[:B]
    return out[:, None]                                           # (B, 1)


# ----------------------------------------------------------------------------
# Parameter init (matches reset_parameters: xavier_normal weights, zero biases)
# Weights kept in torch (out_features, in_features) layout for the kernel.
# ----------------------------------------------------------------------------
def _xavier_normal(key, shape):
    fan_out, fan_in = shape
    std = (2.0 / (fan_in + fan_out)) ** 0.5
    return jax.random.normal(key, shape, jnp.float32) * std


def init_params(key, x_channels, z_channels, dtype=jnp.bfloat16):
    k1, k2, k3 = jax.random.split(key, 3)
    d_in = x_channels + z_channels
    return {
        "w1": _xavier_normal(k1, (1024, d_in)).astype(dtype),
        "b1": jnp.zeros((1024, 1), jnp.float32),
        "w2": _xavier_normal(k2, (512, 1024)).astype(dtype),
        "b2": jnp.zeros((512, 1), jnp.float32),
        # W3 stored as a (512, 1) column for the in-kernel VPU/XLU reduction.
        "w3": _xavier_normal(k3, (1, 512)).T.astype(dtype),
        "b3": jnp.zeros((1,), jnp.float32),
    }


# ----------------------------------------------------------------------------
# Pure-JAX reference mirroring the kernel's math (same casts / layout).
# ----------------------------------------------------------------------------
def _reference(params, x, z, act_dtype=jnp.bfloat16):
    xz = jnp.concatenate([x, z], axis=1).T.astype(jnp.bfloat16)
    h = jnp.dot(params["w1"], xz, preferred_element_type=jnp.float32)
    h = h.astype(act_dtype) + params["b1"].astype(act_dtype)
    h = jnp.maximum(h, 0.2 * h)
    h = jnp.dot(params["w2"], h.astype(jnp.bfloat16),
                preferred_element_type=jnp.float32)
    h = h.astype(act_dtype) + params["b2"].astype(act_dtype)
    h = jnp.maximum(h, 0.2 * h)
    logit = jnp.sum(h.astype(jnp.float32) * params["w3"].astype(jnp.float32),
                    axis=0, keepdims=True) + params["b3"][0]
    return logit.T                                                # (B, 1)


# ----------------------------------------------------------------------------
if __name__ == "__main__":
    key = jax.random.PRNGKey(0)
    kp, kx, kz = jax.random.split(key, 3)

    BATCH, X_CH, Z_CH = 8, 16, 8
    params = init_params(kp, X_CH, Z_CH)

    x = jax.random.normal(kx, (BATCH, X_CH), jnp.float32)
    z = jax.random.normal(kz, (BATCH, Z_CH), jnp.float32)

    logit = jax.jit(discriminator_forward)(params, x, z)
    jax.block_until_ready(logit)

    assert logit.shape == (BATCH, 1)

    ref = _reference(params, x, z)
    assert jnp.allclose(logit, ref, rtol=1e-2, atol=1e-2), (
        f"max abs diff {jnp.max(jnp.abs(logit - ref))}")

    print("KERNEL_OK")
</pallas_src>

<mosaic_0001>
module attributes {stable_mosaic.version = 11 : i64} {
  func.func @_discriminator_kernel(%arg0: i32, %arg1: memref<24x8xf32, #tpu.memory_space<vmem>>, %arg2: memref<1024x24xbf16, #tpu.memory_space<vmem>>, %arg3: memref<1024x1xf32, #tpu.memory_space<vmem>>, %arg4: memref<512x1024xbf16, #tpu.memory_space<vmem>>, %arg5: memref<512x1xf32, #tpu.memory_space<vmem>>, %arg6: memref<512x1xbf16, #tpu.memory_space<vmem>>, %arg7: memref<1xf32, #tpu.memory_space<smem>>, %arg8: memref<1x8xf32, #tpu.memory_space<vmem>>) attributes {dimension_semantics = [#tpu.dimension_semantics<parallel>], iteration_bounds = array<i64: 1>, scalar_prefetch = 0 : i64, scratch_operands = 0 : i64, tpu.core_type = #tpu.core_type<tc>, window_params = [{transform_indices = @transform_0, window_bounds = array<i64: 24, 8>}, {pipeline_mode = #tpu.pipeline_mode<synchronous>, transform_indices = @transform_1, window_bounds = array<i64: 1024, 24>}, {pipeline_mode = #tpu.pipeline_mode<synchronous>, transform_indices = @transform_2, window_bounds = array<i64: 1024, 1>}, {pipeline_mode = #tpu.pipeline_mode<synchronous>, transform_indices = @transform_3, window_bounds = array<i64: 512, 1024>}, {pipeline_mode = #tpu.pipeline_mode<synchronous>, transform_indices = @transform_4, window_bounds = array<i64: 512, 1>}, {pipeline_mode = #tpu.pipeline_mode<synchronous>, transform_indices = @transform_5, window_bounds = array<i64: 512, 1>}, {transform_indices = @transform_6, window_bounds = array<i64: 1>}, {transform_indices = @transform_7, window_bounds = array<i64: 1, 8>}]} {
    %c0 = arith.constant 0 : index
    %c0_0 = arith.constant 0 : index
    %0 = vector.load %arg1[%c0, %c0_0] : memref<24x8xf32, #tpu.memory_space<vmem>>, vector<24x8xf32>
    %1 = arith.truncf %0 : vector<24x8xf32> to vector<24x8xbf16>
    %c0_1 = arith.constant 0 : index
    %c0_2 = arith.constant 0 : index
    %2 = vector.load %arg2[%c0_1, %c0_2] : memref<1024x24xbf16, #tpu.memory_space<vmem>>, vector<1024x24xbf16>
    %cst = arith.constant dense<0.000000e+00> : vector<1024x8xf32>
    %3 = tpu.matmul %2, %1, %cst {dimension_numbers = #tpu.dot_dimension_numbers<[1], [0], [0], [1], [0, 0, 1, 1], [], []>} : vector<1024x24xbf16>, vector<24x8xbf16>, vector<1024x8xf32> -> vector<1024x8xf32>
    %4 = arith.truncf %3 : vector<1024x8xf32> to vector<1024x8xbf16>
    %c0_3 = arith.constant 0 : index
    %c0_4 = arith.constant 0 : index
    %5 = vector.load %arg3[%c0_3, %c0_4] : memref<1024x1xf32, #tpu.memory_space<vmem>>, vector<1024x1xf32>
    %6 = arith.truncf %5 : vector<1024x1xf32> to vector<1024x1xbf16>
    %7 = vector.broadcast %6 : vector<1024x1xbf16> to vector<1024x8xbf16>
    %8 = arith.addf %4, %7 : vector<1024x8xbf16>
    %cst_5 = arith.constant 2.001950e-01 : bf16
    %9 = vector.broadcast %cst_5 : bf16 to vector<1024x8xbf16>
    %10 = arith.mulf %9, %8 : vector<1024x8xbf16>
    %11 = arith.maximumf %8, %10 : vector<1024x8xbf16>
    %c0_6 = arith.constant 0 : index
    %c0_7 = arith.constant 0 : index
    %12 = vector.load %arg4[%c0_6, %c0_7] : memref<512x1024xbf16, #tpu.memory_space<vmem>>, vector<512x1024xbf16>
    %cst_8 = arith.constant dense<0.000000e+00> : vector<512x8xf32>
    %13 = tpu.matmul %12, %11, %cst_8 {dimension_numbers = #tpu.dot_dimension_numbers<[1], [0], [0], [1], [0, 0, 1, 1], [], []>} : vector<512x1024xbf16>, vector<1024x8xbf16>, vector<512x8xf32> -> vector<512x8xf32>
    %14 = arith.truncf %13 : vector<512x8xf32> to vector<512x8xbf16>
    %c0_9 = arith.constant 0 : index
    %c0_10 = arith.constant 0 : index
    %15 = vector.load %arg5[%c0_9, %c0_10] : memref<512x1xf32, #tpu.memory_space<vmem>>, vector<512x1xf32>
    %16 = arith.truncf %15 : vector<512x1xf32> to vector<512x1xbf16>
    %17 = vector.broadcast %16 : vector<512x1xbf16> to vector<512x8xbf16>
    %18 = arith.addf %14, %17 : vector<512x8xbf16>
    %cst_11 = arith.constant 2.001950e-01 : bf16
    %19 = vector.broadcast %cst_11 : bf16 to vector<512x8xbf16>
    %20 = arith.mulf %19, %18 : vector<512x8xbf16>
    %21 = arith.maximumf %18, %20 : vector<512x8xbf16>
    %22 = arith.extf %21 : vector<512x8xbf16> to vector<512x8xf32>
    %c0_12 = arith.constant 0 : index
    %c0_13 = arith.constant 0 : index
    %23 = vector.load %arg6[%c0_12, %c0_13] : memref<512x1xbf16, #tpu.memory_space<vmem>>, vector<512x1xbf16>
    %24 = arith.extf %23 : vector<512x1xbf16> to vector<512x1xf32>
    %25 = vector.broadcast %24 : vector<512x1xf32> to vector<512x8xf32>
    %26 = arith.mulf %22, %25 : vector<512x8xf32>
    %cst_14 = arith.constant dense<0.000000e+00> : vector<8xf32>
    %27 = vector.multi_reduction <add>, %26, %cst_14 [0] : vector<512x8xf32> to vector<8xf32>
    %28 = vector.shape_cast %27 : vector<8xf32> to vector<1x8xf32>
    %c0_15 = arith.constant 0 : index
    %29 = memref.load %arg7[%c0_15] : memref<1xf32, #tpu.memory_space<smem>>
    %30 = vector.broadcast %29 : f32 to vector<1x8xf32>
    %31 = arith.addf %28, %30 : vector<1x8xf32>
    %c0_16 = arith.constant 0 : index
    %c0_17 = arith.constant 0 : index
    %32 = vector.load %arg8[%c0_16, %c0_17] : memref<1x8xf32, #tpu.memory_space<vmem>>, vector<1x8xf32>
    tpu.vector_store %arg8[%c0_16, %c0_17], %31 {strides = array<i32>} : memref<1x8xf32, #tpu.memory_space<vmem>>, vector<1x8xf32>,
    return
  }
  func.func @transform_0(%arg0: i32) -> (i32, i32) {
    %c0_i32 = arith.constant 0 : i32
    %c0_i32_0 = arith.constant 0 : i32
    return %c0_i32, %arg0 : i32, i32
  }
  func.func @transform_1(%arg0: i32) -> (i32, i32) {
    %c0_i32 = arith.constant 0 : i32
    %c0_i32_0 = arith.constant 0 : i32
    %c0_i32_1 = arith.constant 0 : i32
    return %c0_i32, %c0_i32_0 : i32, i32
  }
  func.func @transform_2(%arg0: i32) -> (i32, i32) {
    %c0_i32 = arith.constant 0 : i32
    %c0_i32_0 = arith.constant 0 : i32
    %c0_i32_1 = arith.constant 0 : i32
    return %c0_i32, %c0_i32_0 : i32, i32
  }
  func.func @transform_3(%arg0: i32) -> (i32, i32) {
    %c0_i32 = arith.constant 0 : i32
    %c0_i32_0 = arith.constant 0 : i32
    %c0_i32_1 = arith.constant 0 : i32
    return %c0_i32, %c0_i32_0 : i32, i32
  }
  func.func @transform_4(%arg0: i32) -> (i32, i32) {
    %c0_i32 = arith.constant 0 : i32
    %c0_i32_0 = arith.constant 0 : i32
    %c0_i32_1 = arith.constant 0 : i32
    return %c0_i32, %c0_i32_0 : i32, i32
  }
  func.func @transform_5(%arg0: i32) -> (i32, i32) {
    %c0_i32 = arith.constant 0 : i32
    %c0_i32_0 = arith.constant 0 : i32
    %c0_i32_1 = arith.constant 0 : i32
    return %c0_i32, %c0_i32_0 : i32, i32
  }
  func.func @transform_6(%arg0: i32) -> i32 {
    %c0_i32 = arith.constant 0 : i32
    %c0_i32_0 = arith.constant 0 : i32
    return %c0_i32 : i32
  }
  func.func @transform_7(%arg0: i32) -> (i32, i32) {
    %c0_i32 = arith.constant 0 : i32
    %c0_i32_0 = arith.constant 0 : i32
    return %c0_i32, %arg0 : i32, i32
  }
}

</mosaic_0001>

<bundles_post_ra>
// kernel: discriminator_forward.1
= control target key start
LH: loop header
LB: loop body
LE: loop exit
PB: predicated region body
PF: predicated region fallthrough
CT: control target
= control target key end

     0   :  { %v6989_v3 = vmov 0   ;;  %vm676_vm0 = vcmask 1043456   ;;  %vm483_vm1 = vcmask 195584   ;;  %s9483_s0 = inlined_call_operand.vmem [shape: f32[24,8], index: 0, kind: input, shape index: {}]   ;;  %s9484_s1 = inlined_call_operand.vmem [shape: bf16[1024,24], index: 1, kind: input, shape index: {}]   ;;  %s9485_s2 = inlined_call_operand.vmem [shape: f32[1024,1], index: 2, kind: input, shape index: {}]   ;;  %s9486_s3 = inlined_call_operand.vmem [shape: bf16[512,1024], index: 3, kind: input, shape index: {}]   ;;  %s9487_s4 = inlined_call_operand.vmem [shape: f32[512,1], index: 4, kind: input, shape index: {}]   ;;  %s9488_s5 = inlined_call_operand.vmem [shape: bf16[512,1], index: 5, kind: input, shape index: {}]   ;;  %s9489_s6 = inlined_call_operand.<no memory space> [shape: f32[1], index: 6, kind: input, shape index: {}]   ;;  %s9490_s7 = inlined_call_operand.hbm [shape: f32[1,8], index: 7, kind: output, shape index: {}]  }
   0x1   :  { %v1325_v0 = vld [vmem:[%s9485_s2 + $0x120] sm:$0xff]  ;;  %v1326_v1 = vld [vmem:[%s9485_s2 + $0x128] sm:$0xff]  ;;  %6895 = vset.pattern.permute.xlu1 %v6989_v3  ;;  %6894 = vset.pattern.permute.xlu0 %v6989_v3  ;;  %v1327_v10 = vld [vmem:[%s9485_s2 + $0x130] sm:$0xff] }
   0x2   :  { %v1321_v2 = vld [vmem:[%s9485_s2 + $0x100] sm:$0xff]  ;;  %v1435_v4 = vpack.c.bf16 %v1326_v1, %v1325_v0  ;;  %v1322_v5 = vld [vmem:[%s9485_s2 + $0x108] sm:$0xff]  ;;  %v1328_v11 = vld [vmem:[%s9485_s2 + $0x138] sm:$0xff]  ;;  %6539 = vmatprep.subr.bf16.mxu1 %v6989_v3 }
   0x3   :  { %v30_v6 = vld [vmem:[%s9483_s0] sm:$0xff]  ;;  %v31_v7 = vld [vmem:[%s9483_s0 + $0x8] sm:$0xff]  ;;  %v1433_v8 = vpack.c.bf16 %v1322_v5, %v1321_v2  ;;  %v1323_v12 = vld [vmem:[%s9485_s2 + $0x110] sm:$0xff]  ;;  %v1436_v13 = vpack.c.bf16 %v1328_v11, %v1327_v10 }
   0x4   :  { %v33_v9 = vpack.c.bf16 %v31_v7, %v30_v6  ;;  %1573 = vperm.xlu1 %6895, %v1435_v4   ;;  %v1324_v14 = vld [vmem:[%s9485_s2 + $0x118] sm:$0xff]  ;;  %v32_v15 = vld [vmem:[%s9483_s0 + $0x10] sm:$0xff]  ;;  %v6901_v18 = vld [vmem:[%s9484_s1] sm:$0xff]  }
   0x5   :  { %1563 = vperm.xlu0 %6894, %v1433_v8   ;;  %v1434_v16 = vpack.c.bf16 %v1324_v14, %v1323_v12  ;;  %v34_v17 = vpack.c.bf16 %v32_v15, %v32_v15  ;;  %v1331_v19 = vld [vmem:[%s9485_s2 + $0x150] sm:$0xff]  ;;  %v1332_v20 = vld [vmem:[%s9485_s2 + $0x158] sm:$0xff]  ;;  %v1329_v21 = vld [vmem:[%s9485_s2 + $0x140] sm:$0xff]  ;;  %6411 = vmatprep.mubr.msk.bf16.mxu0 %vm483_vm1, %v6901_v18 }
   0x6   :  { %6407 = vmatprep.subr.bf16.mxu0 %v33_v9  ;;  %v1330_v22 = vld [vmem:[%s9485_s2 + $0x148] sm:$0xff]  ;;  %v1438_v24 = vpack.c.bf16 %v1332_v20, %v1331_v19  ;;  %v1335_v26 = vld [vmem:[%s9485_s2 + $0x170] sm:$0xff]  ;;  %v1336_v28 = vld [vmem:[%s9485_s2 + $0x178] sm:$0xff] }
   0x7   :  { %6408 = vmatpush3.bf16.msra.mxu0 %v33_v9  ;;  %v678_v23 = vsel %vm676_vm0, %v34_v17, 0  ;;  %v6902_v25 = vld [vmem:[%s9484_s1 + $0x8] sm:$0xff]   ;;  %v1437_v27 = vpack.c.bf16 %v1330_v22, %v1329_v21  ;;  %v1333_v29 = vld [vmem:[%s9485_s2 + $0x160] sm:$0xff]  ;;  %v6903_v31 = vld [vmem:[%s9484_s1 + $0x10] sm:$0xff]   ;;  %v1440_v32 = vpack.c.bf16 %v1336_v28, %v1335_v26 }
   0x8   :  { %6891 = vmatprep.subr.msk.bf16.mxu0 %vm676_vm0, %v34_v17  ;;  %1578 = vperm.xlu1 %6895, %v1436_v13   ;;  %v1334_v30 = vld [vmem:[%s9485_s2 + $0x168] sm:$0xff]  ;;  %v1339_v34 = vld [vmem:[%s9485_s2 + $0x190] sm:$0xff]  ;;  %v1340_v35 = vld [vmem:[%s9485_s2 + $0x198] sm:$0xff] }
   0x9   :  { %1568 = vperm.xlu0 %6894, %v1434_v16   ;;  %v1439_v33 = vpack.c.bf16 %v1334_v30, %v1333_v29  ;;  %v1337_v36 = vld [vmem:[%s9485_s2 + $0x180] sm:$0xff]  ;;  %v1338_v37 = vld [vmem:[%s9485_s2 + $0x188] sm:$0xff]  ;;  %v1442_v38 = vpack.c.bf16 %v1340_v35, %v1339_v34  ;;  %v6904_v39 = vld [vmem:[%s9484_s1 + $0x18] sm:$0xff]  }
   0xa   :  { %v1441_v40 = vpack.c.bf16 %v1338_v37, %v1337_v36  ;;  %v1343_v41 = vld [vmem:[%s9485_s2 + $0x1b0] sm:$0xff]  ;;  %v1344_v42 = vld [vmem:[%s9485_s2 + $0x1b8] sm:$0xff]  ;;  %v1341_v43 = vld [vmem:[%s9485_s2 + $0x1a0] sm:$0xff] }
   0xb   :  { %6410 = vmatpush3.bf16.msra.mxu0 %v678_v23  ;;  %v1342_v44 = vld [vmem:[%s9485_s2 + $0x1a8] sm:$0xff]  ;;  %v6905_v45 = vld [vmem:[%s9484_s1 + $0x20] sm:$0xff]   ;;  %v1444_v46 = vpack.c.bf16 %v1344_v42, %v1343_v41  ;;  %v1347_v47 = vld [vmem:[%s9485_s2 + $0x1d0] sm:$0xff] }
   0xc   :  { %3529 = vmatprep.subr.bf16.mxu0 %v6989_v3  ;;  %1588 = vperm.xlu1 %6895, %v1438_v24   ;;  %v1443_v48 = vpack.c.bf16 %v1342_v44, %v1341_v43  ;;  %v1348_v49 = vld [vmem:[%s9485_s2 + $0x1d8] sm:$0xff]  ;;  %v1345_v50 = vld [vmem:[%s9485_s2 + $0x1c0] sm:$0xff]  ;;  %v1346_v51 = vld [vmem:[%s9485_s2 + $0x1c8] sm:$0xff] }
   0xd   :  { %1583 = vperm.xlu0 %6894, %v1437_v27   ;;  %v1446_v52 = vpack.c.bf16 %v1348_v49, %v1347_v47  ;;  %v6906_v53 = vld [vmem:[%s9484_s1 + $0x28] sm:$0xff]   ;;  %v1351_v54 = vld [vmem:[%s9485_s2 + $0x1f0] sm:$0xff]  ;;  %v1445_v55 = vpack.c.bf16 %v1346_v51, %v1345_v50  ;;  %v1352_v56 = vld [vmem:[%s9485_s2 + $0x1f8] sm:$0xff] }
   0xe   :  { %6412 = vmatmul.mubr.msk.bf16.vlgmr.msra.gmra.mrb[0].mxu0 %vm483_vm1, %v6902_v25  ;;  %v1349_v57 = vld [vmem:[%s9485_s2 + $0x1e0] sm:$0xff]  ;;  %v1350_v58 = vld [vmem:[%s9485_s2 + $0x1e8] sm:$0xff]  ;;  %v6907_v59 = vld [vmem:[%s9484_s1 + $0x30] sm:$0xff]   ;;  %v1448_v60 = vpack.c.bf16 %v1352_v56, %v1351_v54 }
   0xf   :  { %6415 = vmatprep.mubr.msk.bf16.mxu0 %vm483_vm1, %v6903_v31  ;;  %v1447_v61 = vpack.c.bf16 %v1350_v58, %v1349_v57  ;;  %v1355_v62 = vld [vmem:[%s9485_s2 + $0x210] sm:$0xff]  ;;  %v1356_v63 = vld [vmem:[%s9485_s2 + $0x218] sm:$0xff]  ;;  %v1353_v0 = vld [vmem:[%s9485_s2 + $0x200] sm:$0xff] }
  0x10   :  { %1598 = vperm.xlu1 %6895, %v1440_v32   ;;  %v1354_v1 = vld [vmem:[%s9485_s2 + $0x208] sm:$0xff]  ;;  %v1450_v2 = vpack.c.bf16 %v1356_v63, %v1355_v62  ;;  %v6908_v4 = vld [vmem:[%s9484_s1 + $0x38] sm:$0xff]   ;;  %v1359_v6 = vld [vmem:[%s9485_s2 + $0x230] sm:$0xff] }
  0x11   :  { %1593 = vperm.xlu0 %6894, %v1439_v33   ;;  %v1449_v5 = vpack.c.bf16 %v1354_v1, %v1353_v0  ;;  %v1360_v7 = vld [vmem:[%s9485_s2 + $0x238] sm:$0xff]  ;;  %v1357_v8 = vld [vmem:[%s9485_s2 + $0x220] sm:$0xff]  ;;  %v1358_v9 = vld [vmem:[%s9485_s2 + $0x228] sm:$0xff] }
  0x12   :  { %v6909_v10 = vld [vmem:[%s9484_s1 + $0x40] sm:$0xff]   ;;  %v1452_v11 = vpack.c.bf16 %v1360_v7, %v1359_v6  ;;  %v1363_v12 = vld [vmem:[%s9485_s2 + $0x250] sm:$0xff]  ;;  %v1451_v13 = vpack.c.bf16 %v1358_v9, %v1357_v8  ;;  %v1364_v14 = vld [vmem:[%s9485_s2 + $0x258] sm:$0xff] }
  0x13   :  { %v1361_v15 = vld [vmem:[%s9485_s2 + $0x240] sm:$0xff]  ;;  %v1362_v16 = vld [vmem:[%s9485_s2 + $0x248] sm:$0xff]  ;;  %v1454_v17 = vpack.c.bf16 %v1364_v14, %v1363_v12  ;;  %v1367_v19 = vld [vmem:[%s9485_s2 + $0x270] sm:$0xff] }
  0x14   :  { %1608 = vperm.xlu1 %6895, %v1442_v38   ;;  %v6910_v18 = vld [vmem:[%s9484_s1 + $0x48] sm:$0xff]   ;;  %v1453_v20 = vpack.c.bf16 %v1362_v16, %v1361_v15  ;;  %v1368_v21 = vld [vmem:[%s9485_s2 + $0x278] sm:$0xff]  ;;  %v1365_v22 = vld [vmem:[%s9485_s2 + $0x260] sm:$0xff] }
  0x15   :  { %1603 = vperm.xlu0 %6894, %v1441_v40   ;;  %v1366_v23 = vld [vmem:[%s9485_s2 + $0x268] sm:$0xff]  ;;  %v6911_v24 = vld [vmem:[%s9484_s1 + $0x50] sm:$0xff]   ;;  %v1456_v25 = vpack.c.bf16 %v1368_v21, %v1367_v19  ;;  %v1372_v28 = vld [vmem:[%s9485_s2 + $0x298] sm:$0xff] }
  0x16   :  { %6416 = vmatmul.mubr.msk.bf16.gmra.mrb[4].mxu0 %vm483_vm1, %v6904_v39  ;;  %v1455_v26 = vpack.c.bf16 %v1366_v23, %v1365_v22  ;;  %v1371_v27 = vld [vmem:[%s9485_s2 + $0x290] sm:$0xff]  ;;  %v1369_v29 = vld [vmem:[%s9485_s2 + $0x280] sm:$0xff]  ;;  %v1370_v30 = vld [vmem:[%s9485_s2 + $0x288] sm:$0xff] }
  0x17   :  { %6419 = vmatprep.mubr.msk.bf16.mxu0 %vm483_vm1, %v6905_v45  ;;  %v1458_v31 = vpack.c.bf16 %v1372_v28, %v1371_v27  ;;  %v6912_v32 = vld [vmem:[%s9484_s1 + $0x58] sm:$0xff]   ;;  %v1375_v33 = vld [vmem:[%s9485_s2 + $0x2b0] sm:$0xff]  ;;  %v1457_v34 = vpack.c.bf16 %v1370_v30, %v1369_v29  ;;  %v1373_v36 = vld [vmem:[%s9485_s2 + $0x2a0] sm:$0xff] }
  0x18   :  { %1618 = vperm.xlu1 %6895, %v1444_v46   ;;  %v1376_v35 = vld [vmem:[%s9485_s2 + $0x2b8] sm:$0xff]  ;;  %v1374_v37 = vld [vmem:[%s9485_s2 + $0x2a8] sm:$0xff]  ;;  %v6913_v38 = vld [vmem:[%s9484_s1 + $0x60] sm:$0xff]  }
  0x19   :  { %1613 = vperm.xlu0 %6894, %v1443_v48   ;;  %v1460_v39 = vpack.c.bf16 %v1376_v35, %v1375_v33  ;;  %v1459_v40 = vpack.c.bf16 %v1374_v37, %v1373_v36  ;;  %v1289_v41 = vld [vmem:[%s9485_s2] sm:$0xff]  ;;  %v1290_v42 = vld [vmem:[%s9485_s2 + $0x8] sm:$0xff]  ;;  %v1379_v47 = vld [vmem:[%s9485_s2 + $0x2d0] sm:$0xff] }
  0x1a   :  { %v1377_v43 = vld [vmem:[%s9485_s2 + $0x2c0] sm:$0xff]  ;;  %v1378_v44 = vld [vmem:[%s9485_s2 + $0x2c8] sm:$0xff]  ;;  %v1417_v46 = vpack.c.bf16 %v1290_v42, %v1289_v41  ;;  %v1380_v49 = vld [vmem:[%s9485_s2 + $0x2d8] sm:$0xff] }
  0x1b   :  { %v6914_v45 = vld [vmem:[%s9484_s1 + $0x68] sm:$0xff]   ;;  %v1461_v48 = vpack.c.bf16 %v1378_v44, %v1377_v43  ;;  %v1291_v50 = vld [vmem:[%s9485_s2 + $0x10] sm:$0xff]  ;;  %v1292_v51 = vld [vmem:[%s9485_s2 + $0x18] sm:$0xff]  ;;  %v1462_v54 = vpack.c.bf16 %v1380_v49, %v1379_v47 }
  0x1c   :  { %1628 = vperm.xlu1 %6895, %v1446_v52   ;;  %v6915_v52 = vld [vmem:[%s9484_s1 + $0x70] sm:$0xff]   ;;  %v1294_v56 = vld [vmem:[%s9485_s2 + $0x28] sm:$0xff]  ;;  %v1381_v57 = vld [vmem:[%s9485_s2 + $0x2e0] sm:$0xff] }
  0x1d   :  { %1623 = vperm.xlu0 %6894, %v1445_v55   ;;  %v1293_v55 = vld [vmem:[%s9485_s2 + $0x20] sm:$0xff]  ;;  %v1382_v58 = vld [vmem:[%s9485_s2 + $0x2e8] sm:$0xff]  ;;  %v1296_v63 = vld [vmem:[%s9485_s2 + $0x38] sm:$0xff] }
  0x1e   :  { %6420 = vmatmul.mubr.msk.bf16.gmra.mrb[8].mxu0 %vm483_vm1, %v6906_v53  ;;  %v1418_v53 = vpack.c.bf16 %v1292_v51, %v1291_v50  ;;  %v1463_v62 = vpack.c.bf16 %v1382_v58, %v1381_v57  ;;  %v1383_v0 = vld [vmem:[%s9485_s2 + $0x2f0] sm:$0xff]  ;;  %v1384_v1 = vld [vmem:[%s9485_s2 + $0x2f8] sm:$0xff]  ;;  %v1297_v6 = vld [vmem:[%s9485_s2 + $0x40] sm:$0xff] }
  0x1f   :  { %6423 = vmatprep.mubr.msk.bf16.mxu0 %vm483_vm1, %v6907_v59  ;;  %v1419_v59 = vpack.c.bf16 %v1294_v56, %v1293_v55  ;;  %v1299_v7 = vld [vmem:[%s9485_s2 + $0x50] sm:$0xff]  ;;  %v1300_v8 = vld [vmem:[%s9485_s2 + $0x58] sm:$0xff]  ;;  %v1298_v9 = vld [vmem:[%s9485_s2 + $0x48] sm:$0xff] }
  0x20   :  { %1638 = vperm.xlu1 %6895, %v1448_v60   ;;  %v6916_v60 = vld [vmem:[%s9484_s1 + $0x78] sm:$0xff]   ;;  %v1421_v12 = vpack.c.bf16 %v1298_v9, %v1297_v6  ;;  %v1303_v14 = vld [vmem:[%s9485_s2 + $0x70] sm:$0xff]  ;;  %v1302_v16 = vld [vmem:[%s9485_s2 + $0x68] sm:$0xff] }
  0x21   :  { %1633 = vperm.xlu0 %6894, %v1447_v61   ;;  %v1295_v61 = vld [vmem:[%s9485_s2 + $0x30] sm:$0xff]  ;;  %v1304_v15 = vld [vmem:[%s9485_s2 + $0x78] sm:$0xff]  ;;  %v1305_v22 = vld [vmem:[%s9485_s2 + $0x80] sm:$0xff] }
  0x22   :  { %v1307_v19 = vld [vmem:[%s9485_s2 + $0x90] sm:$0xff]  ;;  %v1308_v21 = vld [vmem:[%s9485_s2 + $0x98] sm:$0xff]  ;;  %v1306_v23 = vld [vmem:[%s9485_s2 + $0x88] sm:$0xff] }
  0x23   :  { %v1425_v27 = vpack.c.bf16 %v1306_v23, %v1305_v22  ;;  %v1311_v28 = vld [vmem:[%s9485_s2 + $0xb0] sm:$0xff]  ;;  %v1312_v29 = vld [vmem:[%s9485_s2 + $0xb8] sm:$0xff]  ;;  %v1310_v30 = vld [vmem:[%s9485_s2 + $0xa8] sm:$0xff] }
  0x24   :  { %1648 = vperm.xlu1 %6895, %v1450_v2   ;;  %v6917_v2 = vld [vmem:[%s9484_s1 + $0x80] sm:$0xff]   ;;  %v1315_v35 = vld [vmem:[%s9485_s2 + $0xd0] sm:$0xff]  ;;  %v1316_v36 = vld [vmem:[%s9485_s2 + $0xd8] sm:$0xff] }
  0x25   :  { %1643 = vperm.xlu0 %6894, %v1449_v5   ;;  %v1464_v5 = vpack.c.bf16 %v1384_v1, %v1383_v0  ;;  %v1314_v37 = vld [vmem:[%s9485_s2 + $0xc8] sm:$0xff]  ;;  %v1319_v41 = vld [vmem:[%s9485_s2 + $0xf0] sm:$0xff]  ;;  %v1320_v42 = vld [vmem:[%s9485_s2 + $0xf8] sm:$0xff] }
  0x26   :  { %6424 = vmatmul.mubr.msk.bf16.gmra.mrb[12].mxu0 %vm483_vm1, %v6908_v4  ;;  %v1420_v4 = vpack.c.bf16 %v1296_v63, %v1295_v61  ;;  %v1317_v43 = vld [vmem:[%s9485_s2 + $0xe0] sm:$0xff]  ;;  %v1318_v44 = vld [vmem:[%s9485_s2 + $0xe8] sm:$0xff]  ;;  %v1387_v47 = vld [vmem:[%s9485_s2 + $0x310] sm:$0xff] }
  0x27   :  { %6427 = vmatprep.mubr.msk.bf16.mxu0 %vm483_vm1, %v6909_v10  ;;  %v1422_v10 = vpack.c.bf16 %v1300_v8, %v1299_v7  ;;  %v1388_v49 = vld [vmem:[%s9485_s2 + $0x318] sm:$0xff]  ;;  %v1385_v50 = vld [vmem:[%s9485_s2 + $0x300] sm:$0xff]  ;;  %v1386_v51 = vld [vmem:[%s9485_s2 + $0x308] sm:$0xff] }
  0x28   :  { %1658 = vperm.xlu1 %6895, %v1452_v11   ;;  %v6918_v11 = vld [vmem:[%s9484_s1 + $0x88] sm:$0xff]   ;;  %v1465_v55 = vpack.c.bf16 %v1386_v51, %v1385_v50  ;;  %v1391_v57 = vld [vmem:[%s9485_s2 + $0x330] sm:$0xff]  ;;  %v1392_v58 = vld [vmem:[%s9485_s2 + $0x338] sm:$0xff] }
  0x29   :  { %1653 = vperm.xlu0 %6894, %v1451_v13   ;;  %v1301_v13 = vld [vmem:[%s9485_s2 + $0x60] sm:$0xff]  ;;  %v1390_v56 = vld [vmem:[%s9485_s2 + $0x328] sm:$0xff]  ;;  %v1396_v63 = vld [vmem:[%s9485_s2 + $0x358] sm:$0xff] }
  0x2a   :  { %v1393_v0 = vld [vmem:[%s9485_s2 + $0x340] sm:$0xff]  ;;  %v1394_v1 = vld [vmem:[%s9485_s2 + $0x348] sm:$0xff]  ;;  %v1400_v7 = vld [vmem:[%s9485_s2 + $0x378] sm:$0xff] }
  0x2b   :  { %v1469_v6 = vpack.c.bf16 %v1394_v1, %v1393_v0  ;;  %v1397_v8 = vld [vmem:[%s9485_s2 + $0x360] sm:$0xff]  ;;  %v1398_v9 = vld [vmem:[%s9485_s2 + $0x368] sm:$0xff]  ;;  %v1408_v22 = vld [vmem:[%s9485_s2 + $0x3b8] sm:$0xff] }
  0x2c   :  { %1668 = vperm.xlu1 %6895, %v1454_v17   ;;  %v6919_v17 = vld [vmem:[%s9484_s1 + $0x90] sm:$0xff]   ;;  %v1406_v23 = vld [vmem:[%s9485_s2 + $0x3a8] sm:$0xff]  ;;  %v4724_v50 = vld [vmem:[%s9487_s4 + $0x38] sm:$0xff] }
  0x2d   :  { %1663 = vperm.xlu0 %6894, %v1453_v20   ;;  %v1423_v20 = vpack.c.bf16 %v1302_v16, %v1301_v13  ;;  %v1403_v13 = vld [vmem:[%s9485_s2 + $0x390] sm:$0xff]  ;;  %v1402_v16 = vld [vmem:[%s9485_s2 + $0x388] sm:$0xff] }
  0x2e   :  { %6428 = vmatmul.mubr.msk.bf16.gmra.mrb[16].mxu0 %vm483_vm1, %v6910_v18  ;;  %v1424_v18 = vpack.c.bf16 %v1304_v15, %v1303_v14  ;;  %v1404_v14 = vld [vmem:[%s9485_s2 + $0x398] sm:$0xff]  ;;  %v1401_v15 = vld [vmem:[%s9485_s2 + $0x380] sm:$0xff]  ;;  %v4722_v51 = vld [vmem:[%s9487_s4 + $0x28] sm:$0xff] }
  0x2f   :  { %6431 = vmatprep.mubr.msk.bf16.mxu0 %vm483_vm1, %v6911_v24  ;;  %v1426_v24 = vpack.c.bf16 %v1308_v21, %v1307_v19  ;;  %v1405_v19 = vld [vmem:[%s9485_s2 + $0x3a0] sm:$0xff]  ;;  %v1407_v21 = vld [vmem:[%s9485_s2 + $0x3b0] sm:$0xff] }
  0x30   :  { %1678 = vperm.xlu1 %6895, %v1456_v25   ;;  %v6920_v25 = vld [vmem:[%s9484_s1 + $0x98] sm:$0xff]  }
  0x31   :  { %1673 = vperm.xlu0 %6894, %v1455_v26   ;;  %v1309_v26 = vld [vmem:[%s9485_s2 + $0xa0] sm:$0xff] }
  0x32   :  { %v1427_v33 = vpack.c.bf16 %v1310_v30, %v1309_v26  ;;  %v1475_v26 = vpack.c.bf16 %v1406_v23, %v1405_v19  ;;  %v1410_v30 = vld [vmem:[%s9485_s2 + $0x3c8] sm:$0xff] }
  0x34   :  { %1688 = vperm.xlu1 %6895, %v1458_v31   ;;  %v6921_v31 = vld [vmem:[%s9484_s1 + $0xa0] sm:$0xff]  }
  0x35   :  { %1683 = vperm.xlu0 %6894, %v1457_v34   ;;  %v1313_v34 = vld [vmem:[%s9485_s2 + $0xc0] sm:$0xff] }
  0x36   :  { %6432 = vmatmul.mubr.msk.bf16.gmra.mrb[20].mxu0 %vm483_vm1, %v6912_v32  ;;  %v1428_v32 = vpack.c.bf16 %v1312_v29, %v1311_v28  ;;  %v1412_v28 = vld [vmem:[%s9485_s2 + $0x3d8] sm:$0xff]  ;;  %v1409_v29 = vld [vmem:[%s9485_s2 + $0x3c0] sm:$0xff] }
  0x37   :  { %6435 = vmatprep.mubr.msk.bf16.mxu0 %vm483_vm1, %v6913_v38  ;;  %v1430_v38 = vpack.c.bf16 %v1316_v36, %v1315_v35  ;;  %v1415_v35 = vld [vmem:[%s9485_s2 + $0x3f0] sm:$0xff]  ;;  %v1416_v36 = vld [vmem:[%s9485_s2 + $0x3f8] sm:$0xff] }
  0x38   :  { %1698 = vperm.xlu1 %6895, %v1460_v39   ;;  %v6922_v39 = vld [vmem:[%s9484_s1 + $0xa8] sm:$0xff]  }
  0x39   :  { %1693 = vperm.xlu0 %6894, %v1459_v40   ;;  %v1429_v40 = vpack.c.bf16 %v1314_v37, %v1313_v34  ;;  %v1477_v34 = vpack.c.bf16 %v1410_v30, %v1409_v29  ;;  %v1414_v37 = vld [vmem:[%s9485_s2 + $0x3e8] sm:$0xff] }
  0x3c   :  { %1483 = vperm.xlu1 %6895, %v1417_v46   ;;  %v1432_v46 = vpack.c.bf16 %v1320_v42, %v1319_v41  ;;  %v4719_v41 = vld [vmem:[%s9487_s4 + $0x10] sm:$0xff]  ;;  %v4720_v42 = vld [vmem:[%s9487_s4 + $0x18] sm:$0xff] }
  0x3d   :  { %1703 = vperm.xlu0 %6894, %v1461_v48   ;;  %v1431_v48 = vpack.c.bf16 %v1318_v44, %v1317_v43  ;;  %v4717_v43 = vld [vmem:[%s9487_s4] sm:$0xff]  ;;  %v4718_v44 = vld [vmem:[%s9487_s4 + $0x8] sm:$0xff] }
  0x3e   :  { %6436 = vmatmul.mubr.msk.bf16.gmra.mrb[24].mxu0 %vm483_vm1, %v6914_v45  ;;  %v6923_v45 = vld [vmem:[%s9484_s1 + $0xb0] sm:$0xff]  }
  0x3f   :  { %6439 = vmatprep.mubr.msk.bf16.mxu0 %vm483_vm1, %v6915_v52  ;;  %v1466_v52 = vpack.c.bf16 %v1388_v49, %v1387_v47  ;;  %v4721_v47 = vld [vmem:[%s9487_s4 + $0x20] sm:$0xff]  ;;  %v4723_v49 = vld [vmem:[%s9487_s4 + $0x30] sm:$0xff] }
  0x40   :  { %1488 = vperm.xlu1 %6895, %v1418_v53   ;;  %v6924_v53 = vld [vmem:[%s9484_s1 + $0xb8] sm:$0xff]  }
  0x41   :  { %1708 = vperm.xlu0 %6894, %v1462_v54   ;;  %v1389_v54 = vld [vmem:[%s9485_s2 + $0x320] sm:$0xff] }
  0x42   :  { %v1467_v61 = vpack.c.bf16 %v1390_v56, %v1389_v54  ;;  %v4783_v54 = vpack.c.bf16 %v4722_v51, %v4721_v47  ;;  %v4728_v56 = vld [vmem:[%s9487_s4 + $0x58] sm:$0xff] }
  0x44   :  { %1493 = vperm.xlu1 %6895, %v1419_v59   ;;  %v6925_v59 = vld [vmem:[%s9484_s1 + $0xc0] sm:$0xff]  }
  0x45   :  { %1713 = vperm.xlu0 %6894, %v1463_v62   ;;  %v1395_v62 = vld [vmem:[%s9485_s2 + $0x350] sm:$0xff] }
  0x46   :  { %6440 = vmatmul.mubr.msk.bf16.gmra.mrb[28].mxu0 %vm483_vm1, %v6916_v60  ;;  %v1468_v60 = vpack.c.bf16 %v1392_v58, %v1391_v57  ;;  %v4725_v57 = vld [vmem:[%s9487_s4 + $0x40] sm:$0xff]  ;;  %v4726_v58 = vld [vmem:[%s9487_s4 + $0x48] sm:$0xff] }
  0x47   :  { %6443 = vmatprep.mubr.msk.bf16.mxu0 %vm483_vm1, %v6917_v2  ;;  %v1470_v2 = vpack.c.bf16 %v1396_v63, %v1395_v62 }
  0x48   :  { %1498 = vperm.xlu1 %6895, %v1420_v4   ;;  %v6926_v4 = vld [vmem:[%s9484_s1 + $0xc8] sm:$0xff]  }
  0x49   :  { %1718 = vperm.xlu0 %6894, %v1464_v5   ;;  %v1399_v5 = vld [vmem:[%s9485_s2 + $0x370] sm:$0xff] }
  0x4c   :  { %1508 = vperm.xlu1 %6895, %v1422_v10   ;;  %v6927_v10 = vld [vmem:[%s9484_s1 + $0xd0] sm:$0xff]  }
  0x4d   :  { %1503 = vperm.xlu0 %6894, %v1421_v12   ;;  %v1471_v12 = vpack.c.bf16 %v1398_v9, %v1397_v8 }
  0x4e   :  { %6444 = vmatmul.mubr.msk.bf16.gmra.mrb[32].mxu0 %vm483_vm1, %v6918_v11  ;;  %v1472_v11 = vpack.c.bf16 %v1400_v7, %v1399_v5 }
  0x4f   :  { %6447 = vmatprep.mubr.msk.bf16.mxu0 %vm483_vm1, %v6919_v17  ;;  %v6928_v17 = vld [vmem:[%s9484_s1 + $0xd8] sm:$0xff]  }
  0x50   :  { %1518 = vperm.xlu1 %6895, %v1424_v18   ;;  %v1474_v18 = vpack.c.bf16 %v1404_v14, %v1403_v13 }
  0x51   :  { %1513 = vperm.xlu0 %6894, %v1423_v20   ;;  %v1473_v20 = vpack.c.bf16 %v1402_v16, %v1401_v15 }
  0x54   :  { %1528 = vperm.xlu1 %6895, %v1426_v24   ;;  %v6929_v24 = vld [vmem:[%s9484_s1 + $0xe0] sm:$0xff]  }
  0x55   :  { %1523 = vperm.xlu0 %6894, %v1425_v27   ;;  %v1411_v27 = vld [vmem:[%s9485_s2 + $0x3d0] sm:$0xff] }
  0x56   :  { %6448 = vmatmul.mubr.msk.bf16.gmra.mrb[36].mxu0 %vm483_vm1, %v6920_v25  ;;  %v1476_v25 = vpack.c.bf16 %v1408_v22, %v1407_v21 }
  0x57   :  { %6451 = vmatprep.mubr.msk.bf16.mxu0 %vm483_vm1, %v6921_v31  ;;  %v6930_v31 = vld [vmem:[%s9484_s1 + $0xe8] sm:$0xff]  }
  0x58   :  { %1538 = vperm.xlu1 %6895, %v1428_v32   ;;  %v1478_v32 = vpack.c.bf16 %v1412_v28, %v1411_v27 }
  0x59   :  { %1533 = vperm.xlu0 %6894, %v1427_v33   ;;  %v1413_v33 = vld [vmem:[%s9485_s2 + $0x3e0] sm:$0xff] }
  0x5c   :  { %1548 = vperm.xlu1 %6895, %v1430_v38   ;;  %v6931_v38 = vld [vmem:[%s9484_s1 + $0xf0] sm:$0xff]  }
  0x5d   :  { %1543 = vperm.xlu0 %6894, %v1429_v40   ;;  %v1479_v40 = vpack.c.bf16 %v1414_v37, %v1413_v33 }
  0x5e   :  { %6452 = vmatmul.mubr.msk.bf16.gmra.mrb[40].mxu0 %vm483_vm1, %v6922_v39  ;;  %v1480_v39 = vpack.c.bf16 %v1416_v36, %v1415_v35 }
  0x5f   :  { %6455 = vmatprep.mubr.msk.bf16.mxu0 %vm483_vm1, %v6923_v45  ;;  %v6932_v45 = vld [vmem:[%s9484_s1 + $0xf8] sm:$0xff]  }
  0x60   :  { %1558 = vperm.xlu1 %6895, %v1432_v46   ;;  %v4782_v46 = vpack.c.bf16 %v4720_v42, %v4719_v41 }
  0x61   :  { %1553 = vperm.xlu0 %6894, %v1431_v48   ;;  %v4781_v48 = vpack.c.bf16 %v4718_v44, %v4717_v43 }
  0x64   :  { %1728 = vperm.xlu1 %6895, %v1466_v52   ;;  %v6933_v52 = vld [vmem:[%s9484_s1 + $0x100] sm:$0xff]  }
  0x65   :  { %1723 = vperm.xlu0 %6894, %v1465_v55   ;;  %v4727_v55 = vld [vmem:[%s9487_s4 + $0x50] sm:$0xff] }
  0x66   :  { %6456 = vmatmul.mubr.msk.bf16.gmra.mrb[44].mxu0 %vm483_vm1, %v6924_v53  ;;  %v4784_v53 = vpack.c.bf16 %v4724_v50, %v4723_v49 }
  0x67   :  { %6459 = vmatprep.mubr.msk.bf16.mxu0 %vm483_vm1, %v6925_v59 }
  0x68   :  { %1738 = vperm.xlu1 %6895, %v1468_v60   ;;  %v4786_v60 = vpack.c.bf16 %v4728_v56, %v4727_v55 }
  0x69   :  { %1733 = vperm.xlu0 %6894, %v1467_v61  }
  0x6c   :  { %1748 = vperm.xlu1 %6895, %v1470_v2  }
  0x6d   :  { %1743 = vperm.xlu0 %6894, %v1469_v6  }
  0x6e   :  { %6460 = vmatmul.mubr.msk.bf16.gmra.mrb[48].mxu0 %vm483_vm1, %v6926_v4 }
  0x6f   :  { %6463 = vmatprep.mubr.msk.bf16.mxu0 %vm483_vm1, %v6927_v10 }
  0x70   :  { %1758 = vperm.xlu1 %6895, %v1472_v11  }
  0x71   :  { %1753 = vperm.xlu0 %6894, %v1471_v12  }
  0x74   :  { %1768 = vperm.xlu1 %6895, %v1474_v18  }
  0x75   :  { %1763 = vperm.xlu0 %6894, %v1473_v20  }
  0x76   :  { %6464 = vmatmul.mubr.msk.bf16.gmra.mrb[52].mxu0 %vm483_vm1, %v6928_v17 }
  0x77   :  { %6467 = vmatprep.mubr.msk.bf16.mxu0 %vm483_vm1, %v6929_v24 }
  0x78   :  { %1778 = vperm.xlu1 %6895, %v1476_v25  }
  0x79   :  { %1773 = vperm.xlu0 %6894, %v1475_v26  }
  0x7c   :  { %1788 = vperm.xlu1 %6895, %v1478_v32  }
  0x7d   :  { %1783 = vperm.xlu0 %6894, %v1477_v34  }
  0x7e   :  { %6468 = vmatmul.mubr.msk.bf16.gmra.mrb[56].mxu0 %vm483_vm1, %v6930_v31 }
  0x7f   :  { %6471 = vmatprep.mubr.msk.bf16.mxu0 %vm483_vm1, %v6931_v38 }
  0x80   :  { %1798 = vperm.xlu1 %6895, %v1480_v39  }
  0x81   :  { %1793 = vperm.xlu0 %6894, %v1479_v40  }
  0x83   :  { %v7596_v59 = vpop.permute.xlu1 %1573 }
  0x84   :  { %4820 = vperm.xlu1 %6895, %v4782_v46  }
  0x85   :  { %4815 = vperm.xlu0 %6894, %v4781_v48  }
  0x86   :  { %6472 = vmatmul.mubr.msk.bf16.gmra.mrb[60].mxu0 %vm483_vm1, %v6932_v45 }
  0x87   :  { %6475 = vmatprep.mubr.msk.bf16.mxu0 %vm483_vm1, %v6933_v52 }
  0x88   :  { %4830 = vperm.xlu1 %6895, %v4784_v53  }
  0x89   :  { %13 = vsyncpa [#allocation4], 0  ;;  %v7598_v61 = vpop.permute.xlu0 %1563  ;;  %4825 = vperm.xlu0 %6894, %v4783_v54   ;;  %v4785_v62 = vpack.c.bf16 %v4726_v58, %v4725_v57  ;;  %v6934_v63 = vld [vmem:[%s9484_s1 + $0x108] sm:$0xff]   ;;  %v4731_v0 = vld [vmem:[%s9487_s4 + $0x70] sm:$0xff]  ;;  %v7618_v7 = vpop.permute.xlu1 %1578  ;;  %vm5645_vm2 = vcmask 64512   ;;  %vm5782_vm3 = vcmask 57344  }
  0x8a   :  { %v4732_v1 = vld [vmem:[%s9487_s4 + $0x78] sm:$0xff]  ;;  %v4729_v2 = vld [vmem:[%s9487_s4 + $0x60] sm:$0xff]  ;;  %v4730_v4 = vld [vmem:[%s9487_s4 + $0x68] sm:$0xff] }
  0x8b   :  { %v6935_v5 = vld [vmem:[%s9484_s1 + $0x110] sm:$0xff]   ;;  %v4788_v6 = vpack.c.bf16 %v4732_v1, %v4731_v0  ;;  %v4787_v8 = vpack.c.bf16 %v4730_v4, %v4729_v2  ;;  %v4736_v10 = vld [vmem:[%s9487_s4 + $0x98] sm:$0xff]  ;;  %v4733_v11 = vld [vmem:[%s9487_s4 + $0x80] sm:$0xff] }
  0x8c   :  { %4840 = vperm.xlu1 %6895, %v4786_v60   ;;  %v4735_v9 = vld [vmem:[%s9487_s4 + $0x90] sm:$0xff]  ;;  %v4734_v12 = vld [vmem:[%s9487_s4 + $0x88] sm:$0xff]  ;;  %v6936_v16 = vld [vmem:[%s9484_s1 + $0x118] sm:$0xff]  }
  0x8d   :  { %4835 = vperm.xlu0 %6894, %v4785_v62   ;;  %v7634_v13 = vpop.permute.xlu0 %1568  ;;  %v4790_v14 = vpack.c.bf16 %v4736_v10, %v4735_v9  ;;  %v4789_v15 = vpack.c.bf16 %v4734_v12, %v4733_v11  ;;  %v4739_v17 = vld [vmem:[%s9487_s4 + $0xb0] sm:$0xff]  ;;  %v4740_v18 = vld [vmem:[%s9487_s4 + $0xb8] sm:$0xff]  ;;  %v4737_v19 = vld [vmem:[%s9487_s4 + $0xa0] sm:$0xff]  ;;  %v7654_v22 = vpop.permute.xlu1 %1588 }
  0x8e   :  { %6476 = vmatmul.mubr.msk.bf16.gmra.mrb[64].mxu0 %vm483_vm1, %v6934_v63  ;;  %v4738_v20 = vld [vmem:[%s9487_s4 + $0xa8] sm:$0xff]  ;;  %v6937_v21 = vld [vmem:[%s9484_s1 + $0x120] sm:$0xff]   ;;  %v4792_v23 = vpack.c.bf16 %v4740_v18, %v4739_v17  ;;  %v4743_v26 = vld [vmem:[%s9487_s4 + $0xd0] sm:$0xff] }
  0x8f   :  { %6479 = vmatprep.mubr.msk.bf16.mxu0 %vm483_vm1, %v6935_v5  ;;  %v4791_v25 = vpack.c.bf16 %v4738_v20, %v4737_v19  ;;  %v4744_v27 = vld [vmem:[%s9487_s4 + $0xd8] sm:$0xff]  ;;  %v4741_v28 = vld [vmem:[%s9487_s4 + $0xc0] sm:$0xff]  ;;  %v4742_v29 = vld [vmem:[%s9487_s4 + $0xc8] sm:$0xff] }
  0x90   :  { %4850 = vperm.xlu1 %6895, %v4788_v6   ;;  %v4794_v30 = vpack.c.bf16 %v4744_v27, %v4743_v26  ;;  %v4793_v32 = vpack.c.bf16 %v4742_v29, %v4741_v28  ;;  %v6938_v33 = vld [vmem:[%s9484_s1 + $0x128] sm:$0xff]   ;;  %v4747_v34 = vld [vmem:[%s9487_s4 + $0xf0] sm:$0xff]  ;;  %v4748_v35 = vld [vmem:[%s9487_s4 + $0xf8] sm:$0xff] }
  0x91   :  { %4845 = vperm.xlu0 %6894, %v4787_v8   ;;  %v7656_v24 = vpop.permute.xlu0 %1583  ;;  %v7672_v31 = vpop.permute.xlu1 %1598  ;;  %v4745_v36 = vld [vmem:[%s9487_s4 + $0xe0] sm:$0xff]  ;;  %v4746_v37 = vld [vmem:[%s9487_s4 + $0xe8] sm:$0xff]  ;;  %v6939_v38 = vld [vmem:[%s9484_s1 + $0x130] sm:$0xff]   ;;  %v4796_v40 = vpack.c.bf16 %v4748_v35, %v4747_v34 }
  0x92   :  { %v4795_v41 = vpack.c.bf16 %v4746_v37, %v4745_v36  ;;  %v4751_v42 = vld [vmem:[%s9487_s4 + $0x110] sm:$0xff]  ;;  %v4752_v43 = vld [vmem:[%s9487_s4 + $0x118] sm:$0xff]  ;;  %v4749_v44 = vld [vmem:[%s9487_s4 + $0x100] sm:$0xff] }
  0x93   :  { %v4750_v45 = vld [vmem:[%s9487_s4 + $0x108] sm:$0xff]  ;;  %v4798_v47 = vpack.c.bf16 %v4752_v43, %v4751_v42  ;;  %v6940_v50 = vld [vmem:[%s9484_s1 + $0x138] sm:$0xff]   ;;  %v4755_v51 = vld [vmem:[%s9487_s4 + $0x130] sm:$0xff] }
  0x94   :  { %4860 = vperm.xlu1 %6895, %v4790_v14   ;;  %v4797_v49 = vpack.c.bf16 %v4750_v45, %v4749_v44  ;;  %v4756_v52 = vld [vmem:[%s9487_s4 + $0x138] sm:$0xff]  ;;  %v4753_v53 = vld [vmem:[%s9487_s4 + $0x120] sm:$0xff]  ;;  %v4754_v54 = vld [vmem:[%s9487_s4 + $0x128] sm:$0xff] }
  0x95   :  { %4855 = vperm.xlu0 %6894, %v4789_v15   ;;  %v7692_v39 = vpop.permute.xlu0 %1593  ;;  %v7708_v46 = vpop.permute.xlu1 %1608  ;;  %v6941_v55 = vld [vmem:[%s9484_s1 + $0x140] sm:$0xff]   ;;  %v4800_v56 = vpack.c.bf16 %v4756_v52, %v4755_v51  ;;  %v4799_v58 = vpack.c.bf16 %v4754_v54, %v4753_v53  ;;  %v4759_v60 = vld [vmem:[%s9487_s4 + $0x150] sm:$0xff]  ;;  %v4760_v62 = vld [vmem:[%s9487_s4 + $0x158] sm:$0xff] }
  0x96   :  { %6480 = vmatmul.mubr.msk.bf16.gmra.mrb[68].mxu0 %vm483_vm1, %v6936_v16  ;;  %v4757_v63 = vld [vmem:[%s9487_s4 + $0x140] sm:$0xff]  ;;  %v4758_v0 = vld [vmem:[%s9487_s4 + $0x148] sm:$0xff]  ;;  %v4802_v2 = vpack.c.bf16 %v4760_v62, %v4759_v60  ;;  %v4763_v6 = vld [vmem:[%s9487_s4 + $0x170] sm:$0xff] }
  0x97   :  { %6483 = vmatprep.mubr.msk.bf16.mxu0 %vm483_vm1, %v6937_v21  ;;  %v4801_v4 = vpack.c.bf16 %v4758_v0, %v4757_v63  ;;  %v6942_v5 = vld [vmem:[%s9484_s1 + $0x148] sm:$0xff]   ;;  %v4764_v8 = vld [vmem:[%s9487_s4 + $0x178] sm:$0xff]  ;;  %v4761_v9 = vld [vmem:[%s9487_s4 + $0x160] sm:$0xff] }
  0x98   :  { %4870 = vperm.xlu1 %6895, %v4792_v23   ;;  %v4762_v10 = vld [vmem:[%s9487_s4 + $0x168] sm:$0xff]  ;;  %v6943_v11 = vld [vmem:[%s9484_s1 + $0x150] sm:$0xff]   ;;  %v4804_v14 = vpack.c.bf16 %v4764_v8, %v4763_v6  ;;  %v4768_v18 = vld [vmem:[%s9487_s4 + $0x198] sm:$0xff] }
  0x99   :  { %4865 = vperm.xlu0 %6894, %v4791_v25   ;;  %v7710_v48 = vpop.permute.xlu0 %1603  ;;  %v7730_v57 = vpop.permute.xlu1 %1618  ;;  %v4803_v16 = vpack.c.bf16 %v4762_v10, %v4761_v9  ;;  %v4767_v17 = vld [vmem:[%s9487_s4 + $0x190] sm:$0xff]  ;;  %v4765_v19 = vld [vmem:[%s9487_s4 + $0x180] sm:$0xff]  ;;  %v4766_v20 = vld [vmem:[%s9487_s4 + $0x188] sm:$0xff] }
  0x9a   :  { %v4806_v21 = vpack.c.bf16 %v4768_v18, %v4767_v17  ;;  %v4805_v25 = vpack.c.bf16 %v4766_v20, %v4765_v19  ;;  %v6944_v26 = vld [vmem:[%s9484_s1 + $0x158] sm:$0xff]   ;;  %v4771_v27 = vld [vmem:[%s9487_s4 + $0x1b0] sm:$0xff]  ;;  %v4769_v29 = vld [vmem:[%s9487_s4 + $0x1a0] sm:$0xff] }
  0x9b   :  { %v4772_v28 = vld [vmem:[%s9487_s4 + $0x1b8] sm:$0xff]  ;;  %v4775_v36 = vld [vmem:[%s9487_s4 + $0x1d0] sm:$0xff]  ;;  %v6946_v43 = vld [vmem:[%s9484_s1 + $0x168] sm:$0xff]  }
  0x9c   :  { %4880 = vperm.xlu1 %6895, %v4794_v30   ;;  %v4770_v30 = vld [vmem:[%s9487_s4 + $0x1a8] sm:$0xff]  ;;  %v4808_v34 = vpack.c.bf16 %v4772_v28, %v4771_v27  ;;  %v4776_v37 = vld [vmem:[%s9487_s4 + $0x1d8] sm:$0xff]  ;;  %v6947_v52 = vld [vmem:[%s9484_s1 + $0x170] sm:$0xff]  }
  0x9d   :  { %4875 = vperm.xlu0 %6894, %v4793_v32   ;;  %v7746_v1 = vpop.permute.xlu0 %1613  ;;  %v7766_v12 = vpop.permute.xlu1 %1628  ;;  %v6945_v32 = vld [vmem:[%s9484_s1 + $0x160] sm:$0xff]   ;;  %v4807_v35 = vpack.c.bf16 %v4770_v30, %v4769_v29  ;;  %v4810_v42 = vpack.c.bf16 %v4776_v37, %v4775_v36  ;;  %v4778_v51 = vld [vmem:[%s9487_s4 + $0x1e8] sm:$0xff]  ;;  %v6315_v36 = vld [vmem:[%s9488_s5 + $0x30] sm:$0xff]  }
  0x9e   :  { %6484 = vmatmul.mubr.msk.bf16.gmra.mrb[72].mxu0 %vm483_vm1, %v6938_v33  ;;  %v6183_v53 = vld [vmem:[%s9488_s5] sm:$0xff]   ;;  %v6310_v62 = vld [vmem:[%s9488_s5 + $0x8] sm:$0xff]  }
  0x9f   :  { %6487 = vmatprep.mubr.msk.bf16.mxu0 %vm483_vm1, %v6939_v38  ;;  %v4773_v38 = vld [vmem:[%s9487_s4 + $0x1c0] sm:$0xff]  ;;  %v6185_v60 = vunpack.c.h.bf16 %v6183_v53  ;;  %v6188_v0 = vunpack.c.l.bf16 %v6310_v62  ;;  %v6950_v19 = vld [vmem:[%s9484_s1 + $0x188] sm:$0xff]  }
  0xa0   :  { %4890 = vperm.xlu1 %6895, %v4796_v40   ;;  %v4774_v40 = vld [vmem:[%s9487_s4 + $0x1c8] sm:$0xff]  ;;  %v6949_v6 = vld [vmem:[%s9484_s1 + $0x180] sm:$0xff]  }
  0xa1   :  { %4885 = vperm.xlu0 %6894, %v4795_v41   ;;  %v7768_v15 = vpop.permute.xlu0 %1623  ;;  %v7784_v23 = vpop.permute.xlu1 %1638  ;;  %v4809_v45 = vpack.c.bf16 %v4774_v40, %v4773_v38  ;;  %v6313_v20 = vld [vmem:[%s9488_s5 + $0x20] sm:$0xff]   ;;  %v6314_v28 = vld [vmem:[%s9488_s5 + $0x28] sm:$0xff]   ;;  %v6208_v38 = vunpack.c.l.bf16 %v6315_v36 }
  0xa2   :  { %v6204_v30 = vunpack.c.l.bf16 %v6314_v28  ;;  %v6953_v37 = vld [vmem:[%s9484_s1 + $0x1a0] sm:$0xff]  }
  0xa4   :  { %4900 = vperm.xlu1 %6895, %v4798_v47   ;;  %v4777_v47 = vld [vmem:[%s9487_s4 + $0x1e0] sm:$0xff] }
  0xa5   :  { %4895 = vperm.xlu0 %6894, %v4797_v49   ;;  %v7804_v33 = vpop.permute.xlu0 %1633  ;;  %v7820_v41 = vpop.permute.xlu1 %1648  ;;  %v4779_v49 = vld [vmem:[%s9487_s4 + $0x1f0] sm:$0xff] }
  0xa6   :  { %6488 = vmatmul.mubr.msk.bf16.gmra.mrb[76].mxu0 %vm483_vm1, %v6940_v50  ;;  %v4780_v50 = vld [vmem:[%s9487_s4 + $0x1f8] sm:$0xff] }
  0xa7   :  { %6491 = vmatprep.mubr.msk.bf16.mxu0 %vm483_vm1, %v6941_v55  ;;  %v4812_v54 = vpack.c.bf16 %v4780_v50, %v4779_v49  ;;  %v6209_v49 = vunpack.c.h.bf16 %v6315_v36  ;;  %v6954_v50 = vld [vmem:[%s9484_s1 + $0x1a8] sm:$0xff]  }
  0xa8   :  { %4910 = vperm.xlu1 %6895, %v4800_v56   ;;  %v4811_v56 = vpack.c.bf16 %v4778_v51, %v4777_v47  ;;  %v6317_v51 = vld [vmem:[%s9488_s5 + $0x40] sm:$0xff]  }
  0xa9   :  { %4905 = vperm.xlu0 %6894, %v4799_v58   ;;  %v7825_v44 = vpop.permute.xlu0 %1643  ;;  %v7845_v55 = vpop.permute.xlu1 %1658  ;;  %v6184_v58 = vunpack.c.l.bf16 %v6183_v53 }
  0xac   :  { %4920 = vperm.xlu1 %6895, %v4802_v2   ;;  %v6896_v2 = vpack.i.bf16 %v6185_v60, %v6184_v58  ;;  %v6318_v60 = vld [vmem:[%s9488_s5 + $0x48] sm:$0xff]  }
  0xad   :  { %4915 = vperm.xlu0 %6894, %v4801_v4   ;;  %v7852_v63 = vpop.permute.xlu0 %1653  ;;  %v6948_v4 = vld [vmem:[%s9484_s1 + $0x178] sm:$0xff]   ;;  %v7863_v8 = vpop.permute.xlu1 %1668 }
  0xae   :  { %6492 = vmatmul.mubr.msk.bf16.gmra.mrb[80].mxu0 %vm483_vm1, %v6942_v5  ;;  %v6311_v5 = vld [vmem:[%s9488_s5 + $0x10] sm:$0xff]  }
  0xaf   :  { %6495 = vmatprep.mubr.msk.bf16.mxu0 %vm483_vm1, %v6943_v11  ;;  %v6192_v9 = vunpack.c.l.bf16 %v6311_v5  ;;  %v6189_v11 = vunpack.c.h.bf16 %v6310_v62  ;;  %v6193_v18 = vunpack.c.h.bf16 %v6311_v5  ;;  %v6217_v5 = vunpack.c.h.bf16 %v6317_v51 }
  0xb0   :  { %4930 = vperm.xlu1 %6895, %v4804_v14   ;;  %v6312_v14 = vld [vmem:[%s9488_s5 + $0x18] sm:$0xff]  }
  0xb1   :  { %4925 = vperm.xlu0 %6894, %v4803_v16   ;;  %v7865_v10 = vpop.permute.xlu0 %1663  ;;  %v6196_v16 = vunpack.c.l.bf16 %v6312_v14  ;;  %v7872_v17 = vpop.permute.xlu1 %1678  ;;  %v6197_v27 = vunpack.c.h.bf16 %v6312_v14  ;;  %v6957_v14 = vld [vmem:[%s9484_s1 + $0x1c0] sm:$0xff]  }
  0xb4   :  { %4940 = vperm.xlu1 %6895, %v4806_v21   ;;  %v6951_v21 = vld [vmem:[%s9484_s1 + $0x190] sm:$0xff]  }
  0xb5   :  { %4935 = vperm.xlu0 %6894, %v4805_v25   ;;  %v7883_v25 = vpop.permute.xlu0 %1673  ;;  %v7890_v29 = vpop.permute.xlu1 %1688 }
  0xb6   :  { %6496 = vmatmul.mubr.msk.bf16.gmra.mrb[84].mxu0 %vm483_vm1, %v6944_v26  ;;  %v6200_v26 = vunpack.c.l.bf16 %v6313_v20 }
  0xb7   :  { %6499 = vmatprep.mubr.msk.bf16.mxu0 %vm483_vm1, %v6945_v32 }
  0xb8   :  { %4950 = vperm.xlu1 %6895, %v4808_v34   ;;  %v6201_v34 = vunpack.c.h.bf16 %v6313_v20 }
  0xb9   :  { %4945 = vperm.xlu0 %6894, %v4807_v35   ;;  %v7892_v32 = vpop.permute.xlu0 %1683  ;;  %v6952_v35 = vld [vmem:[%s9484_s1 + $0x198] sm:$0xff]   ;;  %v7903_v40 = vpop.permute.xlu1 %1698 }
  0xbc   :  { %4960 = vperm.xlu1 %6895, %v4810_v42   ;;  %v6205_v42 = vunpack.c.h.bf16 %v6314_v28 }
  0xbd   :  { %4955 = vperm.xlu0 %6894, %v4809_v45   ;;  %v7910_v45 = vpop.permute.xlu0 %1693  ;;  %v1484_v53 = vpop.permute.xlu1 %1483 }
  0xbe   :  { %6500 = vmatmul.mubr.msk.bf16.gmra.mrb[88].mxu0 %vm483_vm1, %v6946_v43  ;;  %v6316_v43 = vld [vmem:[%s9488_s5 + $0x38] sm:$0xff]  }
  0xbf   :  { %6503 = vmatprep.mubr.msk.bf16.mxu0 %vm483_vm1, %v6947_v52  ;;  %v6212_v47 = vunpack.c.l.bf16 %v6316_v43  ;;  %v6955_v52 = vld [vmem:[%s9484_s1 + $0x1b0] sm:$0xff]   ;;  %v6213_v58 = vunpack.c.h.bf16 %v6316_v43 }
  0xc0   :  { %4970 = vperm.xlu1 %6895, %v4812_v54   ;;  %v6216_v54 = vunpack.c.l.bf16 %v6317_v51  ;;  %v6321_v51 = vld [vmem:[%s9488_s5 + $0x60] sm:$0xff]  }
  0xc1   :  { %4965 = vperm.xlu0 %6894, %v4811_v56   ;;  %v7921_v56 = vpop.permute.xlu0 %1703 }
  0xc4   :  { %5273 = vperm.xlu1 %6895, %v6188_v0   ;;  %v6220_v0 = vunpack.c.l.bf16 %v6318_v60 }
  0xc5   :  { %6897 = vperm.xlu0 %6894, %v6896_v2   ;;  %v1489_v2 = vpop.permute.xlu1 %1488 }
  0xc6   :  { %6504 = vmatmul.mubr.msk.bf16.gmra.mrb[92].mxu0 %vm483_vm1, %v6948_v4 }
  0xc7   :  { %6507 = vmatprep.mubr.msk.bf16.mxu0 %vm483_vm1, %v6949_v6  ;;  %v6956_v6 = vld [vmem:[%s9484_s1 + $0x1b8] sm:$0xff]  }
  0xc8   :  { %5283 = vperm.xlu1 %6895, %v6192_v9   ;;  %v6319_v9 = vld [vmem:[%s9488_s5 + $0x50] sm:$0xff]  }
  0xc9   :  { %5278 = vperm.xlu0 %6894, %v6189_v11  }
  0xcc   :  { %5293 = vperm.xlu1 %6895, %v6196_v16   ;;  %v7937_v16 = vpop.permute.xlu0 %1708 }
  0xcd   :  { %5288 = vperm.xlu0 %6894, %v6193_v18  }
  0xce   :  { %6508 = vmatmul.mubr.msk.bf16.gmra.mrb[96].mxu0 %vm483_vm1, %v6950_v19 }
  0xcf   :  { %6511 = vmatprep.mubr.msk.bf16.mxu0 %vm483_vm1, %v6951_v21  ;;  %v6224_v21 = vunpack.c.l.bf16 %v6319_v9 }
  0xd0   :  { %5303 = vperm.xlu1 %6895, %v6200_v26   ;;  %v6221_v26 = vunpack.c.h.bf16 %v6318_v60  ;;  %v7954_v43 = vpop.permute.xlu0 %1713 }
  0xd1   :  { %5298 = vperm.xlu0 %6894, %v6197_v27   ;;  %v6320_v27 = vld [vmem:[%s9488_s5 + $0x58] sm:$0xff]  }
  0xd4   :  { %5313 = vperm.xlu1 %6895, %v6204_v30  }
  0xd5   :  { %5308 = vperm.xlu0 %6894, %v6201_v34   ;;  %v1494_v34 = vpop.permute.xlu1 %1493 }
  0xd6   :  { %6512 = vmatmul.mubr.msk.bf16.gmra.mrb[100].mxu0 %vm483_vm1, %v6952_v35  ;;  %v7947_v35 = vld [vmem:[%s9486_s3 + $0x4c8] sm:$0xff] }
  0xd7   :  { %6515 = vmatprep.mubr.msk.bf16.mxu0 %vm483_vm1, %v6953_v37 }
  0xd8   :  { %5323 = vperm.xlu1 %6895, %v6208_v38   ;;  %v6228_v38 = vunpack.c.l.bf16 %v6320_v27 }
  0xd9   :  { %5318 = vperm.xlu0 %6894, %v6205_v42   ;;  %v7952_v42 = vld [vmem:[%s9486_s3 + $0x4e8] sm:$0xff] }
  0xdc   :  { %5333 = vperm.xlu1 %6895, %v6212_v47  }
  0xdd   :  { %5328 = vperm.xlu0 %6894, %v6209_v49   ;;  %v6225_v49 = vunpack.c.h.bf16 %v6319_v9  ;;  %v6229_v9 = vunpack.c.h.bf16 %v6320_v27 }
  0xde   :  { %6516 = vmatmul.mubr.msk.bf16.gmra.mrb[104].mxu0 %vm483_vm1, %v6954_v50  ;;  %v6958_v50 = vld [vmem:[%s9484_s1 + $0x1c8] sm:$0xff]  }
  0xdf   :  { %6519 = vmatprep.mubr.msk.bf16.mxu0 %vm483_vm1, %v6955_v52  ;;  %v6080_v52 = vcombine.low %v7947_v35, %v7952_v42 }
  0xe0   :  { %5343 = vperm.xlu1 %6895, %v6216_v54  }
  0xe1   :  { %v6413_v62 = vpop.f32.mrb[0].mxu0  ;;  %5338 = vperm.xlu0 %6894, %v6213_v58  }
  0xe2   :  { %v714_v4 = vpop.f32.mrb[1].mxu0 }
  0xe3   :  { %v6414_v11 = vpop.f32.mrb[2].mxu0 }
  0xe4   :  { %v1226_v18 = vpack.c.bf16 %v6414_v11, %v6413_v62  ;;  %v717_v19 = vpop.f32.mrb[3].mxu0  ;;  %5353 = vperm.xlu1 %6895, %v6220_v0   ;;  %v6959_v62 = vld [vmem:[%s9484_s1 + $0x1d0] sm:$0xff]   ;;  %v6322_v11 = vld [vmem:[%s9488_s5 + $0x68] sm:$0xff]  }
  0xe5   :  { %v1225_v20 = vpack.c.bf16 %v717_v19, %v714_v4  ;;  %5348 = vperm.xlu0 %6894, %v6217_v5   ;;  %v6232_v5 = vunpack.c.l.bf16 %v6321_v51 }
  0xe6   :  { %6520 = vmatmul.mubr.msk.bf16.gmra.mrb[108].mxu0 %vm483_vm1, %v6956_v6  ;;  %v1802_v28 = vadd.bf16 %v1489_v2, %v1226_v18  ;;  %v1499_v6 = vpop.permute.xlu1 %1498 }
  0xe7   :  { %v1801_v30 = vadd.bf16 %v1484_v53, %v1225_v20  ;;  %6523 = vmatprep.mubr.msk.bf16.mxu0 %vm483_vm1, %v6957_v14  ;;  %v6081_v53 = vcombine.high %v7947_v35, %v7952_v42  ;;  %v7975_v20 = vpop.permute.xlu0 %1718  ;;  %v2162_v42 = vld [vmem:[%s9486_s3 + $0x548] sm:$0xff] }
  0xe8   :  { %5363 = vperm.xlu1 %6895, %v6224_v21   ;;  %v1866_v54 = vmul.bf16 1045249613, %v1802_v28 }
  0xe9   :  { %v1865_v36 = vmul.bf16 1045249613, %v1801_v30  ;;  %v6417_v37 = vpop.f32.mrb[4].mxu0  ;;  %5358 = vperm.xlu0 %6894, %v6221_v26   ;;  %4002 = vmatprep.mubr.bf16.mxu1 %v6081_v53 }
  0xea   :  { %v730_v47 = vpop.f32.mrb[5].mxu0  ;;  %v1930_v14 = vmax.bf16 %v1866_v54, %v1802_v28  ;;  %v6960_v28 = vld [vmem:[%s9484_s1 + $0x1d8] sm:$0xff]  }
  0xeb   :  { %v1929_v58 = vmax.bf16 %v1865_v36, %v1801_v30  ;;  %v6418_v60 = vpop.f32.mrb[6].mxu0  ;;  %v6236_v30 = vunpack.c.l.bf16 %v6322_v11  ;;  %v6233_v36 = vunpack.c.h.bf16 %v6321_v51 }
  0xec   :  { %v1228_v0 = vpack.c.bf16 %v6418_v60, %v6417_v37  ;;  %v733_v2 = vpop.f32.mrb[7].mxu0  ;;  %5373 = vperm.xlu1 %6895, %v6228_v38   ;;  %v1509_v60 = vpop.permute.xlu1 %1508 }
  0xed   :  { %v1227_v4 = vpack.c.bf16 %v733_v2, %v730_v47  ;;  %3530 = vmatpush1.bf16.msra.mxu0 %v1929_v58  ;;  %5368 = vperm.xlu0 %6894, %v6225_v49   ;;  %v6961_v49 = vld [vmem:[%s9484_s1 + $0x1e0] sm:$0xff]   ;;  %v1504_v58 = vpop.permute.xlu0 %1503 }
  0xee   :  { %6524 = vmatmul.mubr.msk.bf16.gmra.mrb[112].mxu0 %vm483_vm1, %v6958_v50  ;;  %v1804_v18 = vadd.bf16 %v1499_v6, %v1228_v0  ;;  %3531 = vmatprep.subr.bf16.mxu0 %v6989_v3  ;;  %v6324_v0 = vld [vmem:[%s9488_s5 + $0x78] sm:$0xff]  }
  0xef   :  { %v1803_v19 = vadd.bf16 %v1494_v34, %v1227_v4  ;;  %6527 = vmatprep.mubr.msk.bf16.mxu0 %vm483_vm1, %v6959_v62  ;;  %v6323_v34 = vld [vmem:[%s9488_s5 + $0x70] sm:$0xff]   ;;  %v6237_v62 = vunpack.c.h.bf16 %v6322_v11 }
  0xf0   :  { %5383 = vperm.xlu1 %6895, %v6232_v5   ;;  %v1868_v37 = vmul.bf16 1045249613, %v1804_v18  ;;  %v6240_v51 = vunpack.c.l.bf16 %v6323_v34  ;;  %v6241_v11 = vunpack.c.h.bf16 %v6323_v34 }
  0xf1   :  { %v1867_v21 = vmul.bf16 1045249613, %v1803_v19  ;;  %v6421_v26 = vpop.f32.mrb[8].mxu0  ;;  %3532 = vmatpush1.bf16.msra.mxu0 %v1930_v14  ;;  %5378 = vperm.xlu0 %6894, %v6229_v9   ;;  %v6244_v14 = vunpack.c.l.bf16 %v6324_v0 }
  0xf2   :  { %v746_v27 = vpop.f32.mrb[9].mxu0  ;;  %3533 = vmatprep.subr.bf16.mxu0 %v6989_v3  ;;  %v1932_v2 = vmax.bf16 %v1868_v37, %v1804_v18  ;;  %v6962_v18 = vld [vmem:[%s9484_s1 + $0x1e8] sm:$0xff]  }
  0xf3   :  { %v1931_v38 = vmax.bf16 %v1867_v21, %v1803_v19  ;;  %v6422_v47 = vpop.f32.mrb[10].mxu0  ;;  %v6325_v21 = vld [vmem:[%s9488_s5 + $0x80] sm:$0xff]  }
  0xf4   :  { %v1230_v50 = vpack.c.bf16 %v6422_v47, %v6421_v26  ;;  %v749_v53 = vpop.f32.mrb[11].mxu0  ;;  %5393 = vperm.xlu1 %6895, %v6236_v30   ;;  %v6248_v34 = vunpack.c.l.bf16 %v6325_v21  ;;  %v1514_v47 = vpop.permute.xlu0 %1513 }
  0xf5   :  { %v1229_v54 = vpack.c.bf16 %v749_v53, %v746_v27  ;;  %3534 = vmatpush1.bf16.msra.mxu0 %v1931_v38  ;;  %5388 = vperm.xlu0 %6894, %v6233_v36   ;;  %v6963_v36 = vld [vmem:[%s9484_s1 + $0x1f0] sm:$0xff]   ;;  %v6326_v53 = vld [vmem:[%s9488_s5 + $0x88] sm:$0xff]  }
  0xf6   :  { %6528 = vmatmul.mubr.msk.bf16.gmra.mrb[116].mxu0 %vm483_vm1, %v6960_v28  ;;  %v1806_v4 = vadd.bf16 %v1509_v60, %v1230_v50  ;;  %3535 = vmatprep.subr.bf16.mxu0 %v6989_v3  ;;  %v6245_v50 = vunpack.c.h.bf16 %v6324_v0  ;;  %v8012_v60 = vld [vmem:[%s9486_s3] sm:$0xff] }
  0xf7   :  { %v1805_v5 = vadd.bf16 %v1504_v58, %v1229_v54  ;;  %6531 = vmatprep.mubr.msk.bf16.mxu0 %vm483_vm1, %v6961_v49  ;;  %v1519_v49 = vpop.permute.xlu1 %1518 }
  0xf8   :  { %5403 = vperm.xlu1 %6895, %v6240_v51   ;;  %v1870_v26 = vmul.bf16 1045249613, %v1806_v4 }
  0xf9   :  { %v1869_v6 = vmul.bf16 1045249613, %v1805_v5  ;;  %v6425_v9 = vpop.f32.mrb[12].mxu0  ;;  %3536 = vmatpush1.bf16.msra.mxu0 %v1932_v2  ;;  %5398 = vperm.xlu0 %6894, %v6237_v62   ;;  %v8017_v62 = vld [vmem:[%s9486_s3 + $0x20] sm:$0xff] }
  0xfa   :  { %v762_v19 = vpop.f32.mrb[13].mxu0  ;;  %3537 = vmatprep.subr.bf16.mxu0 %v6989_v3  ;;  %v1934_v54 = vmax.bf16 %v1870_v26, %v1806_v4  ;;  %v6252_v4 = vunpack.c.l.bf16 %v6326_v53  ;;  %v5927_v26 = vcombine.high %v8012_v60, %v8017_v62 }
  0xfb   :  { %v1933_v30 = vmax.bf16 %v1869_v6, %v1805_v5  ;;  %v6426_v27 = vpop.f32.mrb[14].mxu0  ;;  %v6249_v6 = vunpack.c.h.bf16 %v6325_v21 }
  0xfc   :  { %v1232_v28 = vpack.c.bf16 %v6426_v27, %v6425_v9  ;;  %v765_v37 = vpop.f32.mrb[15].mxu0  ;;  %5413 = vperm.xlu1 %6895, %v6244_v14   ;;  %v6964_v9 = vld [vmem:[%s9484_s1 + $0x1f8] sm:$0xff]   ;;  %v6327_v14 = vld [vmem:[%s9488_s5 + $0x90] sm:$0xff]   ;;  %s6990_s1 = smov [#allocation3]  }
  0xfd   :  { %v1231_v38 = vpack.c.bf16 %v765_v37, %v762_v19  ;;  %3538 = vmatpush1.bf16.msra.mxu0 %v1933_v30  ;;  %5408 = vperm.xlu0 %6894, %v6241_v11   ;;  %v6256_v21 = vunpack.c.l.bf16 %v6327_v14  ;;  %v1529_v37 = vpop.permute.xlu1 %1528  ;;  %s5790_s24 = sshll.u32 %s6990_s1, 4  ;;  %s5791_s24 = int_to_ptr.vmem [resolvable:$true] %s5790_s24 }
  0xfe   :  { %6532 = vmatmul.mubr.msk.bf16.gmra.mrb[120].mxu0 %vm483_vm1, %v6962_v18  ;;  %v1808_v51 = vadd.bf16 %v1519_v49, %v1232_v28  ;;  %3539 = vmatprep.subr.bf16.mxu0 %v6989_v3  ;;  %v1524_v28 = vpop.permute.xlu0 %1523  ;;  %s6965_s4 = scalar_lea.vmem %s5791_s24, 16  ;;  %s6969_s25 = scalar_lea.vmem %s5791_s24, 32 }
  0xff   :  { %v1807_v58 = vadd.bf16 %v1514_v47, %v1231_v38  ;;  %6535 = vmatprep.mubr.msk.bf16.mxu0 %vm483_vm1, %v6963_v36  ;;  %v6253_v38 = vunpack.c.h.bf16 %v6326_v53  ;;  %v6257_v53 = vunpack.c.h.bf16 %v6327_v14  ;;  %v6330_v14 = vld [vmem:[%s9488_s5 + $0xa8] sm:$0xff]   ;;  %p6966_p0 = scmp.ne.s32.totalorder %s5791_s24, %s6965_s4  ;;  %p6970_p1 = scmp.lt.s32.totalorder %s5791_s24, %s5791_s24 }
 0x100   :  { %5423 = vperm.xlu1 %6895, %v6248_v34   ;;  %v1872_v19 = vmul.bf16 1045249613, %v1808_v51  ;;  %v6328_v34 = vld [vmem:[%s9488_s5 + $0x98] sm:$0xff]   ;;  %p6971_p2 = scmp.lt.s32.totalorder %s6969_s25, %s6965_s4 }
 0x101   :  { %v1871_v0 = vmul.bf16 1045249613, %v1807_v58  ;;  %v6429_v2 = vpop.f32.mrb[16].mxu0  ;;  %3540 = vmatpush1.bf16.msra.mxu0 %v1934_v54  ;;  %5418 = vperm.xlu0 %6894, %v6245_v50  }
 0x102   :  { %v778_v5 = vpop.f32.mrb[17].mxu0  ;;  %3541 = vmatprep.subr.bf16.mxu0 %v6989_v3  ;;  %v1936_v47 = vmax.bf16 %v1872_v19, %v1808_v51  ;;  %p6972_p3 = por %p6971_p2, %p6970_p1 }
 0x103   :  { %v1935_v11 = vmax.bf16 %v1871_v0, %v1807_v58  ;;  %v6430_v18 = vpop.f32.mrb[18].mxu0  ;;  %v6260_v0 = vunpack.c.l.bf16 %v6328_v34 }
 0x104   :  { %v1234_v30 = vpack.c.bf16 %v6430_v18, %v6429_v2  ;;  %v781_v27 = vpop.f32.mrb[19].mxu0  ;;  %5433 = vperm.xlu1 %6895, %v6252_v4   ;;  %v6329_v4 = vld [vmem:[%s9488_s5 + $0xa0] sm:$0xff]   ;;  %p6973_p4 = pnand %p6972_p3, %p6966_p0 }
 0x105   :  { %v1233_v36 = vpack.c.bf16 %v781_v27, %v778_v5  ;;  %3542 = vmatpush1.bf16.msra.mxu0 %v1935_v11  ;;  %5428 = vperm.xlu0 %6894, %v6249_v6   ;;  %v6261_v27 = vunpack.c.h.bf16 %v6328_v34  ;;  %v6331_v34 = vld [vmem:[%s9488_s5 + $0xb0] sm:$0xff]  }
 0x106   :  { %6536 = vmatmul.mubr.msk.bf16.gmra.mrb[124].mxu0 %vm483_vm1, %v6964_v9  ;;  %v1810_v49 = vadd.bf16 %v1529_v37, %v1234_v30  ;;  %3543 = vmatprep.subr.bf16.mxu0 %v6989_v3  ;;  %v1534_v9 = vpop.permute.xlu0 %1533  ;;  %v1539_v30 = vpop.permute.xlu1 %1538 }
 0x107   :  { %v1809_v50 = vadd.bf16 %v1524_v28, %v1233_v36  ;;  %3561 = vmatprep.mubr.bf16.mxu0 %v5927_v26  ;;  %v6264_v26 = vunpack.c.l.bf16 %v6329_v4 }
 0x108   :  { %5443 = vperm.xlu1 %6895, %v6256_v21   ;;  %v1874_v51 = vmul.bf16 1045249613, %v1810_v49 }
 0x109   :  { %v1873_v54 = vmul.bf16 1045249613, %v1809_v50  ;;  %v6433_v58 = vpop.f32.mrb[20].mxu0  ;;  %3544 = vmatpush1.bf16.msra.mxu0 %v1936_v47  ;;  %5438 = vperm.xlu0 %6894, %v6253_v38   ;;  %v6268_v47 = vunpack.c.l.bf16 %v6330_v14 }
 0x10a   :  { %v794_v2 = vpop.f32.mrb[21].mxu0  ;;  %3545 = vmatprep.subr.bf16.mxu0 %v6989_v3  ;;  %v1938_v36 = vmax.bf16 %v1874_v51, %v1810_v49 }
 0x10b   :  { %v1937_v5 = vmax.bf16 %v1873_v54, %v1809_v50  ;;  %v6434_v6 = vpop.f32.mrb[22].mxu0  ;;  %v1544_v50 = vpop.permute.xlu0 %1543 }
 0x10c   :  { %v1236_v19 = vpack.c.bf16 %v6434_v6, %v6433_v58  ;;  %v797_v11 = vpop.f32.mrb[23].mxu0  ;;  %5453 = vperm.xlu1 %6895, %v6260_v0   ;;  %v6265_v58 = vunpack.c.h.bf16 %v6329_v4  ;;  %v6332_v4 = vld [vmem:[%s9488_s5 + $0xb8] sm:$0xff]  }
 0x10d   :  { %v1235_v18 = vpack.c.bf16 %v797_v11, %v794_v2  ;;  %3546 = vmatpush1.bf16.msra.mxu0 %v1937_v5  ;;  %5448 = vperm.xlu0 %6894, %v6257_v53   ;;  %v1549_v53 = vpop.permute.xlu1 %1548 }
 0x10e   :  { %3547 = vmatprep.subr.bf16.mxu0 %v6989_v3  ;;  %v1812_v21 = vadd.bf16 %v1539_v30, %v1236_v19  ;;  %v6269_v19 = vunpack.c.h.bf16 %v6330_v14  ;;  %v6333_v14 = vld [vmem:[%s9488_s5 + $0xc0] sm:$0xff]  }
 0x10f   :  { %v1811_v28 = vadd.bf16 %v1534_v9, %v1235_v18  ;;  %v6272_v9 = vunpack.c.l.bf16 %v6331_v34  ;;  %v1554_v30 = vpop.permute.xlu0 %1553 }
 0x110   :  { %5463 = vperm.xlu1 %6895, %v6264_v26   ;;  %v1876_v0 = vmul.bf16 1045249613, %v1812_v21 }
 0x111   :  { %v1875_v37 = vmul.bf16 1045249613, %v1811_v28  ;;  %v6437_v38 = vpop.f32.mrb[24].mxu0  ;;  %3548 = vmatpush1.bf16.msra.mxu0 %v1938_v36  ;;  %5458 = vperm.xlu0 %6894, %v6261_v27  }
 0x112   :  { %v810_v54 = vpop.f32.mrb[25].mxu0  ;;  %3549 = vmatprep.subr.bf16.mxu0 %v6989_v3  ;;  %v1940_v11 = vmax.bf16 %v1876_v0, %v1812_v21 }
 0x113   :  { %v1939_v2 = vmax.bf16 %v1875_v37, %v1811_v28  ;;  %v6438_v49 = vpop.f32.mrb[26].mxu0  ;;  %v6276_v28 = vunpack.c.l.bf16 %v6332_v4  ;;  %v1559_v37 = vpop.permute.xlu1 %1558 }
 0x114   :  { %v1238_v51 = vpack.c.bf16 %v6438_v49, %v6437_v38  ;;  %v813_v5 = vpop.f32.mrb[27].mxu0  ;;  %5473 = vperm.xlu1 %6895, %v6268_v47   ;;  %v6273_v47 = vunpack.c.h.bf16 %v6331_v34  ;;  %v6280_v49 = vunpack.c.l.bf16 %v6333_v14  ;;  %v6334_v34 = vld [vmem:[%s9488_s5 + $0xc8] sm:$0xff]  }
 0x115   :  { %v1237_v6 = vpack.c.bf16 %v813_v5, %v810_v54  ;;  %3550 = vmatpush1.bf16.msra.mxu0 %v1939_v2  ;;  %5468 = vperm.xlu0 %6894, %v6265_v58  }
 0x116   :  { %3551 = vmatprep.subr.bf16.mxu0 %v6989_v3  ;;  %v1814_v18 = vadd.bf16 %v1549_v53, %v1238_v51  ;;  %v8053_v53 = vpop.permute.xlu0 %1723  ;;  %v6277_v51 = vunpack.c.h.bf16 %v6332_v4  ;;  %v6335_v4 = vld [vmem:[%s9488_s5 + $0xd0] sm:$0xff]  }
 0x117   :  { %v1813_v26 = vadd.bf16 %v1544_v50, %v1237_v6 }
 0x118   :  { %5483 = vperm.xlu1 %6895, %v6272_v9   ;;  %v1878_v54 = vmul.bf16 1045249613, %v1814_v18 }
 0x119   :  { %v1877_v27 = vmul.bf16 1045249613, %v1813_v26  ;;  %v6441_v36 = vpop.f32.mrb[28].mxu0  ;;  %3552 = vmatpush1.bf16.msra.mxu0 %v1940_v11  ;;  %5478 = vperm.xlu0 %6894, %v6269_v19   ;;  %v8059_v19 = vpop.permute.xlu1 %1728 }
 0x11a   :  { %v826_v38 = vpop.f32.mrb[29].mxu0  ;;  %3553 = vmatprep.subr.bf16.mxu0 %v6989_v3  ;;  %v1942_v5 = vmax.bf16 %v1878_v54, %v1814_v18 }
 0x11b   :  { %v1941_v21 = vmax.bf16 %v1877_v27, %v1813_v26  ;;  %v6442_v58 = vpop.f32.mrb[30].mxu0  ;;  %v6284_v27 = vunpack.c.l.bf16 %v6334_v34 }
 0x11c   :  { %v1240_v50 = vpack.c.bf16 %v6442_v58, %v6441_v36  ;;  %v829_v0 = vpop.f32.mrb[31].mxu0  ;;  %5493 = vperm.xlu1 %6895, %v6276_v28   ;;  %v6281_v28 = vunpack.c.h.bf16 %v6333_v14  ;;  %v6288_v58 = vunpack.c.l.bf16 %v6335_v4  ;;  %v6285_v14 = vunpack.c.h.bf16 %v6334_v34  ;;  %v2001_v34 = vld [vmem:[%s9486_s3 + $0x40] sm:$0xff] }
 0x11d   :  { %v1239_v2 = vpack.c.bf16 %v829_v0, %v826_v38  ;;  %3554 = vmatpush1.bf16.msra.mxu0 %v1941_v21  ;;  %5488 = vperm.xlu0 %6894, %v6273_v47  }
 0x11e   :  { %3555 = vmatprep.subr.bf16.mxu0 %v6989_v3  ;;  %v1816_v6 = vadd.bf16 %v1559_v37, %v1240_v50  ;;  %v8067_v50 = vpop.permute.xlu1 %1738 }
 0x11f   :  { %v1815_v9 = vadd.bf16 %v1554_v30, %v1239_v2  ;;  %v8065_v30 = vpop.permute.xlu0 %1733 }
 0x120   :  { %5503 = vperm.xlu1 %6895, %v6280_v49   ;;  %v1880_v38 = vmul.bf16 1045249613, %v1816_v6 }
 0x121   :  { %v1879_v11 = vmul.bf16 1045249613, %v1815_v9  ;;  %v6445_v26 = vpop.f32.mrb[32].mxu0  ;;  %3556 = vmatpush1.bf16.msra.mxu0 %v1942_v5  ;;  %5498 = vperm.xlu0 %6894, %v6277_v51   ;;  %v6336_v51 = vld [vmem:[%s9488_s5 + $0xd8] sm:$0xff]   ;;  %v5926_v5 = vcombine.low %v8012_v60, %v8017_v62 }
 0x122   :  { %v842_v36 = vpop.f32.mrb[33].mxu0  ;;  %3557 = vmatprep.subr.bf16.mxu0 %v6989_v3  ;;  %v1944_v0 = vmax.bf16 %v1880_v38, %v1816_v6  ;;  %v6292_v60 = vunpack.c.l.bf16 %v6336_v51  ;;  %v8089_v38 = vpop.permute.xlu1 %1748 }
 0x123   :  { %v1943_v18 = vmax.bf16 %v1879_v11, %v1815_v9  ;;  %v6446_v37 = vpop.f32.mrb[34].mxu0 }
 0x124   :  { %v1242_v47 = vpack.c.bf16 %v6446_v37, %v6445_v26  ;;  %v845_v54 = vpop.f32.mrb[35].mxu0  ;;  %5513 = vperm.xlu1 %6895, %v6284_v27   ;;  %v6289_v26 = vunpack.c.h.bf16 %v6335_v4  ;;  %v6293_v4 = vunpack.c.h.bf16 %v6336_v51 }
 0x125   :  { %v1241_v21 = vpack.c.bf16 %v845_v54, %v842_v36  ;;  %3558 = vmatpush1.bf16.msra.mxu0 %v1943_v18  ;;  %5508 = vperm.xlu0 %6894, %v6281_v28   ;;  %v6337_v28 = vld [vmem:[%s9488_s5 + $0xe0] sm:$0xff]  }
 0x126   :  { %3559 = vmatprep.subr.bf16.mxu0 %v6989_v3  ;;  %v1818_v2 = vadd.bf16 %v7634_v13, %v1242_v47  ;;  %v2005_v13 = vld [vmem:[%s9486_s3 + $0x60] sm:$0xff] }
 0x127   :  { %v1817_v49 = vadd.bf16 %v7598_v61, %v1241_v21  ;;  %v8083_v61 = vpop.permute.xlu0 %1743  ;;  %v5935_v47 = vcombine.high %v2001_v34, %v2005_v13  ;;  %v6296_v21 = vunpack.c.l.bf16 %v6337_v28 }
 0x128   :  { %5523 = vperm.xlu1 %6895, %v6288_v58   ;;  %v1882_v62 = vmul.bf16 1045249613, %v1818_v2 }
 0x129   :  { %v1881_v9 = vmul.bf16 1045249613, %v1817_v49  ;;  %v6449_v11 = vpop.f32.mrb[36].mxu0  ;;  %3560 = vmatpush1.bf16.msra.mxu0 %v1944_v0  ;;  %5518 = vperm.xlu0 %6894, %v6285_v14  }
 0x12a   :  { %v858_v6 = vpop.f32.mrb[37].mxu0  ;;  %3818 = vmatprep.subr.bf16.mxu0 %v6989_v3  ;;  %v1946_v58 = vmax.bf16 %v1882_v62, %v1818_v2  ;;  %v8106_v2 = vpop.permute.xlu1 %1758 }
 0x12b   :  { %v1945_v27 = vmax.bf16 %v1881_v9, %v1817_v49  ;;  %v6450_v36 = vpop.f32.mrb[38].mxu0  ;;  %v6338_v49 = vld [vmem:[%s9488_s5 + $0xe8] sm:$0xff]   ;;  %v5934_v9 = vcombine.low %v2001_v34, %v2005_v13 }
 0x12c   :  { %v1244_v18 = vpack.c.bf16 %v6450_v36, %v6449_v11  ;;  %v861_v37 = vpop.f32.mrb[39].mxu0  ;;  %3562 = vmatmul.mubr.bf16.vlgmr.msra.gmra.mrb[128].mxu0 %v5926_v5  ;;  %5533 = vperm.xlu1 %6895, %v6292_v60   ;;  %v8098_v5 = vpop.permute.xlu0 %1753  ;;  %v6300_v60 = vunpack.c.l.bf16 %v6338_v49 }
 0x12d   :  { %v1243_v54 = vpack.c.bf16 %v861_v37, %v858_v6  ;;  %3819 = vmatpush1.bf16.msra.mxu0 %v1945_v27  ;;  %6555 = vmatpush1.bf16.msra.mxu1 %v1945_v27  ;;  %v6339_v27 = vld [vmem:[%s9488_s5 + $0xf0] sm:$0xff]  }
 0x12e   :  { %5528 = vperm.xlu0 %6894, %v6289_v26   ;;  %v1820_v14 = vadd.bf16 %v7618_v7, %v1244_v18  ;;  %3820 = vmatprep.subr.bf16.mxu0 %v6989_v3  ;;  %v2013_v7 = vld [vmem:[%s9486_s3 + $0xa0] sm:$0xff]  ;;  %v6297_v26 = vunpack.c.h.bf16 %v6337_v28 }
 0x12f   :  { %v1819_v0 = vadd.bf16 %v7596_v59, %v1243_v54  ;;  %6540 = vmatprep.subr.bf16.mxu1 %v6989_v3  ;;  %3569 = vmatprep.mubr.bf16.mxu0 %v5935_v47  ;;  %v2009_v59 = vld [vmem:[%s9486_s3 + $0x80] sm:$0xff]  ;;  %v6301_v54 = vunpack.c.h.bf16 %v6338_v49 }
 0x130   :  { %5543 = vperm.xlu1 %6895, %v6296_v21   ;;  %v1884_v34 = vmul.bf16 1045249613, %v1820_v14  ;;  %v5943_v37 = vcombine.high %v2009_v59, %v2013_v7  ;;  %v8113_v28 = vpop.permute.xlu0 %1763 }
 0x131   :  { %v1883_v11 = vmul.bf16 1045249613, %v1819_v0  ;;  %v6453_v51 = vpop.f32.mrb[40].mxu0  ;;  %3821 = vmatpush1.bf16.msra.mxu0 %v1946_v58  ;;  %6556 = vmatpush1.bf16.msra.mxu1 %v1946_v58 }
 0x132   :  { %5538 = vperm.xlu0 %6894, %v6293_v4   ;;  %v874_v6 = vpop.f32.mrb[41].mxu0  ;;  %3822 = vmatprep.subr.bf16.mxu0 %v6989_v3  ;;  %v6304_v4 = vunpack.c.l.bf16 %v6339_v27  ;;  %v1948_v21 = vmax.bf16 %v1884_v34, %v1820_v14 }
 0x133   :  { %v1947_v13 = vmax.bf16 %v1883_v11, %v1819_v0  ;;  %v6454_v62 = vpop.f32.mrb[42].mxu0  ;;  %6541 = vmatprep.subr.bf16.mxu1 %v6989_v3  ;;  %v8122_v11 = vpop.permute.xlu1 %1768 }
 0x134   :  { %v1246_v36 = vpack.c.bf16 %v6454_v62, %v6453_v51  ;;  %v877_v18 = vpop.f32.mrb[43].mxu0  ;;  %3570 = vmatmul.mubr.bf16.gmra.mrb[132].mxu0 %v5934_v9  ;;  %5553 = vperm.xlu1 %6895, %v6300_v60   ;;  %v6340_v9 = vld [vmem:[%s9488_s5 + $0xf8] sm:$0xff]   ;;  %v5942_v51 = vcombine.low %v2009_v59, %v2013_v7  ;;  %v8132_v7 = vpop.permute.xlu0 %1773 }
 0x135   :  { %v1245_v47 = vpack.c.bf16 %v877_v18, %v874_v6  ;;  %3823 = vmatpush1.bf16.msra.mxu0 %v1947_v13  ;;  %6557 = vmatpush1.bf16.msra.mxu1 %v1947_v13  ;;  %v6308_v60 = vunpack.c.l.bf16 %v6340_v9 }
 0x136   :  { %5548 = vperm.xlu0 %6894, %v6297_v26   ;;  %v1822_v58 = vadd.bf16 %v7654_v22, %v1246_v36  ;;  %3824 = vmatprep.subr.bf16.mxu0 %v6989_v3  ;;  %v2017_v22 = vld [vmem:[%s9486_s3 + $0xc0] sm:$0xff]  ;;  %v6305_v26 = vunpack.c.h.bf16 %v6339_v27  ;;  %v6309_v27 = vunpack.c.h.bf16 %v6340_v9 }
 0x137   :  { %v1821_v0 = vadd.bf16 %v7656_v24, %v1245_v47  ;;  %6542 = vmatprep.subr.bf16.mxu1 %v6989_v3  ;;  %3577 = vmatprep.mubr.bf16.mxu0 %v5943_v37  ;;  %v2021_v24 = vld [vmem:[%s9486_s3 + $0xe0] sm:$0xff]  ;;  %v8134_v47 = vpop.permute.xlu1 %1778 }
 0x138   :  { %5563 = vperm.xlu1 %6895, %v6304_v4   ;;  %v1886_v34 = vmul.bf16 1045249613, %v1822_v58  ;;  %v5951_v18 = vcombine.high %v2017_v22, %v2021_v24 }
 0x139   :  { %v1885_v6 = vmul.bf16 1045249613, %v1821_v0  ;;  %v6457_v49 = vpop.f32.mrb[44].mxu0  ;;  %3825 = vmatpush1.bf16.msra.mxu0 %v1948_v21  ;;  %6558 = vmatpush1.bf16.msra.mxu1 %v1948_v21 }
 0x13a   :  { %5558 = vperm.xlu0 %6894, %v6301_v54   ;;  %v890_v14 = vpop.f32.mrb[45].mxu0  ;;  %3826 = vmatprep.subr.bf16.mxu0 %v6989_v3  ;;  %v1950_v54 = vmax.bf16 %v1886_v34, %v1822_v58 }
 0x13b   :  { %v1949_v13 = vmax.bf16 %v1885_v6, %v1821_v0  ;;  %v6458_v59 = vpop.f32.mrb[46].mxu0  ;;  %6543 = vmatprep.subr.bf16.mxu1 %v6989_v3  ;;  %v5950_v0 = vcombine.low %v2017_v22, %v2021_v24  ;;  %v2029_v6 = vld [vmem:[%s9486_s3 + $0x120] sm:$0xff] }
 0x13c   :  { %v1248_v62 = vpack.c.bf16 %v6458_v59, %v6457_v49  ;;  %v893_v36 = vpop.f32.mrb[47].mxu0  ;;  %3578 = vmatmul.mubr.bf16.gmra.mrb[136].mxu0 %v5942_v51  ;;  %5573 = vperm.xlu1 %6895, %v6308_v60   ;;  %v2025_v51 = vld [vmem:[%s9486_s3 + $0x100] sm:$0xff] }
 0x13d   :  { %v1247_v37 = vpack.c.bf16 %v893_v36, %v890_v14  ;;  %3827 = vmatpush1.bf16.msra.mxu0 %v1949_v13  ;;  %6559 = vmatpush1.bf16.msra.mxu1 %v1949_v13  ;;  %v5959_v14 = vcombine.high %v2025_v51, %v2029_v6  ;;  %v5958_v36 = vcombine.low %v2025_v51, %v2029_v6 }
 0x13e   :  { %5568 = vperm.xlu0 %6894, %v6305_v26   ;;  %v1824_v4 = vadd.bf16 %v7672_v31, %v1248_v62  ;;  %3828 = vmatprep.subr.bf16.mxu0 %v6989_v3  ;;  %v8146_v31 = vpop.permute.xlu0 %1783 }
 0x13f   :  { %v1823_v21 = vadd.bf16 %v7692_v39, %v1247_v37  ;;  %6544 = vmatprep.subr.bf16.mxu1 %v6989_v3  ;;  %3585 = vmatprep.mubr.bf16.mxu0 %v5951_v18  ;;  %v2033_v18 = vld [vmem:[%s9486_s3 + $0x140] sm:$0xff] }
 0x140   :  { %v1888_v49 = vmul.bf16 1045249613, %v1824_v4  ;;  %v2037_v37 = vld [vmem:[%s9486_s3 + $0x160] sm:$0xff] }
 0x141   :  { %v1887_v9 = vmul.bf16 1045249613, %v1823_v21  ;;  %v6461_v58 = vpop.f32.mrb[48].mxu0  ;;  %3829 = vmatpush1.bf16.msra.mxu0 %v1950_v54  ;;  %6560 = vmatpush1.bf16.msra.mxu1 %v1950_v54 }
 0x142   :  { %5578 = vperm.xlu0 %6894, %v6309_v27   ;;  %v906_v39 = vpop.f32.mrb[49].mxu0  ;;  %3830 = vmatprep.subr.bf16.mxu0 %v6989_v3  ;;  %v1952_v13 = vmax.bf16 %v1888_v49, %v1824_v4 }
 0x143   :  { %v1951_v22 = vmax.bf16 %v1887_v9, %v1823_v21  ;;  %v6462_v24 = vpop.f32.mrb[50].mxu0  ;;  %6545 = vmatprep.subr.bf16.mxu1 %v6989_v3 }
 0x144   :  { %v1250_v26 = vpack.c.bf16 %v6462_v24, %v6461_v58  ;;  %v909_v60 = vpop.f32.mrb[51].mxu0  ;;  %3586 = vmatmul.mubr.bf16.gmra.mrb[140].mxu0 %v5950_v0  ;;  %v5967_v0 = vcombine.high %v2033_v18, %v2037_v37  ;;  %v2041_v24 = vld [vmem:[%s9486_s3 + $0x180] sm:$0xff] }
 0x145   :  { %v1249_v34 = vpack.c.bf16 %v909_v60, %v906_v39  ;;  %3831 = vmatpush1.bf16.msra.mxu0 %v1951_v22  ;;  %6561 = vmatpush1.bf16.msra.mxu1 %v1951_v22  ;;  %v5966_v22 = vcombine.low %v2033_v18, %v2037_v37 }
 0x146   :  { %3832 = vmatprep.subr.bf16.mxu0 %v6989_v3  ;;  %6546 = vmatprep.subr.bf16.mxu1 %v6989_v3  ;;  %v1826_v59 = vadd.bf16 %v7708_v46, %v1250_v26 }
 0x147   :  { %v1825_v62 = vadd.bf16 %v7710_v48, %v1249_v34  ;;  %3593 = vmatprep.mubr.bf16.mxu0 %v5959_v14  ;;  %v2045_v14 = vld [vmem:[%s9486_s3 + $0x1a0] sm:$0xff] }
 0x148   :  { %v1890_v46 = vmul.bf16 1045249613, %v1826_v59 }
 0x149   :  { %v1889_v27 = vmul.bf16 1045249613, %v1825_v62  ;;  %v6465_v54 = vpop.f32.mrb[52].mxu0  ;;  %3833 = vmatpush1.bf16.msra.mxu0 %v1952_v13  ;;  %6562 = vmatpush1.bf16.msra.mxu1 %v1952_v13 }
 0x14a   :  { %v922_v21 = vpop.f32.mrb[53].mxu0  ;;  %3834 = vmatprep.subr.bf16.mxu0 %v6989_v3  ;;  %6547 = vmatprep.subr.bf16.mxu1 %v6989_v3  ;;  %v1954_v58 = vmax.bf16 %v1890_v46, %v1826_v59  ;;  %v5975_v59 = vcombine.high %v2041_v24, %v2045_v14  ;;  %v2049_v46 = vld [vmem:[%s9486_s3 + $0x1c0] sm:$0xff] }
 0x14b   :  { %v1953_v48 = vmax.bf16 %v1889_v27, %v1825_v62  ;;  %v6466_v4 = vpop.f32.mrb[54].mxu0 }
 0x14c   :  { %v1252_v51 = vpack.c.bf16 %v6466_v4, %v6465_v54  ;;  %v925_v6 = vpop.f32.mrb[55].mxu0  ;;  %3594 = vmatmul.mubr.bf16.gmra.mrb[144].mxu0 %v5958_v36 }
 0x14d   :  { %v1251_v9 = vpack.c.bf16 %v925_v6, %v922_v21  ;;  %3835 = vmatpush1.bf16.msra.mxu0 %v1953_v48  ;;  %6563 = vmatpush1.bf16.msra.mxu1 %v1953_v48  ;;  %v5974_v21 = vcombine.low %v2041_v24, %v2045_v14  ;;  %v2053_v48 = vld [vmem:[%s9486_s3 + $0x1e0] sm:$0xff] }
 0x14e   :  { %3836 = vmatprep.subr.bf16.mxu0 %v6989_v3  ;;  %6548 = vmatprep.subr.bf16.mxu1 %v6989_v3  ;;  %v1828_v39 = vadd.bf16 %v7730_v57, %v1252_v51 }
 0x14f   :  { %v1827_v49 = vadd.bf16 %v7746_v1, %v1251_v9  ;;  %3601 = vmatprep.mubr.bf16.mxu0 %v5967_v0  ;;  %v5983_v9 = vcombine.high %v2049_v46, %v2053_v48 }
 0x150   :  { %v1892_v57 = vmul.bf16 1045249613, %v1828_v39 }
 0x151   :  { %v1891_v26 = vmul.bf16 1045249613, %v1827_v49  ;;  %v6469_v60 = vpop.f32.mrb[56].mxu0  ;;  %3837 = vmatpush1.bf16.msra.mxu0 %v1954_v58  ;;  %6564 = vmatpush1.bf16.msra.mxu1 %v1954_v58 }
 0x152   :  { %v938_v34 = vpop.f32.mrb[57].mxu0  ;;  %3838 = vmatprep.subr.bf16.mxu0 %v6989_v3  ;;  %6549 = vmatprep.subr.bf16.mxu1 %v6989_v3  ;;  %v1956_v37 = vmax.bf16 %v1892_v57, %v1828_v39 }
 0x153   :  { %v1955_v1 = vmax.bf16 %v1891_v26, %v1827_v49  ;;  %v6470_v13 = vpop.f32.mrb[58].mxu0  ;;  %v5982_v26 = vcombine.low %v2049_v46, %v2053_v48 }
 0x154   :  { %v1254_v62 = vpack.c.bf16 %v6470_v13, %v6469_v60  ;;  %v941_v36 = vpop.f32.mrb[59].mxu0  ;;  %3602 = vmatmul.mubr.bf16.gmra.mrb[148].mxu0 %v5966_v22  ;;  %v2057_v60 = vld [vmem:[%s9486_s3 + $0x200] sm:$0xff] }
 0x155   :  { %v1253_v18 = vpack.c.bf16 %v941_v36, %v938_v34  ;;  %3839 = vmatpush1.bf16.msra.mxu0 %v1955_v1  ;;  %6565 = vmatpush1.bf16.msra.mxu1 %v1955_v1  ;;  %v2061_v34 = vld [vmem:[%s9486_s3 + $0x220] sm:$0xff] }
 0x156   :  { %3840 = vmatprep.subr.bf16.mxu0 %v6989_v3  ;;  %6550 = vmatprep.subr.bf16.mxu1 %v6989_v3  ;;  %v1830_v27 = vadd.bf16 %v7766_v12, %v1254_v62  ;;  %v5991_v62 = vcombine.high %v2057_v60, %v2061_v34 }
 0x157   :  { %v1829_v54 = vadd.bf16 %v7768_v15, %v1253_v18  ;;  %3609 = vmatprep.mubr.bf16.mxu0 %v5975_v59 }
 0x158   :  { %v1894_v12 = vmul.bf16 1045249613, %v1830_v27 }
 0x159   :  { %v1893_v4 = vmul.bf16 1045249613, %v1829_v54  ;;  %v6473_v0 = vpop.f32.mrb[60].mxu0  ;;  %3841 = vmatpush1.bf16.msra.mxu0 %v1956_v37  ;;  %6566 = vmatpush1.bf16.msra.mxu1 %v1956_v37 }
 0x15a   :  { %v954_v51 = vpop.f32.mrb[61].mxu0  ;;  %3842 = vmatprep.subr.bf16.mxu0 %v6989_v3  ;;  %6551 = vmatprep.subr.bf16.mxu1 %v6989_v3  ;;  %v1958_v22 = vmax.bf16 %v1894_v12, %v1830_v27  ;;  %v2065_v27 = vld [vmem:[%s9486_s3 + $0x240] sm:$0xff] }
 0x15b   :  { %v1957_v15 = vmax.bf16 %v1893_v4, %v1829_v54  ;;  %v6474_v6 = vpop.f32.mrb[62].mxu0  ;;  %v2069_v54 = vld [vmem:[%s9486_s3 + $0x260] sm:$0xff]  ;;  %v2154_v4 = vld [vmem:[%s9486_s3 + $0x508] sm:$0xff] }
 0x15c   :  { %v1256_v58 = vpack.c.bf16 %v6474_v6, %v6473_v0  ;;  %v957_v39 = vpop.f32.mrb[63].mxu0  ;;  %3610 = vmatmul.mubr.bf16.gmra.mrb[152].mxu0 %v5974_v21  ;;  %v2158_v0 = vld [vmem:[%s9486_s3 + $0x528] sm:$0xff]  ;;  %v5999_v6 = vcombine.high %v2065_v27, %v2069_v54 }
 0x15d   :  { %v1255_v49 = vpack.c.bf16 %v957_v39, %v954_v51  ;;  %3843 = vmatpush1.bf16.msra.mxu0 %v1957_v15  ;;  %6567 = vmatpush1.bf16.msra.mxu1 %v1957_v15  ;;  %v5990_v51 = vcombine.low %v2057_v60, %v2061_v34 }
 0x15e   :  { %3844 = vmatprep.subr.bf16.mxu0 %v6989_v3  ;;  %6552 = vmatprep.subr.bf16.mxu1 %v6989_v3  ;;  %v1832_v24 = vadd.bf16 %v7784_v23, %v1256_v58 }
 0x15f   :  { %v1831_v14 = vadd.bf16 %v7804_v33, %v1255_v49  ;;  %3617 = vmatprep.mubr.bf16.mxu0 %v5983_v9 }
 0x160   :  { %v1896_v23 = vmul.bf16 1045249613, %v1832_v24 }
 0x161   :  { %v1895_v57 = vmul.bf16 1045249613, %v1831_v14  ;;  %v6477_v1 = vpop.f32.mrb[64].mxu0  ;;  %3845 = vmatpush1.bf16.msra.mxu0 %v1958_v22  ;;  %6568 = vmatpush1.bf16.msra.mxu1 %v1958_v22 }
 0x162   :  { %v970_v13 = vpop.f32.mrb[65].mxu0  ;;  %3846 = vmatprep.subr.bf16.mxu0 %v6989_v3  ;;  %6553 = vmatprep.subr.bf16.mxu1 %v6989_v3  ;;  %v1960_v21 = vmax.bf16 %v1896_v23, %v1832_v24 }
 0x163   :  { %v1959_v33 = vmax.bf16 %v1895_v57, %v1831_v14  ;;  %v6478_v59 = vpop.f32.mrb[66].mxu0  ;;  %v2073_v14 = vld [vmem:[%s9486_s3 + $0x280] sm:$0xff]  ;;  %v5998_v57 = vcombine.low %v2065_v27, %v2069_v54 }
 0x164   :  { %v1258_v36 = vpack.c.bf16 %v6478_v59, %v6477_v1  ;;  %v973_v18 = vpop.f32.mrb[67].mxu0  ;;  %3618 = vmatmul.mubr.bf16.gmra.mrb[156].mxu0 %v5982_v26  ;;  %v2077_v26 = vld [vmem:[%s9486_s3 + $0x2a0] sm:$0xff]  ;;  %v6088_v1 = vcombine.low %v2154_v4, %v2158_v0 }
 0x165   :  { %v1257_v37 = vpack.c.bf16 %v973_v18, %v970_v13  ;;  %3847 = vmatpush1.bf16.msra.mxu0 %v1959_v33  ;;  %6569 = vmatpush1.bf16.msra.mxu1 %v1959_v33  ;;  %v6007_v33 = vcombine.high %v2073_v14, %v2077_v26  ;;  %v2081_v27 = vld [vmem:[%s9486_s3 + $0x2c0] sm:$0xff] }
 0x166   :  { %3848 = vmatprep.subr.bf16.mxu0 %v6989_v3  ;;  %6554 = vmatprep.subr.bf16.mxu1 %v6989_v3  ;;  %v1834_v46 = vadd.bf16 %v7820_v41, %v1258_v36  ;;  %v6089_v41 = vcombine.high %v2154_v4, %v2158_v0  ;;  %v2085_v54 = vld [vmem:[%s9486_s3 + $0x2e0] sm:$0xff]  ;;  %v2170_v0 = vld [vmem:[%s9486_s3 + $0x588] sm:$0xff] }
 0x167   :  { %v1833_v48 = vadd.bf16 %v7825_v44, %v1257_v37  ;;  %3625 = vmatprep.mubr.bf16.mxu0 %v5991_v62 }
 0x168   :  { %v1898_v44 = vmul.bf16 1045249613, %v1834_v46 }
 0x169   :  { %v1897_v12 = vmul.bf16 1045249613, %v1833_v48  ;;  %v6481_v15 = vpop.f32.mrb[68].mxu0  ;;  %3849 = vmatpush1.bf16.msra.mxu0 %v1960_v21  ;;  %6570 = vmatpush1.bf16.msra.mxu1 %v1960_v21 }
 0x16a   :  { %v986_v9 = vpop.f32.mrb[69].mxu0  ;;  %4107 = vmatprep.subr.bf16.mxu1 %v6989_v3  ;;  %v1962_v60 = vmax.bf16 %v1898_v44, %v1834_v46 }
 0x16b   :  { %v1961_v58 = vmax.bf16 %v1897_v12, %v1833_v48  ;;  %v6482_v39 = vpop.f32.mrb[70].mxu0  ;;  %v6006_v12 = vcombine.low %v2073_v14, %v2077_v26  ;;  %v2089_v14 = vld [vmem:[%s9486_s3 + $0x300] sm:$0xff] }
 0x16c   :  { %v1260_v49 = vpack.c.bf16 %v6482_v39, %v6481_v15  ;;  %v989_v22 = vpop.f32.mrb[71].mxu0  ;;  %3626 = vmatmul.mubr.bf16.gmra.mrb[160].mxu0 %v5990_v51  ;;  %4003 = vmatmul.mubr.bf16.vlgmr.msra.gmra.mrb[0].mxu1 %v6080_v52  ;;  %v2166_v52 = vld [vmem:[%s9486_s3 + $0x568] sm:$0xff]  ;;  %v2093_v26 = vld [vmem:[%s9486_s3 + $0x320] sm:$0xff] }
 0x16d   :  { %v1259_v24 = vpack.c.bf16 %v989_v22, %v986_v9  ;;  %4108 = vmatpush1.bf16.msra.mxu1 %v1961_v58  ;;  %3633 = vmatprep.mubr.bf16.mxu0 %v5999_v6  ;;  %v2174_v51 = vld [vmem:[%s9486_s3 + $0x5a8] sm:$0xff]  ;;  %v6096_v15 = vcombine.low %v2162_v42, %v2166_v52 }
 0x16e   :  { %4109 = vmatprep.subr.bf16.mxu1 %v6989_v3  ;;  %4010 = vmatprep.mubr.bf16.mxu1 %v6089_v41  ;;  %v1836_v34 = vadd.bf16 %v7845_v55, %v1260_v49  ;;  %v6097_v55 = vcombine.high %v2162_v42, %v2166_v52  ;;  %v6015_v41 = vcombine.high %v2081_v27, %v2085_v54  ;;  %v2178_v42 = vld [vmem:[%s9486_s3 + $0x5c8] sm:$0xff] }
 0x16f   :  { %v1835_v35 = vadd.bf16 %v7852_v63, %v1259_v24  ;;  %v2182_v52 = vld [vmem:[%s9486_s3 + $0x5e8] sm:$0xff] }
 0x170   :  { %v1900_v62 = vmul.bf16 1045249613, %v1836_v34 }
 0x171   :  { %v1899_v13 = vmul.bf16 1045249613, %v1835_v35  ;;  %v6485_v23 = vpop.f32.mrb[72].mxu0  ;;  %4110 = vmatpush1.bf16.msra.mxu1 %v1962_v60 }
 0x172   :  { %v1002_v59 = vpop.f32.mrb[73].mxu0  ;;  %4111 = vmatprep.subr.bf16.mxu1 %v6989_v3  ;;  %v1964_v46 = vmax.bf16 %v1900_v62, %v1836_v34 }
 0x173   :  { %v1963_v63 = vmax.bf16 %v1899_v13, %v1835_v35  ;;  %v6486_v36 = vpop.f32.mrb[74].mxu0 }
 0x174   :  { %v1262_v18 = vpack.c.bf16 %v6486_v36, %v6485_v23  ;;  %v1005_v37 = vpop.f32.mrb[75].mxu0  ;;  %3634 = vmatmul.mubr.bf16.gmra.mrb[164].mxu0 %v5998_v57  ;;  %4011 = vmatmul.mubr.bf16.gmra.mrb[4].mxu1 %v6088_v1  ;;  %v6014_v57 = vcombine.low %v2081_v27, %v2085_v54  ;;  %v6104_v1 = vcombine.low %v2170_v0, %v2174_v51 }
 0x175   :  { %v1261_v21 = vpack.c.bf16 %v1005_v37, %v1002_v59  ;;  %4112 = vmatpush1.bf16.msra.mxu1 %v1963_v63  ;;  %3641 = vmatprep.mubr.bf16.mxu0 %v6007_v33  ;;  %v6023_v33 = vcombine.high %v2089_v14, %v2093_v26  ;;  %v2097_v37 = vld [vmem:[%s9486_s3 + $0x340] sm:$0xff] }
 0x176   :  { %4113 = vmatprep.subr.bf16.mxu1 %v6989_v3  ;;  %4018 = vmatprep.mubr.bf16.mxu1 %v6097_v55  ;;  %v1838_v48 = vadd.bf16 %v7863_v8, %v1262_v18  ;;  %v6105_v8 = vcombine.high %v2170_v0, %v2174_v51  ;;  %v6022_v0 = vcombine.low %v2089_v14, %v2093_v26  ;;  %v2194_v26 = vld [vmem:[%s9486_s3 + $0x648] sm:$0xff] }
 0x177   :  { %v1837_v4 = vadd.bf16 %v7865_v10, %v1261_v21  ;;  %v2101_v21 = vld [vmem:[%s9486_s3 + $0x360] sm:$0xff]  ;;  %v6112_v51 = vcombine.low %v2178_v42, %v2182_v52 }
 0x178   :  { %v1902_v58 = vmul.bf16 1045249613, %v1838_v48 }
 0x179   :  { %v1901_v6 = vmul.bf16 1045249613, %v1837_v4  ;;  %v6489_v9 = vpop.f32.mrb[76].mxu0  ;;  %4114 = vmatpush1.bf16.msra.mxu1 %v1964_v46 }
 0x17a   :  { %v1018_v44 = vpop.f32.mrb[77].mxu0  ;;  %4115 = vmatprep.subr.bf16.mxu1 %v6989_v3  ;;  %v1966_v60 = vmax.bf16 %v1902_v58, %v1838_v48  ;;  %v2186_v48 = vld [vmem:[%s9486_s3 + $0x608] sm:$0xff] }
 0x17b   :  { %v1965_v10 = vmax.bf16 %v1901_v6, %v1837_v4  ;;  %v6490_v39 = vpop.f32.mrb[78].mxu0  ;;  %v2190_v4 = vld [vmem:[%s9486_s3 + $0x628] sm:$0xff]  ;;  %v6031_v6 = vcombine.high %v2097_v37, %v2101_v21 }
 0x17c   :  { %v1264_v49 = vpack.c.bf16 %v6490_v39, %v6489_v9  ;;  %v1021_v22 = vpop.f32.mrb[79].mxu0  ;;  %3642 = vmatmul.mubr.bf16.gmra.mrb[168].mxu0 %v6006_v12  ;;  %4019 = vmatmul.mubr.bf16.gmra.mrb[8].mxu1 %v6096_v15  ;;  %v2105_v39 = vld [vmem:[%s9486_s3 + $0x380] sm:$0xff] }
 0x17d   :  { %v1263_v24 = vpack.c.bf16 %v1021_v22, %v1018_v44  ;;  %4116 = vmatpush1.bf16.msra.mxu1 %v1965_v10  ;;  %3649 = vmatprep.mubr.bf16.mxu0 %v6015_v41 }
 0x17e   :  { %4117 = vmatprep.subr.bf16.mxu1 %v6989_v3  ;;  %4026 = vmatprep.mubr.bf16.mxu1 %v6105_v8  ;;  %v1840_v34 = vadd.bf16 %v7872_v17, %v1264_v49  ;;  %v6113_v17 = vcombine.high %v2178_v42, %v2182_v52  ;;  %v2109_v49 = vld [vmem:[%s9486_s3 + $0x3a0] sm:$0xff] }
 0x17f   :  { %v1839_v35 = vadd.bf16 %v7883_v25, %v1263_v24 }
 0x180   :  { %v1904_v55 = vmul.bf16 1045249613, %v1840_v34 }
 0x181   :  { %v1903_v13 = vmul.bf16 1045249613, %v1839_v35  ;;  %v6493_v23 = vpop.f32.mrb[80].mxu0  ;;  %4118 = vmatpush1.bf16.msra.mxu1 %v1966_v60  ;;  %v2198_v60 = vld [vmem:[%s9486_s3 + $0x668] sm:$0xff] }
 0x182   :  { %v1034_v59 = vpop.f32.mrb[81].mxu0  ;;  %4119 = vmatprep.subr.bf16.mxu1 %v6989_v3  ;;  %v1968_v27 = vmax.bf16 %v1904_v55, %v1840_v34  ;;  %v6030_v34 = vcombine.low %v2097_v37, %v2101_v21  ;;  %v2113_v55 = vld [vmem:[%s9486_s3 + $0x3c0] sm:$0xff]  ;;  %v2206_v37 = vld [vmem:[%s9486_s3 + $0x6a8] sm:$0xff]  ;;  %v6038_v21 = vcombine.low %v2105_v39, %v2109_v49 }
 0x183   :  { %v1967_v25 = vmax.bf16 %v1903_v13, %v1839_v35  ;;  %v6494_v62 = vpop.f32.mrb[82].mxu0  ;;  %v6120_v35 = vcombine.low %v2186_v48, %v2190_v4 }
 0x184   :  { %v1266_v63 = vpack.c.bf16 %v6494_v62, %v6493_v23  ;;  %v1037_v36 = vpop.f32.mrb[83].mxu0  ;;  %3650 = vmatmul.mubr.bf16.gmra.mrb[172].mxu0 %v6014_v57  ;;  %4027 = vmatmul.mubr.bf16.gmra.mrb[12].mxu1 %v6104_v1  ;;  %v6039_v57 = vcombine.high %v2105_v39, %v2109_v49 }
 0x185   :  { %v1265_v18 = vpack.c.bf16 %v1037_v36, %v1034_v59  ;;  %4120 = vmatpush1.bf16.msra.mxu1 %v1967_v25  ;;  %3657 = vmatprep.mubr.bf16.mxu0 %v6023_v33  ;;  %v2117_v25 = vld [vmem:[%s9486_s3 + $0x3e0] sm:$0xff] }
 0x186   :  { %4121 = vmatprep.subr.bf16.mxu1 %v6989_v3  ;;  %4034 = vmatprep.mubr.bf16.mxu1 %v6113_v17  ;;  %v1842_v54 = vadd.bf16 %v7890_v29, %v1266_v63  ;;  %v6121_v29 = vcombine.high %v2186_v48, %v2190_v4  ;;  %v6047_v48 = vcombine.high %v2113_v55, %v2117_v25 }
 0x187   :  { %v1841_v46 = vadd.bf16 %v7892_v32, %v1265_v18  ;;  %v2202_v18 = vld [vmem:[%s9486_s3 + $0x688] sm:$0xff] }
 0x188   :  { %v1906_v41 = vmul.bf16 1045249613, %v1842_v54  ;;  %v6136_v39 = vcombine.low %v2202_v18, %v2206_v37 }
 0x189   :  { %v1905_v12 = vmul.bf16 1045249613, %v1841_v46  ;;  %v6497_v15 = vpop.f32.mrb[84].mxu0  ;;  %4122 = vmatpush1.bf16.msra.mxu1 %v1968_v27  ;;  %v6128_v27 = vcombine.low %v2194_v26, %v2198_v60 }
 0x18a   :  { %v1050_v9 = vpop.f32.mrb[85].mxu0  ;;  %4123 = vmatprep.subr.bf16.mxu1 %v6989_v3  ;;  %v1970_v22 = vmax.bf16 %v1906_v41, %v1842_v54 }
 0x18b   :  { %v1969_v32 = vmax.bf16 %v1905_v12, %v1841_v46  ;;  %v6498_v44 = vpop.f32.mrb[86].mxu0 }
 0x18c   :  { %v1268_v8 = vpack.c.bf16 %v6498_v44, %v6497_v15  ;;  %v1053_v58 = vpop.f32.mrb[87].mxu0  ;;  %3658 = vmatmul.mubr.bf16.gmra.mrb[176].mxu0 %v6022_v0  ;;  %4035 = vmatmul.mubr.bf16.gmra.mrb[16].mxu1 %v6112_v51 }
 0x18d   :  { %v1267_v10 = vpack.c.bf16 %v1053_v58, %v1050_v9  ;;  %4124 = vmatpush1.bf16.msra.mxu1 %v1969_v32  ;;  %3665 = vmatprep.mubr.bf16.mxu0 %v6031_v6  ;;  %v2121_v9 = vld [vmem:[%s9486_s3 + $0x400] sm:$0xff]  ;;  %v2214_v58 = vld [vmem:[%s9486_s3 + $0x6e8] sm:$0xff] }
 0x18e   :  { %4125 = vmatprep.subr.bf16.mxu1 %v6989_v3  ;;  %4042 = vmatprep.mubr.bf16.mxu1 %v6121_v29  ;;  %v1844_v24 = vadd.bf16 %v7903_v40, %v1268_v8  ;;  %v6129_v40 = vcombine.high %v2194_v26, %v2198_v60  ;;  %v2125_v29 = vld [vmem:[%s9486_s3 + $0x420] sm:$0xff]  ;;  %v2210_v8 = vld [vmem:[%s9486_s3 + $0x6c8] sm:$0xff] }
 0x18f   :  { %v1843_v14 = vadd.bf16 %v7910_v45, %v1267_v10  ;;  %v6046_v10 = vcombine.low %v2113_v55, %v2117_v25 }
 0x190   :  { %v1908_v13 = vmul.bf16 1045249613, %v1844_v24 }
 0x191   :  { %v1907_v42 = vmul.bf16 1045249613, %v1843_v14  ;;  %v6501_v52 = vpop.f32.mrb[88].mxu0  ;;  %4126 = vmatpush1.bf16.msra.mxu1 %v1970_v22 }
 0x192   :  { %v1066_v1 = vpop.f32.mrb[89].mxu0  ;;  %4127 = vmatprep.subr.bf16.mxu1 %v6989_v3  ;;  %v1972_v62 = vmax.bf16 %v1908_v13, %v1844_v24  ;;  %v6055_v24 = vcombine.high %v2121_v9, %v2125_v29 }
 0x193   :  { %v1971_v45 = vmax.bf16 %v1907_v42, %v1843_v14  ;;  %v6502_v23 = vpop.f32.mrb[90].mxu0 }
 0x194   :  { %v1270_v33 = vpack.c.bf16 %v6502_v23, %v6501_v52  ;;  %v1069_v59 = vpop.f32.mrb[91].mxu0  ;;  %3666 = vmatmul.mubr.bf16.gmra.mrb[180].mxu0 %v6030_v34  ;;  %4043 = vmatmul.mubr.bf16.gmra.mrb[20].mxu1 %v6120_v35  ;;  %v2129_v52 = vld [vmem:[%s9486_s3 + $0x440] sm:$0xff]  ;;  %v6144_v23 = vcombine.low %v2210_v8, %v2214_v58 }
 0x195   :  { %v1269_v17 = vpack.c.bf16 %v1069_v59, %v1066_v1  ;;  %4128 = vmatpush1.bf16.msra.mxu1 %v1971_v45  ;;  %3673 = vmatprep.mubr.bf16.mxu0 %v6039_v57  ;;  %v2133_v57 = vld [vmem:[%s9486_s3 + $0x460] sm:$0xff]  ;;  %v2218_v1 = vld [vmem:[%s9486_s3 + $0x708] sm:$0xff]  ;;  %v6054_v45 = vcombine.low %v2121_v9, %v2125_v29 }
 0x196   :  { %4129 = vmatprep.subr.bf16.mxu1 %v6989_v3  ;;  %4050 = vmatprep.mubr.bf16.mxu1 %v6129_v40  ;;  %v1846_v63 = vadd.bf16 %v7937_v16, %v1270_v33  ;;  %v6137_v16 = vcombine.high %v2202_v18, %v2206_v37  ;;  %v2222_v40 = vld [vmem:[%s9486_s3 + $0x728] sm:$0xff]  ;;  %v6063_v59 = vcombine.high %v2129_v52, %v2133_v57  ;;  %v2137_v18 = vld [vmem:[%s9486_s3 + $0x480] sm:$0xff] }
 0x197   :  { %v1845_v36 = vadd.bf16 %v7921_v56, %v1269_v17  ;;  %v6153_v17 = vcombine.high %v2218_v1, %v2222_v40  ;;  %v2141_v37 = vld [vmem:[%s9486_s3 + $0x4a0] sm:$0xff]  ;;  %v2234_v29 = vld [vmem:[%s9486_s3 + $0x788] sm:$0xff] }
 0x198   :  { %v1910_v0 = vmul.bf16 1045249613, %v1846_v63  ;;  %v2149_v9 = vld [vmem:[%s9486_s3 + $0x4e0] sm:$0xff] }
 0x199   :  { %v1909_v54 = vmul.bf16 1045249613, %v1845_v36  ;;  %v6505_v46 = vpop.f32.mrb[92].mxu0  ;;  %4130 = vmatpush1.bf16.msra.mxu1 %v1972_v62 }
 0x19a   :  { %v1082_v4 = vpop.f32.mrb[93].mxu0  ;;  %4131 = vmatprep.subr.bf16.mxu1 %v6989_v3  ;;  %v1974_v41 = vmax.bf16 %v1910_v0, %v1846_v63 }
 0x19b   :  { %v1973_v56 = vmax.bf16 %v1909_v54, %v1845_v36  ;;  %v6506_v51 = vpop.f32.mrb[94].mxu0  ;;  %v6062_v54 = vcombine.low %v2129_v52, %v2133_v57  ;;  %v2157_v52 = vld [vmem:[%s9486_s3 + $0x520] sm:$0xff]  ;;  %v2242_v57 = vld [vmem:[%s9486_s3 + $0x7c8] sm:$0xff] }
 0x19c   :  { %v1272_v12 = vpack.c.bf16 %v6506_v51, %v6505_v46  ;;  %v1085_v15 = vpop.f32.mrb[95].mxu0  ;;  %3674 = vmatmul.mubr.bf16.gmra.mrb[184].mxu0 %v6038_v21  ;;  %4051 = vmatmul.mubr.bf16.gmra.mrb[24].mxu1 %v6128_v27  ;;  %v2226_v21 = vld [vmem:[%s9486_s3 + $0x748] sm:$0xff]  ;;  %v6152_v46 = vcombine.low %v2218_v1, %v2222_v40 }
 0x19d   :  { %v1271_v6 = vpack.c.bf16 %v1085_v15, %v1082_v4  ;;  %4132 = vmatpush1.bf16.msra.mxu1 %v1973_v56  ;;  %3681 = vmatprep.mubr.bf16.mxu0 %v6047_v48  ;;  %v2230_v27 = vld [vmem:[%s9486_s3 + $0x768] sm:$0xff]  ;;  %v6071_v48 = vcombine.high %v2137_v18, %v2141_v37  ;;  %v2145_v15 = vld [vmem:[%s9486_s3 + $0x4c0] sm:$0xff] }
 0x19e   :  { %4133 = vmatprep.subr.bf16.mxu1 %v6989_v3  ;;  %4058 = vmatprep.mubr.bf16.mxu1 %v6137_v16  ;;  %v1848_v32 = vadd.bf16 %v7975_v20, %v1272_v12  ;;  %v6161_v4 = vcombine.high %v2226_v21, %v2230_v27  ;;  %v2246_v1 = vld [vmem:[%s9486_s3 + $0x7e8] sm:$0xff]  ;;  %v6078_v40 = vcombine.low %v2145_v15, %v2149_v9 }
 0x19f   :  { %v1847_v44 = vadd.bf16 %v7954_v43, %v1271_v6  ;;  %v6145_v43 = vcombine.high %v2210_v8, %v2214_v58  ;;  %v6079_v58 = vcombine.high %v2145_v15, %v2149_v9  ;;  %v6176_v9 = vcombine.low %v2242_v57, %v2246_v1 }
 0x1a0   :  { %v1912_v20 = vmul.bf16 1045249613, %v1848_v32 }
 0x1a1   :  { %v1911_v49 = vmul.bf16 1045249613, %v1847_v44  ;;  %v8329_v22 = vpop.f32.mrb[96].mxu0  ;;  %4134 = vmatpush1.bf16.msra.mxu1 %v1974_v41  ;;  %v2238_v41 = vld [vmem:[%s9486_s3 + $0x7a8] sm:$0xff] }
 0x1a2   :  { %v8331_v14 = vpop.f32.mrb[97].mxu0  ;;  %4135 = vmatprep.subr.bf16.mxu1 %v6989_v3  ;;  %v1976_v13 = vmax.bf16 %v1912_v20, %v1848_v32  ;;  %v6070_v32 = vcombine.low %v2137_v18, %v2141_v37 }
 0x1a3   :  { %v1975_v26 = vmax.bf16 %v1911_v49, %v1847_v44  ;;  %v8334_v60 = vpop.f32.mrb[98].mxu0  ;;  %v6160_v44 = vcombine.low %v2226_v21, %v2230_v27 }
 0x1a4   :  { %v1274_v34 = vpack.c.bf16 %v8334_v60, %v8329_v22  ;;  %v8338_v35 = vpop.f32.mrb[99].mxu0  ;;  %3682 = vmatmul.mubr.bf16.gmra.mrb[188].mxu0 %v6046_v10  ;;  %4059 = vmatmul.mubr.bf16.gmra.mrb[28].mxu1 %v6136_v39  ;;  %v6169_v10 = vcombine.high %v2234_v29, %v2238_v41 }
 0x1a5   :  { %v1273_v42 = vpack.c.bf16 %v8338_v35, %v8331_v14  ;;  %4136 = vmatpush1.bf16.msra.mxu1 %v1975_v26  ;;  %3689 = vmatprep.mubr.bf16.mxu0 %v6055_v24  ;;  %v2153_v26 = vld [vmem:[%s9486_s3 + $0x500] sm:$0xff] }
 0x1a6   :  { %4137 = vmatprep.subr.bf16.mxu1 %v6989_v3  ;;  %4066 = vmatprep.mubr.bf16.mxu1 %v6145_v43  ;;  %v6086_v15 = vcombine.low %v2153_v26, %v2157_v52  ;;  %v2169_v14 = vld [vmem:[%s9486_s3 + $0x580] sm:$0xff]  ;;  %v1850_v35 = vadd.bf16 %v8059_v19, %v1274_v34 }
 0x1a8   :  { %v1914_v22 = vmul.bf16 1045249613, %v1850_v35 }
 0x1a9   :  { %v8355_v33 = vpop.f32.mrb[100].mxu0  ;;  %4138 = vmatpush1.bf16.msra.mxu1 %v1976_v13  ;;  %v6168_v13 = vcombine.low %v2234_v29, %v2238_v41 }
 0x1aa   :  { %v8357_v55 = vpop.f32.mrb[101].mxu0  ;;  %4396 = vmatprep.subr.bf16.mxu1 %v6989_v3 }
 0x1ab   :  { %v8360_v25 = vpop.f32.mrb[102].mxu0 }
 0x1ac   :  { %v1276_v62 = vpack.c.bf16 %v8360_v25, %v8355_v33  ;;  %v8364_v63 = vpop.f32.mrb[103].mxu0  ;;  %3690 = vmatmul.mubr.bf16.gmra.mrb[192].mxu0 %v6054_v45  ;;  %4067 = vmatmul.mubr.bf16.gmra.mrb[32].mxu1 %v6144_v23  ;;  %v6087_v23 = vcombine.high %v2153_v26, %v2157_v52  ;;  %v2003_v52 = vld [vmem:[%s9486_s3 + $0x50] sm:$0xff] }
 0x1ad   :  { %v1275_v36 = vpack.c.bf16 %v8364_v63, %v8357_v55  ;;  %3697 = vmatprep.mubr.bf16.mxu0 %v6063_v59  ;;  %4074 = vmatprep.mubr.bf16.mxu1 %v6153_v17  ;;  %v6177_v59 = vcombine.high %v2242_v57, %v2246_v1  ;;  %v2007_v57 = vld [vmem:[%s9486_s3 + $0x70] sm:$0xff]  ;;  %v2181_v55 = vld [vmem:[%s9486_s3 + $0x5e0] sm:$0xff]  ;;  %v1978_v63 = vmax.bf16 %v1914_v22, %v1850_v35 }
 0x1ae   :  { %v2019_v22 = vld [vmem:[%s9486_s3 + $0xd0] sm:$0xff] }
 0x1af   :  { %v1851_v19 = vadd.bf16 %v8065_v30, %v1275_v36  ;;  %v2177_v30 = vld [vmem:[%s9486_s3 + $0x5c0] sm:$0xff]  ;;  %v1852_v36 = vadd.bf16 %v8067_v50, %v1276_v62 }
 0x1b0   :  { %v6111_v35 = vcombine.high %v2177_v30, %v2181_v55 }
 0x1b1   :  { %v8380_v16 = vpop.f32.mrb[104].mxu0  ;;  %v1916_v33 = vmul.bf16 1045249613, %v1852_v36 }
 0x1b2   :  { %v8382_v0 = vpop.f32.mrb[105].mxu0 }
 0x1b3   :  { %v8384_v56 = vpop.f32.mrb[106].mxu0 }
 0x1b4   :  { %3698 = vmatmul.mubr.bf16.gmra.mrb[196].mxu0 %v6062_v54  ;;  %4075 = vmatmul.mubr.bf16.gmra.mrb[36].mxu1 %v6152_v46  ;;  %v1278_v51 = vpack.c.bf16 %v8384_v56, %v8380_v16  ;;  %v8388_v12 = vpop.f32.mrb[107].mxu0  ;;  %v2161_v54 = vld [vmem:[%s9486_s3 + $0x540] sm:$0xff] }
 0x1b5   :  { %3705 = vmatprep.mubr.bf16.mxu0 %v6071_v48  ;;  %4082 = vmatprep.mubr.bf16.mxu1 %v6161_v4  ;;  %v1277_v6 = vpack.c.bf16 %v8388_v12, %v8382_v0  ;;  %v2165_v46 = vld [vmem:[%s9486_s3 + $0x560] sm:$0xff]  ;;  %v1995_v48 = vld [vmem:[%s9486_s3 + $0x10] sm:$0xff]  ;;  %v1980_v12 = vmax.bf16 %v1916_v33, %v1852_v36 }
 0x1b6   :  { %v1999_v4 = vld [vmem:[%s9486_s3 + $0x30] sm:$0xff]  ;;  %v6095_v41 = vcombine.high %v2161_v54, %v2165_v46  ;;  %v2189_v0 = vld [vmem:[%s9486_s3 + $0x620] sm:$0xff] }
 0x1b7   :  { %v5930_v1 = vcombine.low %v1995_v48, %v1999_v4  ;;  %v1853_v62 = vadd.bf16 %v8083_v61, %v1277_v6  ;;  %v2185_v61 = vld [vmem:[%s9486_s3 + $0x600] sm:$0xff]  ;;  %v1854_v6 = vadd.bf16 %v8089_v38, %v1278_v51 }
 0x1b8   :  { %v2193_v56 = vld [vmem:[%s9486_s3 + $0x640] sm:$0xff] }
 0x1b9   :  { %v8404_v8 = vpop.f32.mrb[108].mxu0  ;;  %v2197_v51 = vld [vmem:[%s9486_s3 + $0x660] sm:$0xff] }
 0x1ba   :  { %v8406_v39 = vpop.f32.mrb[109].mxu0  ;;  %v6126_v33 = vcombine.low %v2193_v56, %v2197_v51 }
 0x1bb   :  { %v8408_v49 = vpop.f32.mrb[110].mxu0 }
 0x1bc   :  { %v1280_v24 = vpack.c.bf16 %v8408_v49, %v8404_v8  ;;  %v8412_v43 = vpop.f32.mrb[111].mxu0  ;;  %3706 = vmatmul.mubr.bf16.gmra.mrb[200].mxu0 %v6070_v32  ;;  %4083 = vmatmul.mubr.bf16.gmra.mrb[40].mxu1 %v6160_v44  ;;  %v5931_v32 = vcombine.high %v1995_v48, %v1999_v4  ;;  %v2011_v4 = vld [vmem:[%s9486_s3 + $0x90] sm:$0xff]  ;;  %v2201_v49 = vld [vmem:[%s9486_s3 + $0x680] sm:$0xff] }
 0x1bd   :  { %v1279_v20 = vpack.c.bf16 %v8412_v43, %v8406_v39  ;;  %3713 = vmatprep.mubr.bf16.mxu0 %v6079_v58  ;;  %4090 = vmatprep.mubr.bf16.mxu1 %v6169_v10  ;;  %v1849_v58 = vadd.bf16 %v8053_v53, %v1273_v42  ;;  %v2173_v53 = vld [vmem:[%s9486_s3 + $0x5a0] sm:$0xff]  ;;  %v2027_v43 = vld [vmem:[%s9486_s3 + $0x110] sm:$0xff] }
 0x1bf   :  { %v1913_v42 = vmul.bf16 1045249613, %v1849_v58  ;;  %v1855_v38 = vadd.bf16 %v8098_v5, %v1279_v20  ;;  %v1856_v5 = vadd.bf16 %v8106_v2, %v1280_v24  ;;  %v2031_v20 = vld [vmem:[%s9486_s3 + $0x130] sm:$0xff]  ;;  %v2205_v24 = vld [vmem:[%s9486_s3 + $0x6a0] sm:$0xff] }
 0x1c1   :  { %v8428_v45 = vpop.f32.mrb[112].mxu0  ;;  %v1977_v60 = vmax.bf16 %v1913_v42, %v1849_v58  ;;  %v2015_v58 = vld [vmem:[%s9486_s3 + $0xb0] sm:$0xff]  ;;  %v6102_v42 = vcombine.low %v2169_v14, %v2173_v53  ;;  %v1919_v39 = vmul.bf16 1045249613, %v1855_v38 }
 0x1c2   :  { %v8430_v17 = vpop.f32.mrb[113].mxu0  ;;  %v5947_v50 = vcombine.high %v2011_v4, %v2015_v58 }
 0x1c3   :  { %v8432_v18 = vpop.f32.mrb[114].mxu0  ;;  %v1983_v8 = vmax.bf16 %v1919_v39, %v1855_v38  ;;  %v1794_v38 = vpop.permute.xlu0 %1793 }
 0x1c4   :  { %v1282_v37 = vpack.c.bf16 %v8432_v18, %v8428_v45  ;;  %v8436_v21 = vpop.f32.mrb[115].mxu0  ;;  %3714 = vmatmul.mubr.bf16.gmra.mrb[204].mxu0 %v6078_v40  ;;  %4091 = vmatmul.mubr.bf16.gmra.mrb[44].mxu1 %v6168_v13  ;;  %v2209_v18 = vld [vmem:[%s9486_s3 + $0x6c0] sm:$0xff] }
 0x1c5   :  { %v1281_v27 = vpack.c.bf16 %v8436_v21, %v8430_v17  ;;  %3721 = vmatprep.mubr.bf16.mxu0 %v6087_v23  ;;  %4098 = vmatprep.mubr.bf16.mxu1 %v6177_v59  ;;  %v6094_v23 = vcombine.low %v2161_v54, %v2165_v46  ;;  %v1915_v46 = vmul.bf16 1045249613, %v1851_v19  ;;  %v2035_v21 = vld [vmem:[%s9486_s3 + $0x150] sm:$0xff] }
 0x1c7   :  { %v1979_v25 = vmax.bf16 %v1915_v46, %v1851_v19  ;;  %v6110_v19 = vcombine.low %v2177_v30, %v2181_v55  ;;  %v6119_v46 = vcombine.high %v2185_v61, %v2189_v0  ;;  %v6118_v55 = vcombine.low %v2185_v61, %v2189_v0 }
 0x1c8   :  { %v1857_v2 = vadd.bf16 %v8113_v28, %v1281_v27  ;;  %v1858_v28 = vadd.bf16 %v8122_v11, %v1282_v37  ;;  %v2039_v27 = vld [vmem:[%s9486_s3 + $0x170] sm:$0xff]  ;;  %v2213_v37 = vld [vmem:[%s9486_s3 + $0x6e0] sm:$0xff] }
 0x1c9   :  { %v8452_v29 = vpop.f32.mrb[116].mxu0  ;;  %v5971_v61 = vcombine.high %v2035_v21, %v2039_v27 }
 0x1ca   :  { %v8454_v44 = vpop.f32.mrb[117].mxu0  ;;  %v1921_v17 = vmul.bf16 1045249613, %v1857_v2  ;;  %v1922_v0 = vmul.bf16 1045249613, %v1858_v28 }
 0x1cb   :  { %v8460_v10 = vpop.f32.mrb[118].mxu0 }
 0x1cc   :  { %v1284_v40 = vpack.c.bf16 %v8460_v10, %v8452_v29  ;;  %v8464_v13 = vpop.f32.mrb[119].mxu0  ;;  %3722 = vmatmul.mubr.bf16.gmra.mrb[208].mxu0 %v6086_v15  ;;  %4099 = vmatmul.mubr.bf16.gmra.mrb[48].mxu1 %v6176_v9  ;;  %v6103_v15 = vcombine.high %v2169_v14, %v2173_v53  ;;  %v1985_v45 = vmax.bf16 %v1921_v17, %v1857_v2  ;;  %v1789_v10 = vpop.permute.xlu1 %1788  ;;  %v2245_v17 = vld [vmem:[%s9486_s3 + $0x7e0] sm:$0xff] }
 0x1cd   :  { %v1283_v26 = vpack.c.bf16 %v8464_v13, %v8454_v44  ;;  %3729 = vmatprep.mubr.bf16.mxu0 %v6095_v41  ;;  %4139 = vmatprep.mubr.bf16.mxu1 %v5931_v32  ;;  %v5939_v41 = vcombine.high %v2003_v52, %v2007_v57  ;;  %v2043_v13 = vld [vmem:[%s9486_s3 + $0x190] sm:$0xff] }
 0x1cf   :  { %v1859_v11 = vadd.bf16 %v8132_v7, %v1283_v26  ;;  %v1860_v7 = vadd.bf16 %v8134_v47, %v1284_v40  ;;  %v2047_v26 = vld [vmem:[%s9486_s3 + $0x1b0] sm:$0xff]  ;;  %v2217_v40 = vld [vmem:[%s9486_s3 + $0x700] sm:$0xff] }
 0x1d1   :  { %v8484_v59 = vpop.f32.mrb[120].mxu0  ;;  %v1923_v44 = vmul.bf16 1045249613, %v1859_v11 }
 0x1d2   :  { %v8486_v9 = vpop.f32.mrb[121].mxu0 }
 0x1d3   :  { %v8492_v34 = vpop.f32.mrb[122].mxu0  ;;  %v1987_v29 = vmax.bf16 %v1923_v44, %v1859_v11  ;;  %v2083_v11 = vld [vmem:[%s9486_s3 + $0x2d0] sm:$0xff] }
 0x1d4   :  { %v1286_v32 = vpack.c.bf16 %v8492_v34, %v8484_v59  ;;  %v8496_v48 = vpop.f32.mrb[123].mxu0  ;;  %3730 = vmatmul.mubr.bf16.gmra.mrb[212].mxu0 %v6094_v23  ;;  %4140 = vmatmul.mubr.bf16.vlgmr.msra.gmra.mrb[52].mxu1 %v5930_v1  ;;  %v5938_v1 = vcombine.low %v2003_v52, %v2007_v57  ;;  %v1917_v57 = vmul.bf16 1045249613, %v1853_v62 }
 0x1d5   :  { %v1285_v54 = vpack.c.bf16 %v8496_v48, %v8486_v9  ;;  %4397 = vmatpush1.bf16.msra.mxu1 %v1977_v60  ;;  %3737 = vmatprep.mubr.bf16.mxu0 %v6103_v15  ;;  %v2023_v60 = vld [vmem:[%s9486_s3 + $0xf0] sm:$0xff] }
 0x1d6   :  { %4398 = vmatprep.subr.bf16.mxu1 %v6989_v3  ;;  %4147 = vmatprep.mubr.bf16.mxu1 %v5939_v41  ;;  %v5955_v36 = vcombine.high %v2019_v22, %v2023_v60  ;;  %v1981_v16 = vmax.bf16 %v1917_v57, %v1853_v62  ;;  %v6135_v62 = vcombine.high %v2201_v49, %v2205_v24  ;;  %v2051_v48 = vld [vmem:[%s9486_s3 + $0x1d0] sm:$0xff] }
 0x1d7   :  { %v5970_v57 = vcombine.low %v2035_v21, %v2039_v27  ;;  %v1861_v47 = vadd.bf16 %v8146_v31, %v1285_v54  ;;  %v1862_v31 = vadd.bf16 %v1789_v10, %v1286_v32  ;;  %v2055_v54 = vld [vmem:[%s9486_s3 + $0x1f0] sm:$0xff]  ;;  %v1799_v32 = vpop.permute.xlu1 %1798  ;;  %v2014_v10 = vld [vmem:[%s9486_s3 + $0xa8] sm:$0xff] }
 0x1d8   :  { %v2075_v21 = vld [vmem:[%s9486_s3 + $0x290] sm:$0xff] }
 0x1d9   :  { %4399 = vmatpush1.bf16.msra.mxu1 %v1978_v63  ;;  %v8517_v23 = vpop.f32.mrb[124].mxu0  ;;  %v5946_v63 = vcombine.low %v2011_v4, %v2015_v58  ;;  %v5954_v4 = vcombine.low %v2019_v22, %v2023_v60  ;;  %v6127_v58 = vcombine.high %v2193_v56, %v2197_v51  ;;  %v6143_v22 = vcombine.high %v2209_v18, %v2213_v37  ;;  %v2079_v27 = vld [vmem:[%s9486_s3 + $0x2b0] sm:$0xff] }
 0x1da   :  { %v8519_v15 = vpop.f32.mrb[125].mxu0  ;;  %4400 = vmatprep.subr.bf16.mxu1 %v6989_v3  ;;  %v5979_v60 = vcombine.high %v2043_v13, %v2047_v26  ;;  %v1925_v9 = vmul.bf16 1045249613, %v1861_v47  ;;  %v5987_v56 = vcombine.high %v2051_v48, %v2055_v54  ;;  %v1926_v51 = vmul.bf16 1045249613, %v1862_v31 }
 0x1db   :  { %v8526_v41 = vpop.f32.mrb[126].mxu0 }
 0x1dc   :  { %v1288_v14 = vpack.c.bf16 %v8526_v41, %v8517_v23  ;;  %v8530_v53 = vpop.f32.mrb[127].mxu0  ;;  %3738 = vmatmul.mubr.bf16.gmra.mrb[216].mxu0 %v6102_v42  ;;  %4148 = vmatmul.mubr.bf16.gmra.mrb[56].mxu1 %v5938_v1  ;;  %v1918_v42 = vmul.bf16 1045249613, %v1854_v6  ;;  %v5963_v1 = vcombine.high %v2027_v43, %v2031_v20  ;;  %v1989_v59 = vmax.bf16 %v1925_v9, %v1861_v47  ;;  %v2233_v23 = vld [vmem:[%s9486_s3 + $0x780] sm:$0xff]  ;;  %v2010_v47 = vld [vmem:[%s9486_s3 + $0x88] sm:$0xff] }
 0x1dd   :  { %v1287_v52 = vpack.c.bf16 %v8530_v53, %v8519_v15  ;;  %4401 = vmatpush1.bf16.msra.mxu1 %v1979_v25  ;;  %3745 = vmatprep.mubr.bf16.mxu0 %v6111_v35  ;;  %v1920_v35 = vmul.bf16 1045249613, %v1856_v5  ;;  %v5962_v25 = vcombine.low %v2027_v43, %v2031_v20  ;;  %v1990_v39 = vmax.bf16 %v1926_v51, %v1862_v31  ;;  %v2063_v43 = vld [vmem:[%s9486_s3 + $0x230] sm:$0xff]  ;;  %v2237_v41 = vld [vmem:[%s9486_s3 + $0x7a0] sm:$0xff] }
 0x1de   :  { %4402 = vmatprep.subr.bf16.mxu1 %v6989_v3  ;;  %4155 = vmatprep.mubr.bf16.mxu1 %v5947_v50  ;;  %v1982_v30 = vmax.bf16 %v1918_v42, %v1854_v6  ;;  %v6134_v6 = vcombine.low %v2201_v49, %v2205_v24  ;;  %v5978_v42 = vcombine.low %v2043_v13, %v2047_v26  ;;  %v2002_v13 = vld [vmem:[%s9486_s3 + $0x48] sm:$0xff] }
 0x1df   :  { %v1984_v50 = vmax.bf16 %v1920_v35, %v1856_v5  ;;  %v1863_v34 = vadd.bf16 %v1794_v38, %v1287_v52  ;;  %v2229_v5 = vld [vmem:[%s9486_s3 + $0x760] sm:$0xff]  ;;  %v1864_v15 = vadd.bf16 %v1799_v32, %v1288_v14  ;;  %v2059_v52 = vld [vmem:[%s9486_s3 + $0x210] sm:$0xff]  ;;  %v2006_v26 = vld [vmem:[%s9486_s3 + $0x68] sm:$0xff]  ;;  %v5945_v9 = vcombine.high %v2010_v47, %v2014_v10 }
 0x1e0   :  { %v2067_v14 = vld [vmem:[%s9486_s3 + $0x250] sm:$0xff]  ;;  %v5994_v24 = vcombine.low %v2059_v52, %v2063_v43  ;;  %v5944_v38 = vcombine.low %v2010_v47, %v2014_v10  ;;  %v2030_v32 = vld [vmem:[%s9486_s3 + $0x128] sm:$0xff] }
 0x1e1   :  { %4403 = vmatpush1.bf16.msra.mxu1 %v1980_v12  ;;  %v1986_v12 = vmax.bf16 %v1922_v0, %v1858_v28  ;;  %v1927_v53 = vmul.bf16 1045249613, %v1863_v34  ;;  %v1994_v0 = vld [vmem:[%s9486_s3 + $0x8] sm:$0xff] }
 0x1e2   :  { %4404 = vmatprep.subr.bf16.mxu1 %v6989_v3  ;;  %v2074_v47 = vld [vmem:[%s9486_s3 + $0x288] sm:$0xff] }
 0x1e3   :  { %v1991_v35 = vmax.bf16 %v1927_v53, %v1863_v34  ;;  %v2026_v34 = vld [vmem:[%s9486_s3 + $0x108] sm:$0xff] }
 0x1e4   :  { %3746 = vmatmul.mubr.bf16.gmra.mrb[220].mxu0 %v6110_v19  ;;  %4156 = vmatmul.mubr.bf16.gmra.mrb[60].mxu1 %v5946_v63  ;;  %v1924_v19 = vmul.bf16 1045249613, %v1860_v7  ;;  %v2221_v63 = vld [vmem:[%s9486_s3 + $0x720] sm:$0xff]  ;;  %v5961_v53 = vcombine.high %v2026_v34, %v2030_v32  ;;  %v2078_v10 = vld [vmem:[%s9486_s3 + $0x2a8] sm:$0xff] }
 0x1e5   :  { %4405 = vmatpush1.bf16.msra.mxu1 %v1981_v16  ;;  %3753 = vmatprep.mubr.bf16.mxu0 %v6119_v46  ;;  %v6151_v16 = vcombine.high %v2217_v40, %v2221_v63  ;;  %v6150_v20 = vcombine.low %v2217_v40, %v2221_v63  ;;  %v2099_v40 = vld [vmem:[%s9486_s3 + $0x350] sm:$0xff] }
 0x1e6   :  { %4406 = vmatprep.subr.bf16.mxu1 %v6989_v3  ;;  %4163 = vmatprep.mubr.bf16.mxu1 %v5955_v36  ;;  %v1988_v46 = vmax.bf16 %v1924_v19, %v1860_v7  ;;  %v6142_v36 = vcombine.low %v2209_v18, %v2213_v37  ;;  %v2087_v18 = vld [vmem:[%s9486_s3 + $0x2f0] sm:$0xff]  ;;  %v5937_v19 = vcombine.high %v2002_v13, %v2006_v26 }
 0x1e7   :  { %v6019_v44 = vcombine.high %v2083_v11, %v2087_v18  ;;  %v2103_v63 = vld [vmem:[%s9486_s3 + $0x370] sm:$0xff] }
 0x1e9   :  { %4407 = vmatpush1.bf16.msra.mxu1 %v1982_v30  ;;  %v2225_v30 = vld [vmem:[%s9486_s3 + $0x740] sm:$0xff] }
 0x1ea   :  { %4408 = vmatprep.subr.bf16.mxu1 %v6989_v3  ;;  %v6158_v49 = vcombine.low %v2225_v30, %v2229_v5 }
 0x1ec   :  { %3754 = vmatmul.mubr.bf16.gmra.mrb[224].mxu0 %v6118_v55  ;;  %4164 = vmatmul.mubr.bf16.gmra.mrb[64].mxu1 %v5954_v4  ;;  %v5986_v55 = vcombine.low %v2051_v48, %v2055_v54  ;;  %v6159_v4 = vcombine.high %v2225_v30, %v2229_v5  ;;  %v6035_v48 = vcombine.high %v2099_v40, %v2103_v63  ;;  %v2018_v54 = vld [vmem:[%s9486_s3 + $0xc8] sm:$0xff]  ;;  %v2115_v30 = vld [vmem:[%s9486_s3 + $0x3d0] sm:$0xff] }
 0x1ed   :  { %4409 = vmatpush1.bf16.msra.mxu1 %v1983_v8  ;;  %3761 = vmatprep.mubr.bf16.mxu0 %v6127_v58  ;;  %v5995_v58 = vcombine.high %v2059_v52, %v2063_v43  ;;  %v2071_v8 = vld [vmem:[%s9486_s3 + $0x270] sm:$0xff]  ;;  %v2034_v43 = vld [vmem:[%s9486_s3 + $0x148] sm:$0xff] }
 0x1ee   :  { %4410 = vmatprep.subr.bf16.mxu1 %v6989_v3  ;;  %4171 = vmatprep.mubr.bf16.mxu1 %v5963_v1  ;;  %v1928_v1 = vmul.bf16 1045249613, %v1864_v15  ;;  %v6003_v28 = vcombine.high %v2067_v14, %v2071_v8  ;;  %v2119_v5 = vld [vmem:[%s9486_s3 + $0x3f0] sm:$0xff] }
 0x1ef   :  { %v6051_v52 = vcombine.high %v2115_v30, %v2119_v5 }
 0x1f0   :  { %v1992_v2 = vmax.bf16 %v1928_v1, %v1864_v15  ;;  %v6050_v1 = vcombine.low %v2115_v30, %v2119_v5  ;;  %v2179_v30 = vld [vmem:[%s9486_s3 + $0x5d0] sm:$0xff] }
 0x1f1   :  { %4411 = vmatpush1.bf16.msra.mxu1 %v1984_v50  ;;  %v6167_v50 = vcombine.high %v2233_v23, %v2237_v41  ;;  %v2183_v5 = vld [vmem:[%s9486_s3 + $0x5f0] sm:$0xff] }
 0x1f2   :  { %4412 = vmatprep.subr.bf16.mxu1 %v6989_v3 }
 0x1f4   :  { %3762 = vmatmul.mubr.bf16.gmra.mrb[228].mxu0 %v6126_v33  ;;  %4172 = vmatmul.mubr.bf16.gmra.mrb[68].mxu1 %v5962_v25  ;;  %v6166_v33 = vcombine.low %v2233_v23, %v2237_v41  ;;  %v6002_v25 = vcombine.low %v2067_v14, %v2071_v8  ;;  %v2042_v41 = vld [vmem:[%s9486_s3 + $0x188] sm:$0xff]  ;;  %v2131_v8 = vld [vmem:[%s9486_s3 + $0x450] sm:$0xff] }
 0x1f5   :  { %4413 = vmatpush1.bf16.msra.mxu1 %v1985_v45  ;;  %3769 = vmatprep.mubr.bf16.mxu0 %v6135_v62  ;;  %v1998_v45 = vld [vmem:[%s9486_s3 + $0x28] sm:$0xff] }
 0x1f6   :  { %4414 = vmatprep.subr.bf16.mxu1 %v6989_v3  ;;  %4179 = vmatprep.mubr.bf16.mxu1 %v5971_v61  ;;  %v6011_v61 = vcombine.high %v2075_v21, %v2079_v27  ;;  %v5929_v7 = vcombine.high %v1994_v0, %v1998_v45  ;;  %v2046_v14 = vld [vmem:[%s9486_s3 + $0x1a8] sm:$0xff] }
 0x1f9   :  { %4415 = vmatpush1.bf16.msra.mxu1 %v1986_v12  ;;  %v6010_v12 = vcombine.low %v2075_v21, %v2079_v27  ;;  %v2139_v21 = vld [vmem:[%s9486_s3 + $0x490] sm:$0xff] }
 0x1fa   :  { %4416 = vmatprep.subr.bf16.mxu1 %v6989_v3  ;;  %v2143_v27 = vld [vmem:[%s9486_s3 + $0x4b0] sm:$0xff] }
 0x1fc   :  { %3770 = vmatmul.mubr.bf16.gmra.mrb[232].mxu0 %v6134_v6  ;;  %4180 = vmatmul.mubr.bf16.gmra.mrb[72].mxu1 %v5970_v57  ;;  %v2091_v6 = vld [vmem:[%s9486_s3 + $0x310] sm:$0xff] }
 0x1fd   :  { %4417 = vmatpush1.bf16.msra.mxu1 %v1987_v29  ;;  %3777 = vmatprep.mubr.bf16.mxu0 %v6143_v22  ;;  %v2095_v57 = vld [vmem:[%s9486_s3 + $0x330] sm:$0xff]  ;;  %v5928_v22 = vcombine.low %v1994_v0, %v1998_v45  ;;  %v2058_v0 = vld [vmem:[%s9486_s3 + $0x208] sm:$0xff] }
 0x1fe   :  { %4418 = vmatprep.subr.bf16.mxu1 %v6989_v3  ;;  %4187 = vmatprep.mubr.bf16.mxu1 %v5979_v60  ;;  %v6018_v60 = vcombine.low %v2083_v11, %v2087_v18  ;;  %v6027_v29 = vcombine.high %v2091_v6, %v2095_v57  ;;  %v6026_v31 = vcombine.low %v2091_v6, %v2095_v57  ;;  %v2062_v45 = vld [vmem:[%s9486_s3 + $0x228] sm:$0xff]  ;;  %v2147_v11 = vld [vmem:[%s9486_s3 + $0x4d0] sm:$0xff] }
 0x1ff   :  { %v2151_v18 = vld [vmem:[%s9486_s3 + $0x4f0] sm:$0xff] }
 0x200   :  { %v2155_v6 = vld [vmem:[%s9486_s3 + $0x510] sm:$0xff] }
 0x201   :  { %4419 = vmatpush1.bf16.msra.mxu1 %v1988_v46  ;;  %v5936_v46 = vcombine.low %v2002_v13, %v2006_v26  ;;  %v2066_v13 = vld [vmem:[%s9486_s3 + $0x248] sm:$0xff]  ;;  %v2159_v57 = vld [vmem:[%s9486_s3 + $0x530] sm:$0xff] }
 0x202   :  { %4420 = vmatprep.subr.bf16.mxu1 %v6989_v3  ;;  %v2070_v26 = vld [vmem:[%s9486_s3 + $0x268] sm:$0xff] }
 0x204   :  { %3778 = vmatmul.mubr.bf16.gmra.mrb[236].mxu0 %v6142_v36  ;;  %4188 = vmatmul.mubr.bf16.gmra.mrb[76].mxu1 %v5978_v42  ;;  %v2022_v36 = vld [vmem:[%s9486_s3 + $0xe8] sm:$0xff]  ;;  %v2107_v42 = vld [vmem:[%s9486_s3 + $0x390] sm:$0xff] }
 0x205   :  { %4421 = vmatpush1.bf16.msra.mxu1 %v1989_v59  ;;  %3785 = vmatprep.mubr.bf16.mxu0 %v6151_v16  ;;  %v2111_v16 = vld [vmem:[%s9486_s3 + $0x3b0] sm:$0xff]  ;;  %v5953_v51 = vcombine.high %v2018_v54, %v2022_v36 }
 0x206   :  { %4422 = vmatprep.subr.bf16.mxu1 %v6989_v3  ;;  %4195 = vmatprep.mubr.bf16.mxu1 %v5987_v56  ;;  %v6034_v56 = vcombine.low %v2099_v40, %v2103_v63  ;;  %v6043_v59 = vcombine.high %v2107_v42, %v2111_v16  ;;  %v6042_v15 = vcombine.low %v2107_v42, %v2111_v16  ;;  %v2163_v40 = vld [vmem:[%s9486_s3 + $0x550] sm:$0xff] }
 0x207   :  { %v2167_v63 = vld [vmem:[%s9486_s3 + $0x570] sm:$0xff] }
 0x208   :  { %v2171_v42 = vld [vmem:[%s9486_s3 + $0x590] sm:$0xff] }
 0x209   :  { %4423 = vmatpush1.bf16.msra.mxu1 %v1990_v39  ;;  %v5952_v39 = vcombine.low %v2018_v54, %v2022_v36  ;;  %v2082_v54 = vld [vmem:[%s9486_s3 + $0x2c8] sm:$0xff]  ;;  %v2175_v16 = vld [vmem:[%s9486_s3 + $0x5b0] sm:$0xff] }
 0x20a   :  { %4424 = vmatprep.subr.bf16.mxu1 %v6989_v3  ;;  %v2086_v36 = vld [vmem:[%s9486_s3 + $0x2e8] sm:$0xff] }
 0x20c   :  { %3786 = vmatmul.mubr.bf16.gmra.mrb[240].mxu0 %v6150_v20  ;;  %4196 = vmatmul.mubr.bf16.gmra.mrb[80].mxu1 %v5986_v55  ;;  %v2038_v20 = vld [vmem:[%s9486_s3 + $0x168] sm:$0xff]  ;;  %v2123_v55 = vld [vmem:[%s9486_s3 + $0x410] sm:$0xff] }
 0x20d   :  { %4425 = vmatpush1.bf16.msra.mxu1 %v1991_v35  ;;  %3793 = vmatprep.mubr.bf16.mxu0 %v6159_v4  ;;  %v2127_v4 = vld [vmem:[%s9486_s3 + $0x430] sm:$0xff]  ;;  %v5969_v35 = vcombine.high %v2034_v43, %v2038_v20 }
 0x20e   :  { %4426 = vmatprep.subr.bf16.mxu1 %v6989_v3  ;;  %4203 = vmatprep.mubr.bf16.mxu1 %v5995_v58  ;;  %v2241_v3 = vld [vmem:[%s9486_s3 + $0x7c0] sm:$0xff]  ;;  %v5960_v58 = vcombine.low %v2026_v34, %v2030_v32  ;;  %v6059_v23 = vcombine.high %v2123_v55, %v2127_v4  ;;  %v2090_v34 = vld [vmem:[%s9486_s3 + $0x308] sm:$0xff] }
 0x20f   :  { %v6175_v62 = vcombine.high %v2241_v3, %v2245_v17  ;;  %v6174_v37 = vcombine.low %v2241_v3, %v2245_v17  ;;  %v2050_v3 = vld [vmem:[%s9486_s3 + $0x1c8] sm:$0xff] }
 0x210   :  { %v2054_v17 = vld [vmem:[%s9486_s3 + $0x1e8] sm:$0xff] }
 0x211   :  { %4427 = vmatpush1.bf16.msra.mxu1 %v1992_v2  ;;  %v2135_v2 = vld [vmem:[%s9486_s3 + $0x470] sm:$0xff]  ;;  %v2094_v32 = vld [vmem:[%s9486_s3 + $0x328] sm:$0xff] }
 0x214   :  { %3794 = vmatmul.mubr.bf16.gmra.mrb[244].mxu0 %v6158_v49  ;;  %4204 = vmatmul.mubr.bf16.gmra.mrb[84].mxu1 %v5994_v24  ;;  %v5968_v49 = vcombine.low %v2034_v43, %v2038_v20  ;;  %v6058_v24 = vcombine.low %v2123_v55, %v2127_v4  ;;  %v2098_v43 = vld [vmem:[%s9486_s3 + $0x348] sm:$0xff]  ;;  %v2187_v55 = vld [vmem:[%s9486_s3 + $0x610] sm:$0xff] }
 0x215   :  { %3801 = vmatprep.mubr.bf16.mxu0 %v6167_v50  ;;  %4211 = vmatprep.mubr.bf16.mxu1 %v6003_v28  ;;  %v5977_v50 = vcombine.high %v2042_v41, %v2046_v14  ;;  %v6067_v28 = vcombine.high %v2131_v8, %v2135_v2  ;;  %v2102_v20 = vld [vmem:[%s9486_s3 + $0x368] sm:$0xff]  ;;  %v2191_v4 = vld [vmem:[%s9486_s3 + $0x630] sm:$0xff] }
 0x21c   :  { %3802 = vmatmul.mubr.bf16.gmra.mrb[248].mxu0 %v6166_v33  ;;  %4212 = vmatmul.mubr.bf16.gmra.mrb[88].mxu1 %v6002_v25  ;;  %v5976_v33 = vcombine.low %v2042_v41, %v2046_v14  ;;  %v6066_v25 = vcombine.low %v2131_v8, %v2135_v2  ;;  %v2106_v41 = vld [vmem:[%s9486_s3 + $0x388] sm:$0xff]  ;;  %v2195_v8 = vld [vmem:[%s9486_s3 + $0x650] sm:$0xff] }
 0x21d   :  { %3809 = vmatprep.mubr.bf16.mxu0 %v6175_v62  ;;  %4219 = vmatprep.mubr.bf16.mxu1 %v6011_v61  ;;  %v5985_v62 = vcombine.high %v2050_v3, %v2054_v17  ;;  %v6075_v61 = vcombine.high %v2139_v21, %v2143_v27  ;;  %v2110_v14 = vld [vmem:[%s9486_s3 + $0x3a8] sm:$0xff]  ;;  %v2199_v2 = vld [vmem:[%s9486_s3 + $0x670] sm:$0xff] }
 0x224   :  { %3810 = vmatmul.mubr.bf16.gmra.mrb[252].mxu0 %v6174_v37  ;;  %4220 = vmatmul.mubr.bf16.gmra.mrb[92].mxu1 %v6010_v12  ;;  %v5984_v37 = vcombine.low %v2050_v3, %v2054_v17  ;;  %v6074_v12 = vcombine.low %v2139_v21, %v2143_v27  ;;  %v2114_v3 = vld [vmem:[%s9486_s3 + $0x3c8] sm:$0xff]  ;;  %v2203_v21 = vld [vmem:[%s9486_s3 + $0x690] sm:$0xff] }
 0x225   :  { %3850 = vmatprep.mubr.bf16.mxu0 %v5929_v7  ;;  %4227 = vmatprep.mubr.bf16.mxu1 %v6019_v44  ;;  %v5993_v7 = vcombine.high %v2058_v0, %v2062_v45  ;;  %v6083_v44 = vcombine.high %v2147_v11, %v2151_v18  ;;  %v2118_v17 = vld [vmem:[%s9486_s3 + $0x3e8] sm:$0xff]  ;;  %v2207_v27 = vld [vmem:[%s9486_s3 + $0x6b0] sm:$0xff] }
 0x22c   :  { %3851 = vmatmul.mubr.bf16.vlgmr.msra.gmra.mrb[128].mxu0 %v5928_v22  ;;  %4228 = vmatmul.mubr.bf16.gmra.mrb[96].mxu1 %v6018_v60  ;;  %v5992_v22 = vcombine.low %v2058_v0, %v2062_v45  ;;  %v6082_v60 = vcombine.low %v2147_v11, %v2151_v18  ;;  %v6049_v0 = vcombine.high %v2114_v3, %v2118_v17 }
 0x22d   :  { %3858 = vmatprep.mubr.bf16.mxu0 %v5937_v19  ;;  %4235 = vmatprep.mubr.bf16.mxu1 %v6027_v29  ;;  %v6001_v19 = vcombine.high %v2066_v13, %v2070_v26  ;;  %v6091_v29 = vcombine.high %v2155_v6, %v2159_v57  ;;  %v6139_v45 = vcombine.high %v2203_v21, %v2207_v27 }
 0x234   :  { %3859 = vmatmul.mubr.bf16.gmra.mrb[132].mxu0 %v5936_v46  ;;  %4236 = vmatmul.mubr.bf16.gmra.mrb[100].mxu1 %v6026_v31  ;;  %v6000_v46 = vcombine.low %v2066_v13, %v2070_v26  ;;  %v6090_v31 = vcombine.low %v2155_v6, %v2159_v57  ;;  %v6048_v26 = vcombine.low %v2114_v3, %v2118_v17  ;;  %v1996_v17 = vld [vmem:[%s9486_s3 + $0x18] sm:$0xff] }
 0x235   :  { %3866 = vmatprep.mubr.bf16.mxu0 %v5945_v9  ;;  %4243 = vmatprep.mubr.bf16.mxu1 %v6035_v48  ;;  %v6009_v9 = vcombine.high %v2074_v47, %v2078_v10  ;;  %v6099_v48 = vcombine.high %v2163_v40, %v2167_v63  ;;  %v6138_v6 = vcombine.low %v2203_v21, %v2207_v27  ;;  %v2000_v21 = vld [vmem:[%s9486_s3 + $0x38] sm:$0xff] }
 0x23c   :  { %3867 = vmatmul.mubr.bf16.gmra.mrb[136].mxu0 %v5944_v38  ;;  %4244 = vmatmul.mubr.bf16.gmra.mrb[104].mxu1 %v6034_v56  ;;  %v6008_v38 = vcombine.low %v2074_v47, %v2078_v10  ;;  %v6098_v56 = vcombine.low %v2163_v40, %v2167_v63  ;;  %v2130_v47 = vld [vmem:[%s9486_s3 + $0x448] sm:$0xff]  ;;  %v2219_v40 = vld [vmem:[%s9486_s3 + $0x710] sm:$0xff] }
 0x23d   :  { %3874 = vmatprep.mubr.bf16.mxu0 %v5953_v51  ;;  %4251 = vmatprep.mubr.bf16.mxu1 %v6043_v59  ;;  %v6017_v51 = vcombine.high %v2082_v54, %v2086_v36  ;;  %v6107_v59 = vcombine.high %v2171_v42, %v2175_v16  ;;  %v2134_v10 = vld [vmem:[%s9486_s3 + $0x468] sm:$0xff]  ;;  %v2223_v63 = vld [vmem:[%s9486_s3 + $0x730] sm:$0xff] }
 0x244   :  { %3875 = vmatmul.mubr.bf16.gmra.mrb[140].mxu0 %v5952_v39  ;;  %4252 = vmatmul.mubr.bf16.gmra.mrb[108].mxu1 %v6042_v15  ;;  %v6016_v39 = vcombine.low %v2082_v54, %v2086_v36  ;;  %v6106_v15 = vcombine.low %v2171_v42, %v2175_v16  ;;  %v6065_v54 = vcombine.high %v2130_v47, %v2134_v10 }
 0x245   :  { %3882 = vmatprep.mubr.bf16.mxu0 %v5961_v53  ;;  %4259 = vmatprep.mubr.bf16.mxu1 %v6051_v52  ;;  %v6025_v53 = vcombine.high %v2090_v34, %v2094_v32  ;;  %v6115_v52 = vcombine.high %v2179_v30, %v2183_v5  ;;  %v6155_v36 = vcombine.high %v2219_v40, %v2223_v63 }
 0x24c   :  { %3883 = vmatmul.mubr.bf16.gmra.mrb[144].mxu0 %v5960_v58  ;;  %4260 = vmatmul.mubr.bf16.gmra.mrb[112].mxu1 %v6050_v1  ;;  %v6024_v58 = vcombine.low %v2090_v34, %v2094_v32  ;;  %v6114_v1 = vcombine.low %v2179_v30, %v2183_v5  ;;  %v6064_v32 = vcombine.low %v2130_v47, %v2134_v10 }
 0x24d   :  { %3890 = vmatprep.mubr.bf16.mxu0 %v5969_v35  ;;  %4267 = vmatprep.mubr.bf16.mxu1 %v6059_v23  ;;  %v6033_v35 = vcombine.high %v2098_v43, %v2102_v20  ;;  %v6123_v23 = vcombine.high %v2187_v55, %v2191_v4  ;;  %v6154_v30 = vcombine.low %v2219_v40, %v2223_v63 }
 0x254   :  { %3891 = vmatmul.mubr.bf16.gmra.mrb[148].mxu0 %v5968_v49  ;;  %4268 = vmatmul.mubr.bf16.gmra.mrb[116].mxu1 %v6058_v24  ;;  %v6032_v49 = vcombine.low %v2098_v43, %v2102_v20  ;;  %v6122_v24 = vcombine.low %v2187_v55, %v2191_v4  ;;  %v2235_v43 = vld [vmem:[%s9486_s3 + $0x790] sm:$0xff] }
 0x255   :  { %3898 = vmatprep.mubr.bf16.mxu0 %v5977_v50  ;;  %4275 = vmatprep.mubr.bf16.mxu1 %v6067_v28  ;;  %v6041_v50 = vcombine.high %v2106_v41, %v2110_v14  ;;  %v6131_v28 = vcombine.high %v2195_v8, %v2199_v2  ;;  %v2239_v20 = vld [vmem:[%s9486_s3 + $0x7b0] sm:$0xff] }
 0x25c   :  { %3899 = vmatmul.mubr.bf16.gmra.mrb[152].mxu0 %v5976_v33  ;;  %4276 = vmatmul.mubr.bf16.gmra.mrb[120].mxu1 %v6066_v25  ;;  %v6040_v25 = vcombine.low %v2106_v41, %v2110_v14  ;;  %v2243_v14 = vld [vmem:[%s9486_s3 + $0x7d0] sm:$0xff] }
 0x25d   :  { %3906 = vmatprep.mubr.bf16.mxu0 %v5985_v62  ;;  %4283 = vmatprep.mubr.bf16.mxu1 %v6075_v61  ;;  %v6130_v62 = vcombine.low %v2195_v8, %v2199_v2  ;;  %v2247_v8 = vld [vmem:[%s9486_s3 + $0x7f0] sm:$0xff] }
 0x264   :  { %3907 = vmatmul.mubr.bf16.gmra.mrb[156].mxu0 %v5984_v37  ;;  %4284 = vmatmul.mubr.bf16.gmra.mrb[124].mxu1 %v6074_v12  ;;  %v2122_v37 = vld [vmem:[%s9486_s3 + $0x408] sm:$0xff] }
 0x265   :  { %3914 = vmatprep.mubr.bf16.mxu0 %v5993_v7  ;;  %4291 = vmatprep.mubr.bf16.mxu1 %v6083_v44  ;;  %v2126_v12 = vld [vmem:[%s9486_s3 + $0x428] sm:$0xff]  ;;  %v2211_v7 = vld [vmem:[%s9486_s3 + $0x6d0] sm:$0xff] }
 0x266   :  { %v2215_v44 = vld [vmem:[%s9486_s3 + $0x6f0] sm:$0xff] }
 0x26c   :  { %3915 = vmatmul.mubr.bf16.gmra.mrb[160].mxu0 %v5992_v22  ;;  %4292 = vmatmul.mubr.bf16.gmra.mrb[0].mxu1 %v6082_v60  ;;  %v6057_v22 = vcombine.high %v2122_v37, %v2126_v12  ;;  %v6147_v60 = vcombine.high %v2211_v7, %v2215_v44 }
 0x26d   :  { %3922 = vmatprep.mubr.bf16.mxu0 %v6001_v19  ;;  %4299 = vmatprep.mubr.bf16.mxu1 %v6091_v29 }
 0x274   :  { %3923 = vmatmul.mubr.bf16.gmra.mrb[164].mxu0 %v6000_v46  ;;  %4300 = vmatmul.mubr.bf16.gmra.mrb[4].mxu1 %v6090_v31  ;;  %v6056_v31 = vcombine.low %v2122_v37, %v2126_v12  ;;  %v2008_v37 = vld [vmem:[%s9486_s3 + $0x78] sm:$0xff] }
 0x275   :  { %3930 = vmatprep.mubr.bf16.mxu0 %v6009_v9  ;;  %4307 = vmatprep.mubr.bf16.mxu1 %v6099_v48  ;;  %v6146_v9 = vcombine.low %v2211_v7, %v2215_v44  ;;  %v5932_v7 = vcombine.low %v1996_v17, %v2000_v21 }
 0x27c   :  { %3931 = vmatmul.mubr.bf16.gmra.mrb[168].mxu0 %v6008_v38  ;;  %4308 = vmatmul.mubr.bf16.gmra.mrb[8].mxu1 %v6098_v56  ;;  %v2138_v38 = vld [vmem:[%s9486_s3 + $0x488] sm:$0xff] }
 0x27d   :  { %3938 = vmatprep.mubr.bf16.mxu0 %v6017_v51  ;;  %4315 = vmatprep.mubr.bf16.mxu1 %v6107_v59  ;;  %v2142_v56 = vld [vmem:[%s9486_s3 + $0x4a8] sm:$0xff]  ;;  %v2227_v51 = vld [vmem:[%s9486_s3 + $0x750] sm:$0xff] }
 0x27e   :  { %v2231_v59 = vld [vmem:[%s9486_s3 + $0x770] sm:$0xff]  ;;  %v6072_v4 = vcombine.low %v2138_v38, %v2142_v56 }
 0x284   :  { %3939 = vmatmul.mubr.bf16.gmra.mrb[172].mxu0 %v6016_v39  ;;  %4316 = vmatmul.mubr.bf16.gmra.mrb[12].mxu1 %v6106_v15  ;;  %v6073_v39 = vcombine.high %v2138_v38, %v2142_v56  ;;  %v6163_v15 = vcombine.high %v2227_v51, %v2231_v59 }
 0x285   :  { %3946 = vmatprep.mubr.bf16.mxu0 %v6025_v53  ;;  %4323 = vmatprep.mubr.bf16.mxu1 %v6115_v52 }
 0x28c   :  { %3947 = vmatmul.mubr.bf16.gmra.mrb[176].mxu0 %v6024_v58  ;;  %4324 = vmatmul.mubr.bf16.gmra.mrb[16].mxu1 %v6114_v1  ;;  %v6162_v58 = vcombine.low %v2227_v51, %v2231_v59  ;;  %v2028_v59 = vld [vmem:[%s9486_s3 + $0x118] sm:$0xff] }
 0x28d   :  { %3954 = vmatprep.mubr.bf16.mxu0 %v6033_v35  ;;  %4331 = vmatprep.mubr.bf16.mxu1 %v6123_v23  ;;  %v6171_v35 = vcombine.high %v2235_v43, %v2239_v20 }
 0x294   :  { %3955 = vmatmul.mubr.bf16.gmra.mrb[180].mxu0 %v6032_v49  ;;  %4332 = vmatmul.mubr.bf16.gmra.mrb[20].mxu1 %v6122_v24  ;;  %v6170_v49 = vcombine.low %v2235_v43, %v2239_v20  ;;  %v2036_v20 = vld [vmem:[%s9486_s3 + $0x158] sm:$0xff] }
 0x295   :  { %3962 = vmatprep.mubr.bf16.mxu0 %v6041_v50  ;;  %4339 = vmatprep.mubr.bf16.mxu1 %v6131_v28  ;;  %v6179_v50 = vcombine.high %v2243_v14, %v2247_v8 }
 0x297   :  { %v8876_v33 = vpop.f32.mrb[204].mxu0 }
 0x298   :  { %9491 = vst [vmem:[#allocation6_spill] sm:$0xff] %v8876_v33  ;;  %v3717_v61 = vpop.f32.mrb[205].mxu0 }
 0x299   :  { %v8878_v11 = vpop.f32.mrb[206].mxu0  ;;  %v5933_v61 = vcombine.high %v1996_v17, %v2000_v21 }
 0x29a   :  { %9492 = vst [vmem:[#allocation7_spill] sm:$0xff] %v8878_v11  ;;  %v3720_v18 = vpop.f32.mrb[207].mxu0 }
 0x29b   :  { %v2004_v18 = vld [vmem:[%s9486_s3 + $0x58] sm:$0xff] }
 0x29c   :  { %3963 = vmatmul.mubr.bf16.gmra.mrb[184].mxu0 %v6040_v25  ;;  %4340 = vmatmul.mubr.bf16.gmra.mrb[24].mxu1 %v6130_v62  ;;  %v6178_v25 = vcombine.low %v2243_v14, %v2247_v8  ;;  %v5940_v47 = vcombine.low %v2004_v18, %v2008_v37 }
 0x29d   :  { %3970 = vmatprep.mubr.bf16.mxu0 %v6049_v0  ;;  %4347 = vmatprep.mubr.bf16.mxu1 %v6139_v45 }
 0x29f   :  { %v8892_v13 = vpop.f32.mrb[208].mxu0 }
 0x2a0   :  { %9493 = vst [vmem:[#allocation8_spill] sm:$0xff] %v8892_v13  ;;  %v3725_v57 = vpop.f32.mrb[209].mxu0 }
 0x2a1   :  { %v8894_v19 = vpop.f32.mrb[210].mxu0 }
 0x2a2   :  { %9494 = vst [vmem:[#allocation9_spill] sm:$0xff] %v8894_v19  ;;  %v3728_v29 = vpop.f32.mrb[211].mxu0 }
 0x2a4   :  { %3971 = vmatmul.mubr.bf16.gmra.mrb[188].mxu0 %v6048_v26  ;;  %4348 = vmatmul.mubr.bf16.gmra.mrb[28].mxu1 %v6138_v6  ;;  %v5941_v26 = vcombine.high %v2004_v18, %v2008_v37 }
 0x2a5   :  { %3978 = vmatprep.mubr.bf16.mxu0 %v6057_v22  ;;  %4355 = vmatprep.mubr.bf16.mxu1 %v6147_v60  ;;  %v2012_v22 = vld [vmem:[%s9486_s3 + $0x98] sm:$0xff] }
 0x2a6   :  { %v2016_v60 = vld [vmem:[%s9486_s3 + $0xb8] sm:$0xff] }
 0x2a7   :  { %v8908_v46 = vpop.f32.mrb[212].mxu0  ;;  %v5949_v40 = vcombine.high %v2012_v22, %v2016_v60 }
 0x2a8   :  { %9495 = vst [vmem:[#allocation10_spill] sm:$0xff] %v8908_v46  ;;  %v3733_v48 = vpop.f32.mrb[213].mxu0  ;;  %v2192_v46 = vld [vmem:[%s9486_s3 + $0x638] sm:$0xff] }
 0x2a9   :  { %v8910_v42 = vpop.f32.mrb[214].mxu0  ;;  %v2024_v48 = vld [vmem:[%s9486_s3 + $0xf8] sm:$0xff] }
 0x2aa   :  { %9496 = vst [vmem:[#allocation11_spill] sm:$0xff] %v8910_v42  ;;  %v3736_v16 = vpop.f32.mrb[215].mxu0 }
 0x2ac   :  { %3979 = vmatmul.mubr.bf16.gmra.mrb[192].mxu0 %v6056_v31  ;;  %4356 = vmatmul.mubr.bf16.gmra.mrb[32].mxu1 %v6146_v9  ;;  %v2020_v9 = vld [vmem:[%s9486_s3 + $0xd8] sm:$0xff] }
 0x2ad   :  { %3986 = vmatprep.mubr.bf16.mxu0 %v6065_v54  ;;  %4363 = vmatprep.mubr.bf16.mxu1 %v6155_v36  ;;  %v5948_v36 = vcombine.low %v2012_v22, %v2016_v60  ;;  %v5957_v38 = vcombine.high %v2020_v9, %v2024_v48  ;;  %v2060_v22 = vld [vmem:[%s9486_s3 + $0x218] sm:$0xff] }
 0x2ae   :  { %v2064_v60 = vld [vmem:[%s9486_s3 + $0x238] sm:$0xff] }
 0x2af   :  { %v8924_v34 = vpop.f32.mrb[216].mxu0 }
 0x2b0   :  { %9497 = vst [vmem:[#allocation12_spill] sm:$0xff] %v8924_v34  ;;  %v3741_v5 = vpop.f32.mrb[217].mxu0 }
 0x2b1   :  { %v8926_v53 = vpop.f32.mrb[218].mxu0  ;;  %v5956_v5 = vcombine.low %v2020_v9, %v2024_v48  ;;  %v5997_v9 = vcombine.high %v2060_v22, %v2064_v60 }
 0x2b2   :  { %9498 = vst [vmem:[#allocation13_spill] sm:$0xff] %v8926_v53  ;;  %v3744_v52 = vpop.f32.mrb[219].mxu0 }
 0x2b4   :  { %3987 = vmatmul.mubr.bf16.gmra.mrb[196].mxu0 %v6064_v32  ;;  %4364 = vmatmul.mubr.bf16.gmra.mrb[36].mxu1 %v6154_v30  ;;  %v2032_v32 = vld [vmem:[%s9486_s3 + $0x138] sm:$0xff] }
 0x2b5   :  { %3994 = vmatprep.mubr.bf16.mxu0 %v6073_v39  ;;  %4371 = vmatprep.mubr.bf16.mxu1 %v6163_v15  ;;  %v5965_v15 = vcombine.high %v2028_v59, %v2032_v32 }
 0x2b7   :  { %v8934_v55 = vpop.f32.mrb[220].mxu0 }
 0x2b8   :  { %9499 = vst [vmem:[#allocation14_spill] sm:$0xff] %v8934_v55  ;;  %v3749_v1 = vpop.f32.mrb[221].mxu0  ;;  %v2184_v55 = vld [vmem:[%s9486_s3 + $0x5f8] sm:$0xff] }
 0x2b9   :  { %v8936_v23 = vpop.f32.mrb[222].mxu0  ;;  %v5964_v1 = vcombine.low %v2028_v59, %v2032_v32  ;;  %v5996_v59 = vcombine.low %v2060_v22, %v2064_v60 }
 0x2ba   :  { %9500 = vst [vmem:[#allocation15_spill] sm:$0xff] %v8936_v23  ;;  %v3752_v41 = vpop.f32.mrb[223].mxu0  ;;  %v2180_v23 = vld [vmem:[%s9486_s3 + $0x5d8] sm:$0xff] }
 0x2bb   :  { %v6117_v34 = vcombine.high %v2180_v23, %v2184_v55  ;;  %v6116_v13 = vcombine.low %v2180_v23, %v2184_v55 }
 0x2bc   :  { %3995 = vmatmul.mubr.bf16.gmra.mrb[200].mxu0 %v6072_v4  ;;  %4372 = vmatmul.mubr.bf16.gmra.mrb[40].mxu1 %v6162_v58  ;;  %v2040_v4 = vld [vmem:[%s9486_s3 + $0x178] sm:$0xff] }
 0x2bd   :  { %4379 = vmatprep.mubr.bf16.mxu1 %v6171_v35  ;;  %v5973_v14 = vcombine.high %v2036_v20, %v2040_v4  ;;  %v5972_v17 = vcombine.low %v2036_v20, %v2040_v4 }
 0x2bf   :  { %v8944_v2 = vpop.f32.mrb[224].mxu0 }
 0x2c0   :  { %9501 = vst [vmem:[#allocation16_spill] sm:$0xff] %v8944_v2  ;;  %v3757_v24 = vpop.f32.mrb[225].mxu0 }
 0x2c1   :  { %v8946_v28 = vpop.f32.mrb[226].mxu0  ;;  %v2048_v24 = vld [vmem:[%s9486_s3 + $0x1b8] sm:$0xff] }
 0x2c2   :  { %9502 = vst [vmem:[#allocation17_spill] sm:$0xff] %v8946_v28  ;;  %v3760_v3 = vpop.f32.mrb[227].mxu0 }
 0x2c4   :  { %4380 = vmatmul.mubr.bf16.gmra.mrb[44].mxu1 %v6170_v49  ;;  %v2044_v49 = vld [vmem:[%s9486_s3 + $0x198] sm:$0xff] }
 0x2c5   :  { %4387 = vmatprep.mubr.bf16.mxu1 %v6179_v50 }
 0x2c7   :  { %v8954_v27 = vpop.f32.mrb[228].mxu0 }
 0x2c8   :  { %9503 = vst [vmem:[#allocation18_spill] sm:$0xff] %v8954_v27  ;;  %v3765_v62 = vpop.f32.mrb[229].mxu0  ;;  %v2176_v27 = vld [vmem:[%s9486_s3 + $0x5b8] sm:$0xff] }
 0x2c9   :  { %v8956_v0 = vpop.f32.mrb[230].mxu0 }
 0x2ca   :  { %9504 = vst [vmem:[#allocation19_spill] sm:$0xff] %v8956_v0  ;;  %v3768_v45 = vpop.f32.mrb[231].mxu0  ;;  %v2172_v0 = vld [vmem:[%s9486_s3 + $0x598] sm:$0xff] }
 0x2cb   :  { %v2056_v45 = vld [vmem:[%s9486_s3 + $0x1f8] sm:$0xff] }
 0x2cc   :  { %4388 = vmatmul.mubr.bf16.gmra.mrb[48].mxu1 %v6178_v25  ;;  %v5981_v25 = vcombine.high %v2044_v49, %v2048_v24 }
 0x2cd   :  { %4428 = vmatprep.mubr.bf16.mxu1 %v5933_v61  ;;  %v2052_v61 = vld [vmem:[%s9486_s3 + $0x1d8] sm:$0xff] }
 0x2cf   :  { %v8964_v12 = vpop.f32.mrb[232].mxu0 }
 0x2d0   :  { %9505 = vst [vmem:[#allocation20_spill] sm:$0xff] %v8964_v12  ;;  %v3773_v44 = vpop.f32.mrb[233].mxu0 }
 0x2d1   :  { %v8966_v6 = vpop.f32.mrb[234].mxu0 }
 0x2d2   :  { %9506 = vst [vmem:[#allocation21_spill] sm:$0xff] %v8966_v6  ;;  %v3776_v57 = vpop.f32.mrb[235].mxu0 }
 0x2d4   :  { %4429 = vmatmul.mubr.bf16.vlgmr.msra.gmra.mrb[52].mxu1 %v5932_v7  ;;  %v5980_v7 = vcombine.low %v2044_v49, %v2048_v24  ;;  %v2084_v49 = vld [vmem:[%s9486_s3 + $0x2d8] sm:$0xff] }
 0x2d5   :  { %4436 = vmatprep.mubr.bf16.mxu1 %v5941_v26  ;;  %v5989_v26 = vcombine.high %v2052_v61, %v2056_v45  ;;  %v2088_v24 = vld [vmem:[%s9486_s3 + $0x2f8] sm:$0xff] }
 0x2d6   :  { %v6020_v22 = vcombine.low %v2084_v49, %v2088_v24 }
 0x2d7   :  { %v8974_v29 = vpop.f32.mrb[236].mxu0 }
 0x2d8   :  { %9507 = vst [vmem:[#allocation22_spill] sm:$0xff] %v8974_v29  ;;  %v3781_v10 = vpop.f32.mrb[237].mxu0 }
 0x2d9   :  { %v8976_v63 = vpop.f32.mrb[238].mxu0 }
 0x2da   :  { %9508 = vst [vmem:[#allocation23_spill] sm:$0xff] %v8976_v63  ;;  %v3784_v31 = vpop.f32.mrb[239].mxu0 }
 0x2dc   :  { %4437 = vmatmul.mubr.bf16.gmra.mrb[56].mxu1 %v5940_v47 }
 0x2dd   :  { %4444 = vmatprep.mubr.bf16.mxu1 %v5949_v40  ;;  %v5988_v40 = vcombine.low %v2052_v61, %v2056_v45  ;;  %v6021_v61 = vcombine.high %v2084_v49, %v2088_v24 }
 0x2df   :  { %v8984_v54 = vpop.f32.mrb[240].mxu0 }
 0x2e0   :  { %9509 = vst [vmem:[#allocation24_spill] sm:$0xff] %v8984_v54  ;;  %v3789_v16 = vpop.f32.mrb[241].mxu0  ;;  %v2168_v54 = vld [vmem:[%s9486_s3 + $0x578] sm:$0xff] }
 0x2e1   :  { %v8986_v56 = vpop.f32.mrb[242].mxu0  ;;  %v2072_v16 = vld [vmem:[%s9486_s3 + $0x278] sm:$0xff] }
 0x2e2   :  { %9510 = vst [vmem:[#allocation25_spill] sm:$0xff] %v8986_v56  ;;  %v3792_v51 = vpop.f32.mrb[243].mxu0 }
 0x2e4   :  { %4445 = vmatmul.mubr.bf16.gmra.mrb[60].mxu1 %v5948_v36  ;;  %v2068_v36 = vld [vmem:[%s9486_s3 + $0x258] sm:$0xff] }
 0x2e5   :  { %4452 = vmatprep.mubr.bf16.mxu1 %v5957_v38 }
 0x2e7   :  { %v8994_v30 = vpop.f32.mrb[244].mxu0 }
 0x2e8   :  { %9511 = vst [vmem:[#allocation26_spill] sm:$0xff] %v8994_v30  ;;  %v3797_v39 = vpop.f32.mrb[245].mxu0 }
 0x2e9   :  { %v8996_v52 = vpop.f32.mrb[246].mxu0 }
 0x2ea   :  { %9512 = vst [vmem:[#allocation27_spill] sm:$0xff] %v8996_v52  ;;  %v3800_v43 = vpop.f32.mrb[247].mxu0 }
 0x2eb   :  { %v2080_v43 = vld [vmem:[%s9486_s3 + $0x2b8] sm:$0xff] }
 0x2ec   :  { %4453 = vmatmul.mubr.bf16.gmra.mrb[64].mxu1 %v5956_v5  ;;  %v6005_v5 = vcombine.high %v2068_v36, %v2072_v16 }
 0x2ed   :  { %4460 = vmatprep.mubr.bf16.mxu1 %v5965_v15  ;;  %v2076_v15 = vld [vmem:[%s9486_s3 + $0x298] sm:$0xff] }
 0x2ef   :  { %v9004_v58 = vpop.f32.mrb[248].mxu0 }
 0x2f0   :  { %9513 = vst [vmem:[#allocation28_spill] sm:$0xff] %v9004_v58  ;;  %v3805_v35 = vpop.f32.mrb[249].mxu0  ;;  %v2160_v58 = vld [vmem:[%s9486_s3 + $0x538] sm:$0xff] }
 0x2f1   :  { %v9006_v41 = vpop.f32.mrb[250].mxu0 }
 0x2f2   :  { %9514 = vst [vmem:[#allocation29_spill] sm:$0xff] %v9006_v41  ;;  %v3808_v8 = vpop.f32.mrb[251].mxu0  ;;  %v2156_v41 = vld [vmem:[%s9486_s3 + $0x518] sm:$0xff] }
 0x2f3   :  { %v6093_v30 = vcombine.high %v2156_v41, %v2160_v58  ;;  %v6092_v29 = vcombine.low %v2156_v41, %v2160_v58 }
 0x2f4   :  { %4461 = vmatmul.mubr.bf16.gmra.mrb[68].mxu1 %v5964_v1  ;;  %v6004_v1 = vcombine.low %v2068_v36, %v2072_v16 }
 0x2f5   :  { %4468 = vmatprep.mubr.bf16.mxu1 %v5973_v14  ;;  %v6013_v14 = vcombine.high %v2076_v15, %v2080_v43 }
 0x2f7   :  { %v9014_v50 = vpop.f32.mrb[252].mxu0 }
 0x2f8   :  { %9515 = vst [vmem:[#allocation30_spill] sm:$0xff] %v9014_v50  ;;  %v3813_v3 = vpop.f32.mrb[253].mxu0 }
 0x2f9   :  { %v9016_v21 = vpop.f32.mrb[254].mxu0 }
 0x2fa   :  { %9516 = vst [vmem:[#allocation31_spill] sm:$0xff] %v9016_v21  ;;  %v3816_v62 = vpop.f32.mrb[255].mxu0 }
 0x2fc   :  { %4469 = vmatmul.mubr.bf16.gmra.mrb[72].mxu1 %v5972_v17 }
 0x2fd   :  { %4476 = vmatprep.mubr.bf16.mxu1 %v5981_v25  ;;  %v6012_v25 = vcombine.low %v2076_v15, %v2080_v43  ;;  %v2108_v15 = vld [vmem:[%s9486_s3 + $0x398] sm:$0xff] }
 0x2fe   :  { %v2112_v43 = vld [vmem:[%s9486_s3 + $0x3b8] sm:$0xff] }
 0x2ff   :  { %v9024_v18 = vpop.f32.mrb[128].mxu0  ;;  %v6045_v49 = vcombine.high %v2108_v15, %v2112_v43 }
 0x300   :  { %v3854_v37 = vpop.f32.mrb[129].mxu0 }
 0x301   :  { %v9026_v44 = vpop.f32.mrb[130].mxu0  ;;  %v2092_v37 = vld [vmem:[%s9486_s3 + $0x318] sm:$0xff] }
 0x302   :  { %v3857_v57 = vpop.f32.mrb[131].mxu0 }
 0x304   :  { %4477 = vmatmul.mubr.bf16.gmra.mrb[76].mxu1 %v5980_v7  ;;  %v2096_v7 = vld [vmem:[%s9486_s3 + $0x338] sm:$0xff] }
 0x305   :  { %4484 = vmatprep.mubr.bf16.mxu1 %v5989_v26 }
 0x307   :  { %v9034_v47 = vpop.f32.mrb[132].mxu0 }
 0x308   :  { %v3862_v10 = vpop.f32.mrb[133].mxu0 }
 0x309   :  { %v9036_v31 = vpop.f32.mrb[134].mxu0  ;;  %v6029_v10 = vcombine.high %v2092_v37, %v2096_v7 }
 0x30a   :  { %v3865_v48 = vpop.f32.mrb[135].mxu0 }
 0x30b   :  { %v2104_v48 = vld [vmem:[%s9486_s3 + $0x378] sm:$0xff] }
 0x30c   :  { %4485 = vmatmul.mubr.bf16.gmra.mrb[80].mxu1 %v5988_v40 }
 0x30d   :  { %4492 = vmatprep.mubr.bf16.mxu1 %v5997_v9  ;;  %v2100_v9 = vld [vmem:[%s9486_s3 + $0x358] sm:$0xff] }
 0x30f   :  { %v9044_v38 = vpop.f32.mrb[136].mxu0 }
 0x310   :  { %v3870_v51 = vpop.f32.mrb[137].mxu0 }
 0x311   :  { %v9046_v32 = vpop.f32.mrb[138].mxu0  ;;  %v6028_v51 = vcombine.low %v2092_v37, %v2096_v7  ;;  %v6044_v37 = vcombine.low %v2108_v15, %v2112_v43  ;;  %v2132_v15 = vld [vmem:[%s9486_s3 + $0x458] sm:$0xff] }
 0x312   :  { %v3873_v39 = vpop.f32.mrb[139].mxu0  ;;  %v2136_v43 = vld [vmem:[%s9486_s3 + $0x478] sm:$0xff] }
 0x314   :  { %4493 = vmatmul.mubr.bf16.gmra.mrb[84].mxu1 %v5996_v59 }
 0x315   :  { %4500 = vmatprep.mubr.bf16.mxu1 %v6005_v5  ;;  %v6037_v5 = vcombine.high %v2100_v9, %v2104_v48 }
 0x317   :  { %v9054_v20 = vpop.f32.mrb[140].mxu0 }
 0x318   :  { %v3878_v4 = vpop.f32.mrb[141].mxu0 }
 0x319   :  { %v9056_v35 = vpop.f32.mrb[142].mxu0 }
 0x31a   :  { %v3881_v8 = vpop.f32.mrb[143].mxu0 }
 0x31c   :  { %4501 = vmatmul.mubr.bf16.gmra.mrb[88].mxu1 %v6004_v1 }
 0x31d   :  { %4508 = vmatprep.mubr.bf16.mxu1 %v6013_v14  ;;  %v6036_v14 = vcombine.low %v2100_v9, %v2104_v48 }
 0x31f   :  { %v9064_v3 = vpop.f32.mrb[144].mxu0 }
 0x320   :  { %v3886_v17 = vpop.f32.mrb[145].mxu0 }
 0x321   :  { %v9066_v62 = vpop.f32.mrb[146].mxu0  ;;  %v2116_v17 = vld [vmem:[%s9486_s3 + $0x3d8] sm:$0xff] }
 0x322   :  { %v3889_v45 = vpop.f32.mrb[147].mxu0 }
 0x324   :  { %4509 = vmatmul.mubr.bf16.gmra.mrb[92].mxu1 %v6012_v25  ;;  %v2120_v25 = vld [vmem:[%s9486_s3 + $0x3f8] sm:$0xff] }
 0x325   :  { %4516 = vmatprep.mubr.bf16.mxu1 %v6021_v61 }
 0x327   :  { %v9074_v26 = vpop.f32.mrb[148].mxu0 }
 0x328   :  { %v3894_v57 = vpop.f32.mrb[149].mxu0 }
 0x329   :  { %v9076_v60 = vpop.f32.mrb[150].mxu0  ;;  %v6053_v57 = vcombine.high %v2116_v17, %v2120_v25 }
 0x32a   :  { %v3897_v40 = vpop.f32.mrb[151].mxu0 }
 0x32b   :  { %v2128_v40 = vld [vmem:[%s9486_s3 + $0x438] sm:$0xff] }
 0x32c   :  { %4517 = vmatmul.mubr.bf16.gmra.mrb[96].mxu1 %v6020_v22 }
 0x32d   :  { %4524 = vmatprep.mubr.bf16.mxu1 %v6029_v10  ;;  %v2124_v10 = vld [vmem:[%s9486_s3 + $0x418] sm:$0xff] }
 0x32f   :  { %v9084_v36 = vpop.f32.mrb[152].mxu0 }
 0x330   :  { %v3902_v16 = vpop.f32.mrb[153].mxu0 }
 0x331   :  { %v9086_v59 = vpop.f32.mrb[154].mxu0  ;;  %v6052_v16 = vcombine.low %v2116_v17, %v2120_v25  ;;  %v6069_v17 = vcombine.high %v2132_v15, %v2136_v43  ;;  %v9128_v25 = vpop.permute.xlu0 %4815 }
 0x332   :  { %v3905_v39 = vpop.f32.mrb[155].mxu0 }
 0x334   :  { %4525 = vmatmul.mubr.bf16.gmra.mrb[100].mxu1 %v6028_v51 }
 0x335   :  { %4532 = vmatprep.mubr.bf16.mxu1 %v6037_v5  ;;  %v6061_v5 = vcombine.high %v2124_v10, %v2128_v40 }
 0x337   :  { %v9094_v4 = vpop.f32.mrb[156].mxu0 }
 0x338   :  { %v3910_v1 = vpop.f32.mrb[157].mxu0 }
 0x339   :  { %v9096_v8 = vpop.f32.mrb[158].mxu0 }
 0x33a   :  { %v3913_v24 = vpop.f32.mrb[159].mxu0 }
 0x33c   :  { %4533 = vmatmul.mubr.bf16.gmra.mrb[104].mxu1 %v6036_v14 }
 0x33d   :  { %4540 = vmatprep.mubr.bf16.mxu1 %v6045_v49  ;;  %v6060_v49 = vcombine.low %v2124_v10, %v2128_v40  ;;  %v6068_v40 = vcombine.low %v2132_v15, %v2136_v43 }
 0x33f   :  { %v9104_v61 = vpop.f32.mrb[160].mxu0 }
 0x340   :  { %v3918_v45 = vpop.f32.mrb[161].mxu0 }
 0x341   :  { %v9106_v7 = vpop.f32.mrb[162].mxu0 }
 0x342   :  { %v3921_v22 = vpop.f32.mrb[163].mxu0 }
 0x344   :  { %4541 = vmatmul.mubr.bf16.gmra.mrb[108].mxu1 %v6044_v37  ;;  %v2140_v37 = vld [vmem:[%s9486_s3 + $0x498] sm:$0xff] }
 0x345   :  { %4548 = vmatprep.mubr.bf16.mxu1 %v6053_v57  ;;  %v2144_v57 = vld [vmem:[%s9486_s3 + $0x4b8] sm:$0xff] }
 0x346   :  { %v6076_v43 = vcombine.low %v2140_v37, %v2144_v57 }
 0x347   :  { %v9114_v9 = vpop.f32.mrb[164].mxu0 }
 0x348   :  { %v3926_v48 = vpop.f32.mrb[165].mxu0 }
 0x349   :  { %v9116_v51 = vpop.f32.mrb[166].mxu0  ;;  %v9138_v48 = vpop.permute.xlu0 %4825 }
 0x34a   :  { %v3929_v39 = vpop.f32.mrb[167].mxu0 }
 0x34c   :  { %4549 = vmatmul.mubr.bf16.gmra.mrb[112].mxu1 %v6052_v16 }
 0x34d   :  { %4556 = vmatprep.mubr.bf16.mxu1 %v6061_v5  ;;  %v6077_v5 = vcombine.high %v2140_v37, %v2144_v57 }
 0x34f   :  { %v9124_v1 = vpop.f32.mrb[168].mxu0 }
 0x350   :  { %v3934_v14 = vpop.f32.mrb[169].mxu0 }
 0x351   :  { %v9126_v24 = vpop.f32.mrb[170].mxu0  ;;  %v9142_v14 = vpop.permute.xlu1 %4820 }
 0x352   :  { %v3937_v45 = vpop.f32.mrb[171].mxu0 }
 0x353   :  { %v2152_v45 = vld [vmem:[%s9486_s3 + $0x4f8] sm:$0xff] }
 0x354   :  { %4557 = vmatmul.mubr.bf16.gmra.mrb[116].mxu1 %v6060_v49  ;;  %v9144_v49 = vpop.permute.xlu0 %4835 }
 0x355   :  { %4564 = vmatprep.mubr.bf16.mxu1 %v6069_v17  ;;  %v2148_v17 = vld [vmem:[%s9486_s3 + $0x4d8] sm:$0xff]  ;;  %v9156_v50 = vpop.permute.xlu1 %4830 }
 0x356   :  { %v6084_v57 = vcombine.low %v2148_v17, %v2152_v45 }
 0x357   :  { %v9136_v22 = vpop.f32.mrb[172].mxu0 }
 0x358   :  { %v3942_v10 = vpop.f32.mrb[173].mxu0 }
 0x359   :  { %v9140_v16 = vpop.f32.mrb[174].mxu0  ;;  %v9168_v52 = vpop.permute.xlu1 %4840 }
 0x35a   :  { %v3945_v39 = vpop.f32.mrb[175].mxu0 }
 0x35c   :  { %4565 = vmatmul.mubr.bf16.gmra.mrb[120].mxu1 %v6068_v40  ;;  %v6085_v40 = vcombine.high %v2148_v17, %v2152_v45 }
 0x35d   :  { %4572 = vmatprep.mubr.bf16.mxu1 %v6077_v5  ;;  %v9158_v5 = vpop.permute.xlu0 %4845 }
 0x35f   :  { %v9152_v10 = vpop.f32.mrb[176].mxu0 }
 0x360   :  { %v3950_v15 = vpop.f32.mrb[177].mxu0 }
 0x361   :  { %v9154_v21 = vpop.f32.mrb[178].mxu0  ;;  %v9172_v56 = vpop.permute.xlu0 %4855 }
 0x362   :  { %v3953_v39 = vpop.f32.mrb[179].mxu0 }
 0x364   :  { %4573 = vmatmul.mubr.bf16.gmra.mrb[124].mxu1 %v6076_v43 }
 0x365   :  { %4580 = vmatprep.mubr.bf16.mxu1 %v6085_v40  ;;  %v2164_v40 = vld [vmem:[%s9486_s3 + $0x558] sm:$0xff]  ;;  %v9184_v45 = vpop.permute.xlu0 %4865 }
 0x366   :  { %v6100_v41 = vcombine.low %v2164_v40, %v2168_v54 }
 0x367   :  { %v9166_v15 = vpop.f32.mrb[180].mxu0 }
 0x368   :  { %v3958_v37 = vpop.f32.mrb[181].mxu0 }
 0x369   :  { %v9170_v39 = vpop.f32.mrb[182].mxu0  ;;  %v9180_v37 = vpop.permute.xlu1 %4850 }
 0x36a   :  { %v3961_v43 = vpop.f32.mrb[183].mxu0  ;;  %v9190_v12 = vpop.permute.xlu0 %4875 }
 0x36c   :  { %4581 = vmatmul.mubr.bf16.gmra.mrb[0].mxu1 %v6084_v57  ;;  %v6101_v57 = vcombine.high %v2164_v40, %v2168_v54  ;;  %v6108_v40 = vcombine.low %v2172_v0, %v2176_v27 }
 0x36d   :  { %4588 = vmatprep.mubr.bf16.mxu1 %v6093_v30  ;;  %v9188_v43 = vpop.permute.xlu1 %4860 }
 0x36f   :  { %v9182_v17 = vpop.f32.mrb[184].mxu0 }
 0x370   :  { %v3966_v63 = vpop.f32.mrb[185].mxu0 }
 0x371   :  { %v9186_v6 = vpop.f32.mrb[186].mxu0  ;;  %v9202_v2 = vpop.permute.xlu1 %4870 }
 0x372   :  { %v3969_v30 = vpop.f32.mrb[187].mxu0 }
 0x374   :  { %4589 = vmatmul.mubr.bf16.gmra.mrb[4].mxu1 %v6092_v29  ;;  %v6109_v29 = vcombine.high %v2172_v0, %v2176_v27 }
 0x375   :  { %4596 = vmatprep.mubr.bf16.mxu1 %v6101_v57  ;;  %v9204_v57 = vpop.permute.xlu0 %4885  ;;  %v9214_v53 = vpop.permute.xlu1 %4880 }
 0x377   :  { %v9198_v63 = vpop.f32.mrb[188].mxu0 }
 0x378   :  { %9517 = vst [vmem:[#allocation32_spill] sm:$0xff] %v9198_v63  ;;  %v3974_v58 = vpop.f32.mrb[189].mxu0 }
 0x379   :  { %v9200_v28 = vpop.f32.mrb[190].mxu0  ;;  %v9218_v42 = vpop.permute.xlu0 %4895 }
 0x37a   :  { %9518 = vst [vmem:[#allocation33_spill] sm:$0xff] %v9200_v28  ;;  %v3977_v30 = vpop.f32.mrb[191].mxu0  ;;  %9521 = vst [vmem:[#allocation36_spill] sm:$0xff] %v9218_v42  ;;  %v2196_v42 = vld [vmem:[%s9486_s3 + $0x658] sm:$0xff] }
 0x37c   :  { %4597 = vmatmul.mubr.bf16.gmra.mrb[8].mxu1 %v6100_v41 }
 0x37d   :  { %4604 = vmatprep.mubr.bf16.mxu1 %v6109_v29  ;;  %v2188_v29 = vld [vmem:[%s9486_s3 + $0x618] sm:$0xff]  ;;  %v9230_v0 = vpop.permute.xlu0 %4905 }
 0x37e   :  { %9524 = vst [vmem:[#allocation39_spill] sm:$0xff] %v9230_v0  ;;  %v2200_v0 = vld [vmem:[%s9486_s3 + $0x678] sm:$0xff]  ;;  %v6124_v23 = vcombine.low %v2188_v29, %v2192_v46 }
 0x37f   :  { %v9212_v58 = vpop.f32.mrb[192].mxu0 }
 0x380   :  { %9519 = vst [vmem:[#allocation34_spill] sm:$0xff] %v9212_v58  ;;  %v3982_v54 = vpop.f32.mrb[193].mxu0 }
 0x381   :  { %v9216_v30 = vpop.f32.mrb[194].mxu0  ;;  %v9226_v54 = vpop.permute.xlu1 %4890 }
 0x382   :  { %9520 = vst [vmem:[#allocation35_spill] sm:$0xff] %v9216_v30  ;;  %v3985_v41 = vpop.f32.mrb[195].mxu0  ;;  %9522 = vst [vmem:[#allocation37_spill] sm:$0xff] %v9226_v54  ;;  %v9236_v33 = vpop.permute.xlu0 %4915 }
 0x383   :  { %9527 = vst [vmem:[#allocation42_spill] sm:$0xff] %v9236_v33  ;;  %v2204_v33 = vld [vmem:[%s9486_s3 + $0x698] sm:$0xff] }
 0x384   :  { %4605 = vmatmul.mubr.bf16.gmra.mrb[12].mxu1 %v6108_v40  ;;  %v6125_v40 = vcombine.high %v2188_v29, %v2192_v46 }
 0x385   :  { %4612 = vmatprep.mubr.bf16.mxu1 %v6117_v34  ;;  %v9234_v41 = vpop.permute.xlu1 %4900 }
 0x386   :  { %9526 = vst [vmem:[#allocation41_spill] sm:$0xff] %v9234_v41 }
 0x387   :  { %v9228_v27 = vpop.f32.mrb[196].mxu0 }
 0x388   :  { %9523 = vst [vmem:[#allocation38_spill] sm:$0xff] %v9228_v27  ;;  %v3990_v19 = vpop.f32.mrb[197].mxu0 }
 0x389   :  { %v9232_v11 = vpop.f32.mrb[198].mxu0  ;;  %v9248_v41 = vpop.permute.xlu1 %4910 }
 0x38a   :  { %9525 = vst [vmem:[#allocation40_spill] sm:$0xff] %v9232_v11  ;;  %v3993_v34 = vpop.f32.mrb[199].mxu0  ;;  %9530 = vst [vmem:[#allocation45_spill] sm:$0xff] %v9248_v41 }
 0x38c   :  { %4613 = vmatmul.mubr.bf16.gmra.mrb[16].mxu1 %v6116_v13  ;;  %v6133_v13 = vcombine.high %v2196_v42, %v2200_v0 }
 0x38d   :  { %4620 = vmatprep.mubr.bf16.mxu1 %v6125_v40  ;;  %v9250_v40 = vpop.permute.xlu0 %4925  ;;  %v9258_v46 = vpop.permute.xlu1 %4920 }
 0x38e   :  { %9531 = vst [vmem:[#allocation46_spill] sm:$0xff] %v9250_v40  ;;  %9532 = vst [vmem:[#allocation47_spill] sm:$0xff] %v9258_v46 }
 0x38f   :  { %v9244_v19 = vpop.f32.mrb[200].mxu0 }
 0x390   :  { %9528 = vst [vmem:[#allocation43_spill] sm:$0xff] %v9244_v19  ;;  %v3998_v55 = vpop.f32.mrb[201].mxu0  ;;  %v2208_v19 = vld [vmem:[%s9486_s3 + $0x6b8] sm:$0xff] }
 0x391   :  { %v9246_v11 = vpop.f32.mrb[202].mxu0  ;;  %v6132_v55 = vcombine.low %v2196_v42, %v2200_v0  ;;  %v6141_v29 = vcombine.high %v2204_v33, %v2208_v19  ;;  %v6140_v42 = vcombine.low %v2204_v33, %v2208_v19 }
 0x392   :  { %9529 = vst [vmem:[#allocation44_spill] sm:$0xff] %v9246_v11  ;;  %v4001_v34 = vpop.f32.mrb[203].mxu0  ;;  %v9260_v11 = vpop.permute.xlu0 %4935 }
 0x393   :  { %9533 = vst [vmem:[#allocation48_spill] sm:$0xff] %v9260_v11  ;;  %v9268_v34 = vpop.permute.xlu1 %4930  ;;  %v2224_v11 = vld [vmem:[%s9486_s3 + $0x738] sm:$0xff] }
 0x394   :  { %4621 = vmatmul.mubr.bf16.gmra.mrb[20].mxu1 %v6124_v23  ;;  %v2212_v23 = vld [vmem:[%s9486_s3 + $0x6d8] sm:$0xff]  ;;  %9534 = vst [vmem:[#allocation49_spill] sm:$0xff] %v9268_v34 }
 0x395   :  { %4628 = vmatprep.mubr.bf16.mxu1 %v6133_v13  ;;  %v2216_v13 = vld [vmem:[%s9486_s3 + $0x6f8] sm:$0xff] }
 0x396   :  { %v9270_v40 = vpop.permute.xlu0 %4945  ;;  %v6149_v0 = vcombine.high %v2212_v23, %v2216_v13  ;;  %v6148_v33 = vcombine.low %v2212_v23, %v2216_v13 }
 0x397   :  { %9535 = vst [vmem:[#allocation50_spill] sm:$0xff] %v9270_v40  ;;  %v9272_v46 = vpop.permute.xlu1 %4940 }
 0x398   :  { %9536 = vst [vmem:[#allocation51_spill] sm:$0xff] %v9272_v46 }
 0x39b   :  { %v9284_v27 = vpop.permute.xlu1 %4950 }
 0x39c   :  { %4629 = vmatmul.mubr.bf16.gmra.mrb[24].mxu1 %v6132_v55  ;;  %v9274_v55 = vpop.permute.xlu0 %4955  ;;  %9538 = vst [vmem:[#allocation53_spill] sm:$0xff] %v9284_v27 }
 0x39d   :  { %4636 = vmatprep.mubr.bf16.mxu1 %v6141_v29  ;;  %9537 = vst [vmem:[#allocation52_spill] sm:$0xff] %v9274_v55  ;;  %v2220_v29 = vld [vmem:[%s9486_s3 + $0x718] sm:$0xff] }
 0x3a0   :  { %v9286_v55 = vpop.permute.xlu0 %4965 }
 0x3a1   :  { %9539 = vst [vmem:[#allocation54_spill] sm:$0xff] %v9286_v55 }
 0x3a4   :  { %4637 = vmatmul.mubr.bf16.gmra.mrb[28].mxu1 %v6140_v42  ;;  %v6157_v42 = vcombine.high %v2220_v29, %v2224_v11 }
 0x3a5   :  { %4644 = vmatprep.mubr.bf16.mxu1 %v6149_v0 }
 0x3a7   :  { %v4430_v41 = vpop.f32.mrb[52].mxu1 }
 0x3a8   :  { %v6571_v34 = vadd.f32 %v4430_v41, %v9024_v18  ;;  %v4432_v40 = vpop.f32.mrb[53].mxu1  ;;  %v2228_v18 = vld [vmem:[%s9486_s3 + $0x758] sm:$0xff] }
 0x3a9   :  { %v4433_v19 = vpop.f32.mrb[54].mxu1  ;;  %v2232_v41 = vld [vmem:[%s9486_s3 + $0x778] sm:$0xff] }
 0x3aa   :  { %v6572_v46 = vadd.f32 %v4433_v19, %v9026_v44  ;;  %v4435_v0 = vpop.f32.mrb[55].mxu1  ;;  %v6156_v19 = vcombine.low %v2220_v29, %v2224_v11  ;;  %v2236_v11 = vld [vmem:[%s9486_s3 + $0x798] sm:$0xff] }
 0x3ab   :  { %v9296_v0 = vpop.permute.xlu1 %4960 }
 0x3ac   :  { %v4685_v30 = vpack.c.bf16 %v6572_v46, %v6571_v34  ;;  %4645 = vmatmul.mubr.bf16.gmra.mrb[32].mxu1 %v6148_v33  ;;  %v6165_v34 = vcombine.high %v2228_v18, %v2232_v41  ;;  %v6898_v33 = vpop.permute.xlu0 %6897 }
 0x3ad   :  { %4652 = vmatprep.mubr.bf16.mxu1 %v6157_v42  ;;  %v6899_v28 = vunpack.i.l.bf16 %v6898_v33  ;;  %v6900_v63 = vunpack.i.h.bf16 %v6898_v33 }
 0x3ae   :  { %v4973_v58 = vadd.bf16 %v9128_v25, %v4685_v30 }
 0x3af   :  { %v4438_v40 = vpop.f32.mrb[56].mxu1  ;;  %v9306_v29 = vpop.permute.xlu1 %4970 }
 0x3b0   :  { %v5005_v44 = vmul.bf16 1045249613, %v4973_v58  ;;  %v6573_v23 = vadd.f32 %v4438_v40, %v9034_v47  ;;  %v4440_v13 = vpop.f32.mrb[57].mxu1  ;;  %9540 = vst [vmem:[#allocation55_spill] sm:$0xff] %v9306_v29 }
 0x3b1   :  { %v4441_v46 = vpop.f32.mrb[58].mxu1 }
 0x3b2   :  { %v5037_v25 = vmax.bf16 %v5005_v44, %v4973_v58  ;;  %v6574_v30 = vadd.f32 %v4441_v46, %v9036_v31  ;;  %v4443_v42 = vpop.f32.mrb[59].mxu1  ;;  %v2240_v58 = vld [vmem:[%s9486_s3 + $0x7b8] sm:$0xff]  ;;  %v6164_v46 = vcombine.low %v2228_v18, %v2232_v41 }
 0x3b3   :  { %v2248_v41 = vld [vmem:[%s9486_s3 + $0x7f8] sm:$0xff] }
 0x3b4   :  { %v5069_v55 = vunpack.c.l.bf16 %v5037_v25  ;;  %v5070_v27 = vunpack.c.h.bf16 %v5037_v25  ;;  %v4686_v54 = vpack.c.bf16 %v6574_v30, %v6573_v23  ;;  %4653 = vmatmul.mubr.bf16.gmra.mrb[36].mxu1 %v6156_v19 }
 0x3b5   :  { %4660 = vmatprep.mubr.bf16.mxu1 %v6165_v34 }
 0x3b6   :  { %v4974_v47 = vadd.bf16 %v9142_v14, %v4686_v54  ;;  %v5581_v31 = vmul.f32 %v6899_v28, %v5069_v55  ;;  %v5582_v44 = vmul.f32 %v6900_v63, %v5070_v27  ;;  %v6173_v54 = vcombine.high %v2236_v11, %v2240_v58  ;;  %v5274_v63 = vpop.permute.xlu1 %5273  ;;  %v5279_v27 = vpop.permute.xlu0 %5278 }
 0x3b7   :  { %v4446_v40 = vpop.f32.mrb[60].mxu1 }
 0x3b8   :  { %v5006_v23 = vmul.bf16 1045249613, %v4974_v47  ;;  %v6575_v13 = vadd.f32 %v4446_v40, %v9044_v38  ;;  %v4448_v19 = vpop.f32.mrb[61].mxu1  ;;  %v5646_v30 = vsel %vm5645_vm2, %v5581_v31, 0.0  ;;  %v5647_v42 = vsel %vm5645_vm2, %v5582_v44, 0.0 }
 0x3b9   :  { %v4449_v14 = vpop.f32.mrb[62].mxu1 }
 0x3ba   :  { %v5038_v34 = vmax.bf16 %v5006_v23, %v4974_v47  ;;  %v6576_v33 = vadd.f32 %v4449_v14, %v9046_v32  ;;  %v4451_v25 = vpop.f32.mrb[63].mxu1  ;;  %v2244_v32 = vld [vmem:[%s9486_s3 + $0x7d8] sm:$0xff]  ;;  %v5648_v47 = vadd.f32 %v5647_v42, %v5646_v30 }
 0x3bc   :  { %v5071_v29 = vunpack.c.l.bf16 %v5038_v34  ;;  %v5072_v28 = vunpack.c.h.bf16 %v5038_v34  ;;  %v4687_v55 = vpack.c.bf16 %v6576_v33, %v6575_v13  ;;  %4661 = vmatmul.mubr.bf16.gmra.mrb[40].mxu1 %v6164_v46 }
 0x3bd   :  { %4668 = vmatprep.mubr.bf16.mxu1 %v6173_v54 }
 0x3be   :  { %v5583_v38 = vmul.f32 %v5274_v63, %v5071_v29  ;;  %v5584_v40 = vmul.f32 %v5279_v27, %v5072_v28  ;;  %v4975_v18 = vadd.bf16 %v9138_v48, %v4687_v55  ;;  %v6172_v29 = vcombine.low %v2236_v11, %v2240_v58  ;;  %v5284_v63 = vpop.permute.xlu1 %5283  ;;  %v5289_v27 = vpop.permute.xlu0 %5288 }
 0x3bf   :  { %v4454_v31 = vpop.f32.mrb[64].mxu1  ;;  %v6181_v48 = vcombine.high %v2244_v32, %v2248_v41 }
 0x3c0   :  { %v5649_v44 = vsel %vm5645_vm2, %v5583_v38, 0.0  ;;  %v5007_v23 = vmul.bf16 1045249613, %v4975_v18  ;;  %v6577_v13 = vadd.f32 %v4454_v31, %v9054_v20  ;;  %v4456_v19 = vpop.f32.mrb[65].mxu1  ;;  %v5651_v54 = vsel %vm5645_vm2, %v5584_v40, 0.0 }
 0x3c1   :  { %v5650_v46 = vadd.f32 %v5649_v44, %v5648_v47  ;;  %v4457_v14 = vpop.f32.mrb[66].mxu1  ;;  %v6180_v31 = vcombine.low %v2244_v32, %v2248_v41 }
 0x3c2   :  { %v5039_v34 = vmax.bf16 %v5007_v23, %v4975_v18  ;;  %v6578_v33 = vadd.f32 %v4457_v14, %v9056_v35  ;;  %v4459_v25 = vpop.f32.mrb[67].mxu1 }
 0x3c3   :  { %v5652_v28 = vadd.f32 %v5651_v54, %v5650_v46 }
 0x3c4   :  { %v5073_v55 = vunpack.c.l.bf16 %v5039_v34  ;;  %v5074_v30 = vunpack.c.h.bf16 %v5039_v34  ;;  %v4688_v42 = vpack.c.bf16 %v6578_v33, %v6577_v13  ;;  %4669 = vmatmul.mubr.bf16.gmra.mrb[44].mxu1 %v6172_v29  ;;  %v5294_v34 = vpop.permute.xlu1 %5293  ;;  %v5299_v33 = vpop.permute.xlu0 %5298 }
 0x3c5   :  { %4676 = vmatprep.mubr.bf16.mxu1 %v6181_v48 }
 0x3c6   :  { %v5585_v20 = vmul.f32 %v5284_v63, %v5073_v55  ;;  %v5586_v38 = vmul.f32 %v5289_v27, %v5074_v30  ;;  %v4976_v11 = vadd.bf16 %v9156_v50, %v4688_v42 }
 0x3c7   :  { %v4462_v58 = vpop.f32.mrb[68].mxu1 }
 0x3c8   :  { %v5653_v47 = vsel %vm5645_vm2, %v5585_v20, 0.0  ;;  %v5008_v40 = vmul.bf16 1045249613, %v4976_v11  ;;  %v6579_v18 = vadd.f32 %v4462_v58, %v9064_v3  ;;  %v4464_v35 = vpop.f32.mrb[69].mxu1  ;;  %v5655_v13 = vsel %vm5645_vm2, %v5586_v38, 0.0 }
 0x3c9   :  { %v5654_v44 = vadd.f32 %v5653_v47, %v5652_v28  ;;  %v4465_v23 = vpop.f32.mrb[70].mxu1  ;;  %v5309_v35 = vpop.permute.xlu0 %5308 }
 0x3ca   :  { %v5040_v19 = vmax.bf16 %v5008_v40, %v4976_v11  ;;  %v6580_v29 = vadd.f32 %v4465_v23, %v9066_v62  ;;  %v4467_v46 = vpop.f32.mrb[71].mxu1 }
 0x3cb   :  { %v5656_v14 = vadd.f32 %v5655_v13, %v5654_v44 }
 0x3cc   :  { %v5075_v48 = vunpack.c.l.bf16 %v5040_v19  ;;  %v5076_v54 = vunpack.c.h.bf16 %v5040_v19  ;;  %v4689_v50 = vpack.c.bf16 %v6580_v29, %v6579_v18  ;;  %4677 = vmatmul.mubr.bf16.gmra.mrb[48].mxu1 %v6180_v31 }
 0x3ce   :  { %v5587_v25 = vmul.f32 %v5294_v34, %v5075_v48  ;;  %v5588_v55 = vmul.f32 %v5299_v33, %v5076_v54  ;;  %v4977_v3 = vadd.bf16 %v9144_v49, %v4689_v50  ;;  %v5304_v49 = vpop.permute.xlu1 %5303 }
 0x3cf   :  { %v4470_v32 = vpop.f32.mrb[72].mxu1 }
 0x3d0   :  { %v5657_v41 = vsel %vm5645_vm2, %v5587_v25, 0.0  ;;  %v5009_v28 = vmul.bf16 1045249613, %v4977_v3  ;;  %v6581_v30 = vadd.f32 %v4470_v32, %v9074_v26  ;;  %v4472_v42 = vpop.f32.mrb[73].mxu1  ;;  %v5659_v27 = vsel %vm5645_vm2, %v5588_v55, 0.0  ;;  %v5319_v32 = vpop.permute.xlu0 %5318 }
 0x3d1   :  { %v5658_v62 = vadd.f32 %v5657_v41, %v5656_v14  ;;  %v4473_v63 = vpop.f32.mrb[74].mxu1 }
 0x3d2   :  { %v5041_v20 = vmax.bf16 %v5009_v28, %v4977_v3  ;;  %v6582_v38 = vadd.f32 %v4473_v63, %v9076_v60  ;;  %v4475_v11 = vpop.f32.mrb[75].mxu1 }
 0x3d3   :  { %v5660_v58 = vadd.f32 %v5659_v27, %v5658_v62 }
 0x3d4   :  { %v5077_v47 = vunpack.c.l.bf16 %v5041_v20  ;;  %v5078_v40 = vunpack.c.h.bf16 %v5041_v20  ;;  %v4690_v18 = vpack.c.bf16 %v6582_v38, %v6581_v30 }
 0x3d6   :  { %v5589_v31 = vmul.f32 %v5304_v49, %v5077_v47  ;;  %v5590_v44 = vmul.f32 %v5309_v35, %v5078_v40  ;;  %v4978_v23 = vadd.bf16 %v9168_v52, %v4690_v18  ;;  %v5314_v52 = vpop.permute.xlu1 %5313 }
 0x3d7   :  { %v4478_v26 = vpop.f32.mrb[76].mxu1 }
 0x3d8   :  { %v5661_v13 = vsel %vm5645_vm2, %v5589_v31, 0.0  ;;  %v5010_v19 = vmul.bf16 1045249613, %v4978_v23  ;;  %v6583_v29 = vadd.f32 %v4478_v26, %v9084_v36  ;;  %v4480_v46 = vpop.f32.mrb[77].mxu1  ;;  %v5663_v48 = vsel %vm5645_vm2, %v5590_v44, 0.0  ;;  %v5329_v31 = vpop.permute.xlu0 %5328 }
 0x3d9   :  { %v5662_v14 = vadd.f32 %v5661_v13, %v5660_v58  ;;  %v4481_v60 = vpop.f32.mrb[78].mxu1 }
 0x3da   :  { %v5042_v54 = vmax.bf16 %v5010_v19, %v4978_v23  ;;  %v6584_v50 = vadd.f32 %v4481_v60, %v9086_v59  ;;  %v4483_v34 = vpop.f32.mrb[79].mxu1 }
 0x3db   :  { %v5664_v33 = vadd.f32 %v5663_v48, %v5662_v14 }
 0x3dc   :  { %v5079_v25 = vunpack.c.l.bf16 %v5042_v54  ;;  %v5080_v55 = vunpack.c.h.bf16 %v5042_v54  ;;  %v4691_v3 = vpack.c.bf16 %v6584_v50, %v6583_v29 }
 0x3de   :  { %v5591_v41 = vmul.f32 %v5314_v52, %v5079_v25  ;;  %v5592_v28 = vmul.f32 %v5319_v32, %v5080_v55  ;;  %v4979_v30 = vadd.bf16 %v9158_v5, %v4691_v3  ;;  %v5324_v5 = vpop.permute.xlu1 %5323  ;;  %v5339_v3 = vpop.permute.xlu0 %5338 }
 0x3df   :  { %v4486_v36 = vpop.f32.mrb[80].mxu1 }
 0x3e0   :  { %v5665_v42 = vsel %vm5645_vm2, %v5591_v41, 0.0  ;;  %v5011_v62 = vmul.bf16 1045249613, %v4979_v30  ;;  %v6585_v63 = vadd.f32 %v4486_v36, %v9094_v4  ;;  %v4488_v27 = vpop.f32.mrb[81].mxu1  ;;  %v5667_v38 = vsel %vm5645_vm2, %v5592_v28, 0.0 }
 0x3e1   :  { %v5666_v20 = vadd.f32 %v5665_v42, %v5664_v33  ;;  %v4489_v59 = vpop.f32.mrb[82].mxu1 }
 0x3e2   :  { %v5043_v11 = vmax.bf16 %v5011_v62, %v4979_v30  ;;  %v6586_v58 = vadd.f32 %v4489_v59, %v9096_v8  ;;  %v4491_v47 = vpop.f32.mrb[83].mxu1 }
 0x3e3   :  { %v5668_v40 = vadd.f32 %v5667_v38, %v5666_v20 }
 0x3e4   :  { %v5081_v18 = vunpack.c.l.bf16 %v5043_v11  ;;  %v5082_v49 = vunpack.c.h.bf16 %v5043_v11  ;;  %v4692_v35 = vpack.c.bf16 %v6586_v58, %v6585_v63 }
 0x3e6   :  { %v5593_v44 = vmul.f32 %v5324_v5, %v5081_v18  ;;  %v5594_v23 = vmul.f32 %v5329_v31, %v5082_v49  ;;  %v4980_v26 = vadd.bf16 %v9180_v37, %v4692_v35  ;;  %v5334_v37 = vpop.permute.xlu1 %5333 }
 0x3e7   :  { %v4494_v4 = vpop.f32.mrb[84].mxu1 }
 0x3e8   :  { %v5669_v13 = vsel %vm5645_vm2, %v5593_v44, 0.0  ;;  %v5012_v19 = vmul.bf16 1045249613, %v4980_v26  ;;  %v6587_v29 = vadd.f32 %v4494_v4, %v9104_v61  ;;  %v4496_v46 = vpop.f32.mrb[85].mxu1  ;;  %v5671_v60 = vsel %vm5645_vm2, %v5594_v23, 0.0 }
 0x3e9   :  { %v5670_v14 = vadd.f32 %v5669_v13, %v5668_v40  ;;  %v4497_v8 = vpop.f32.mrb[86].mxu1  ;;  %v5349_v40 = vpop.permute.xlu0 %5348 }
 0x3ea   :  { %v5044_v48 = vmax.bf16 %v5012_v19, %v4980_v26  ;;  %v6588_v54 = vadd.f32 %v4497_v8, %v9106_v7  ;;  %v4499_v50 = vpop.f32.mrb[87].mxu1 }
 0x3eb   :  { %v5672_v34 = vadd.f32 %v5671_v60, %v5670_v14 }
 0x3ec   :  { %v5083_v33 = vunpack.c.l.bf16 %v5044_v48  ;;  %v5084_v25 = vunpack.c.h.bf16 %v5044_v48  ;;  %v4693_v55 = vpack.c.bf16 %v6588_v54, %v6587_v29 }
 0x3ed   :  { %v5359_v48 = vpop.permute.xlu0 %5358 }
 0x3ee   :  { %v5595_v52 = vmul.f32 %v5334_v37, %v5083_v33  ;;  %v5596_v32 = vmul.f32 %v5339_v3, %v5084_v25  ;;  %v4981_v41 = vadd.bf16 %v9172_v56, %v4693_v55  ;;  %v5344_v56 = vpop.permute.xlu1 %5343 }
 0x3ef   :  { %v4502_v61 = vpop.f32.mrb[88].mxu1 }
 0x3f0   :  { %v5673_v28 = vsel %vm5645_vm2, %v5595_v52, 0.0  ;;  %v5013_v30 = vmul.bf16 1045249613, %v4981_v41  ;;  %v6589_v36 = vadd.f32 %v4502_v61, %v9114_v9  ;;  %v4504_v42 = vpop.f32.mrb[89].mxu1  ;;  %v5675_v63 = vsel %vm5645_vm2, %v5596_v32, 0.0 }
 0x3f1   :  { %v5674_v62 = vadd.f32 %v5673_v28, %v5672_v34  ;;  %v4505_v7 = vpop.f32.mrb[90].mxu1 }
 0x3f2   :  { %v5045_v27 = vmax.bf16 %v5013_v30, %v4981_v41  ;;  %v6590_v20 = vadd.f32 %v4505_v7, %v9116_v51  ;;  %v4507_v59 = vpop.f32.mrb[91].mxu1 }
 0x3f3   :  { %v5676_v38 = vadd.f32 %v5675_v63, %v5674_v62  ;;  %v5369_v62 = vpop.permute.xlu0 %5368 }
 0x3f4   :  { %v5085_v11 = vunpack.c.l.bf16 %v5045_v27  ;;  %v5086_v58 = vunpack.c.h.bf16 %v5045_v27  ;;  %v4694_v47 = vpack.c.bf16 %v6590_v20, %v6589_v36 }
 0x3f6   :  { %v5597_v18 = vmul.f32 %v5344_v56, %v5085_v11  ;;  %v5598_v49 = vmul.f32 %v5349_v40, %v5086_v58  ;;  %v4982_v35 = vadd.bf16 %v9188_v43, %v4694_v47  ;;  %v5354_v43 = vpop.permute.xlu1 %5353 }
 0x3f7   :  { %v4510_v9 = vpop.f32.mrb[92].mxu1 }
 0x3f8   :  { %v5677_v5 = vsel %vm5645_vm2, %v5597_v18, 0.0  ;;  %v5014_v31 = vmul.bf16 1045249613, %v4982_v35  ;;  %v6591_v44 = vadd.f32 %v4510_v9, %v9124_v1  ;;  %v4512_v23 = vpop.f32.mrb[93].mxu1  ;;  %v5679_v4 = vsel %vm5645_vm2, %v5598_v49, 0.0 }
 0x3f9   :  { %v5678_v26 = vadd.f32 %v5677_v5, %v5676_v38  ;;  %v4513_v51 = vpop.f32.mrb[94].mxu1 }
 0x3fa   :  { %v5046_v13 = vmax.bf16 %v5014_v31, %v4982_v35  ;;  %v6592_v19 = vadd.f32 %v4513_v51, %v9126_v24  ;;  %v4515_v29 = vpop.f32.mrb[95].mxu1  ;;  %v5379_v31 = vpop.permute.xlu0 %5378 }
 0x3fb   :  { %v5680_v46 = vadd.f32 %v5679_v4, %v5678_v26 }
 0x3fc   :  { %v5087_v14 = vunpack.c.l.bf16 %v5046_v13  ;;  %v5088_v8 = vunpack.c.h.bf16 %v5046_v13  ;;  %v4695_v60 = vpack.c.bf16 %v6592_v19, %v6591_v44 }
 0x3fe   :  { %v5599_v54 = vmul.f32 %v5354_v43, %v5087_v14  ;;  %v5600_v50 = vmul.f32 %v5359_v48, %v5088_v8  ;;  %v4983_v34 = vadd.bf16 %v9184_v45, %v4695_v60  ;;  %v5364_v45 = vpop.permute.xlu1 %5363 }
 0x3ff   :  { %v4518_v1 = vpop.f32.mrb[96].mxu1 }
 0x400   :  { %v5681_v33 = vsel %vm5645_vm2, %v5599_v54, 0.0  ;;  %v5015_v25 = vmul.bf16 1045249613, %v4983_v34  ;;  %v6593_v55 = vadd.f32 %v4518_v1, %v9136_v22  ;;  %v4520_v37 = vpop.f32.mrb[97].mxu1  ;;  %v5683_v52 = vsel %vm5645_vm2, %v5600_v50, 0.0 }
 0x401   :  { %v5682_v3 = vadd.f32 %v5681_v33, %v5680_v46  ;;  %v4521_v24 = vpop.f32.mrb[98].mxu1 }
 0x402   :  { %v5047_v32 = vmax.bf16 %v5015_v25, %v4983_v34  ;;  %v6594_v41 = vadd.f32 %v4521_v24, %v9140_v16  ;;  %v4523_v61 = vpop.f32.mrb[99].mxu1  ;;  %v5389_v34 = vpop.permute.xlu0 %5388 }
 0x403   :  { %v5684_v28 = vadd.f32 %v5683_v52, %v5682_v3 }
 0x404   :  { %v5089_v30 = vunpack.c.l.bf16 %v5047_v32  ;;  %v5090_v36 = vunpack.c.h.bf16 %v5047_v32  ;;  %v4696_v42 = vpack.c.bf16 %v6594_v41, %v6593_v55 }
 0x406   :  { %v5601_v7 = vmul.f32 %v5364_v45, %v5089_v30  ;;  %v5602_v63 = vmul.f32 %v5369_v62, %v5090_v36  ;;  %v4984_v27 = vadd.bf16 %v9202_v2, %v4696_v42  ;;  %v5374_v2 = vpop.permute.xlu1 %5373  ;;  %v5399_v62 = vpop.permute.xlu0 %5398 }
 0x407   :  { %v4526_v22 = vpop.f32.mrb[100].mxu1 }
 0x408   :  { %v5685_v20 = vsel %vm5645_vm2, %v5601_v7, 0.0  ;;  %v5016_v59 = vmul.bf16 1045249613, %v4984_v27  ;;  %v6595_v38 = vadd.f32 %v4526_v22, %v9152_v10  ;;  %v4528_v11 = vpop.f32.mrb[101].mxu1  ;;  %v5687_v47 = vsel %vm5645_vm2, %v5602_v63, 0.0 }
 0x409   :  { %v5686_v58 = vadd.f32 %v5685_v20, %v5684_v28  ;;  %v4529_v16 = vpop.f32.mrb[102].mxu1 }
 0x40a   :  { %v5048_v56 = vmax.bf16 %v5016_v59, %v4984_v27  ;;  %v6596_v40 = vadd.f32 %v4529_v16, %v9154_v21  ;;  %v4531_v18 = vpop.f32.mrb[103].mxu1  ;;  %v9541_v59 = vld [vmem:[#allocation32_spill] sm:$0xff] }
 0x40b   :  { %v5688_v49 = vadd.f32 %v5687_v47, %v5686_v58 }
 0x40c   :  { %v5091_v35 = vunpack.c.l.bf16 %v5048_v56  ;;  %v5092_v9 = vunpack.c.h.bf16 %v5048_v56  ;;  %v4697_v5 = vpack.c.bf16 %v6596_v40, %v6595_v38  ;;  %v9542_v56 = vld [vmem:[#allocation33_spill] sm:$0xff] }
 0x40e   :  { %v5603_v44 = vmul.f32 %v5374_v2, %v5091_v35  ;;  %v5604_v23 = vmul.f32 %v5379_v31, %v5092_v9  ;;  %v4985_v26 = vadd.bf16 %v9190_v12, %v4697_v5  ;;  %v5384_v12 = vpop.permute.xlu1 %5383  ;;  %v5409_v2 = vpop.permute.xlu0 %5408 }
 0x40f   :  { %v4534_v10 = vpop.f32.mrb[104].mxu1 }
 0x410   :  { %v5689_v51 = vsel %vm5645_vm2, %v5603_v44, 0.0  ;;  %v5017_v4 = vmul.bf16 1045249613, %v4985_v26  ;;  %v6597_v13 = vadd.f32 %v4534_v10, %v9166_v15  ;;  %v4536_v19 = vpop.f32.mrb[105].mxu1  ;;  %v5691_v46 = vsel %vm5645_vm2, %v5604_v23, 0.0  ;;  %v9543_v23 = vld [vmem:[#allocation37_spill] sm:$0xff] }
 0x411   :  { %v5690_v29 = vadd.f32 %v5689_v51, %v5688_v49  ;;  %v4537_v21 = vpop.f32.mrb[106].mxu1 }
 0x412   :  { %v5049_v14 = vmax.bf16 %v5017_v4, %v4985_v26  ;;  %v6598_v8 = vadd.f32 %v4537_v21, %v9170_v39  ;;  %v4539_v60 = vpop.f32.mrb[107].mxu1 }
 0x413   :  { %v5692_v43 = vadd.f32 %v5691_v46, %v5690_v29  ;;  %v9545_v60 = vld [vmem:[#allocation35_spill] sm:$0xff] }
 0x414   :  { %v5093_v48 = vunpack.c.l.bf16 %v5049_v14  ;;  %v5094_v54 = vunpack.c.h.bf16 %v5049_v14  ;;  %v4698_v50 = vpack.c.bf16 %v6598_v8, %v6597_v13  ;;  %v9544_v13 = vld [vmem:[#allocation34_spill] sm:$0xff] }
 0x416   :  { %v5605_v1 = vmul.f32 %v5384_v12, %v5093_v48  ;;  %v5606_v33 = vmul.f32 %v5389_v34, %v5094_v54  ;;  %v4986_v25 = vadd.bf16 %v9214_v53, %v4698_v50  ;;  %v5394_v53 = vpop.permute.xlu1 %5393 }
 0x417   :  { %v4542_v15 = vpop.f32.mrb[108].mxu1 }
 0x418   :  { %v5693_v55 = vsel %vm5645_vm2, %v5605_v1, 0.0  ;;  %v5018_v37 = vmul.bf16 1045249613, %v4986_v25  ;;  %v6599_v3 = vadd.f32 %v4542_v15, %v9182_v17  ;;  %v4544_v24 = vpop.f32.mrb[109].mxu1  ;;  %v5695_v32 = vsel %vm5645_vm2, %v5606_v33, 0.0  ;;  %v5419_v33 = vpop.permute.xlu0 %5418 }
 0x419   :  { %v5694_v52 = vadd.f32 %v5693_v55, %v5692_v43  ;;  %v4545_v39 = vpop.f32.mrb[110].mxu1  ;;  %v9546_v55 = vld [vmem:[#allocation36_spill] sm:$0xff] }
 0x41a   :  { %v5050_v41 = vmax.bf16 %v5018_v37, %v4986_v25  ;;  %v6600_v61 = vadd.f32 %v4545_v39, %v9186_v6  ;;  %v4547_v28 = vpop.f32.mrb[111].mxu1  ;;  %v9547_v39 = vld [vmem:[#allocation38_spill] sm:$0xff] }
 0x41b   :  { %v5696_v30 = vadd.f32 %v5695_v32, %v5694_v52 }
 0x41c   :  { %v5095_v36 = vunpack.c.l.bf16 %v5050_v41  ;;  %v5096_v42 = vunpack.c.h.bf16 %v5050_v41  ;;  %v4699_v45 = vpack.c.bf16 %v6600_v61, %v6599_v3 }
 0x41e   :  { %v5607_v7 = vmul.f32 %v5394_v53, %v5095_v36  ;;  %v5608_v63 = vmul.f32 %v5399_v62, %v5096_v42  ;;  %v4987_v27 = vadd.bf16 %v9204_v57, %v4699_v45  ;;  %v5404_v57 = vpop.permute.xlu1 %5403  ;;  %v9548_v42 = vld [vmem:[#allocation40_spill] sm:$0xff] }
 0x41f   :  { %v4550_v17 = vpop.f32.mrb[112].mxu1 }
 0x420   :  { %v5697_v22 = vsel %vm5645_vm2, %v5607_v7, 0.0  ;;  %v5019_v20 = vmul.bf16 1045249613, %v4987_v27  ;;  %v6601_v38 = vadd.f32 %v4550_v17, %v9541_v59  ;;  %v4552_v11 = vpop.f32.mrb[113].mxu1  ;;  %v5699_v16 = vsel %vm5645_vm2, %v5608_v63, 0.0 }
 0x421   :  { %v5698_v58 = vadd.f32 %v5697_v22, %v5696_v30  ;;  %v4553_v6 = vpop.f32.mrb[114].mxu1  ;;  %v5429_v22 = vpop.permute.xlu0 %5428 }
 0x422   :  { %v5051_v47 = vmax.bf16 %v5019_v20, %v4987_v27  ;;  %v6602_v40 = vadd.f32 %v4553_v6, %v9542_v56  ;;  %v4555_v18 = vpop.f32.mrb[115].mxu1  ;;  %v5414_v1 = vpop.permute.xlu1 %5413 }
 0x423   :  { %v5700_v49 = vadd.f32 %v5699_v16, %v5698_v58 }
 0x424   :  { %v5097_v35 = vunpack.c.l.bf16 %v5051_v47  ;;  %v5098_v9 = vunpack.c.h.bf16 %v5051_v47  ;;  %v4700_v5 = vpack.c.bf16 %v6602_v40, %v6601_v38  ;;  %v9549_v38 = vld [vmem:[#allocation41_spill] sm:$0xff]  ;;  %v9550_v47 = vld [vmem:[#allocation43_spill] sm:$0xff] }
 0x426   :  { %v5609_v31 = vmul.f32 %v5404_v57, %v5097_v35  ;;  %v5610_v44 = vmul.f32 %v5409_v2, %v5098_v9  ;;  %v4988_v26 = vadd.bf16 %v9543_v23, %v4700_v5  ;;  %v5424_v17 = vpop.permute.xlu1 %5423  ;;  %v9551_v5 = vld [vmem:[#allocation44_spill] sm:$0xff] }
 0x427   :  { %v4558_v10 = vpop.f32.mrb[116].mxu1 }
 0x428   :  { %v5701_v51 = vsel %vm5645_vm2, %v5609_v31, 0.0  ;;  %v5020_v4 = vmul.bf16 1045249613, %v4988_v26  ;;  %v6603_v19 = vadd.f32 %v4558_v10, %v9544_v13  ;;  %v4560_v29 = vpop.f32.mrb[117].mxu1  ;;  %v5703_v14 = vsel %vm5645_vm2, %v5610_v44, 0.0 }
 0x429   :  { %v5702_v21 = vadd.f32 %v5701_v51, %v5700_v49  ;;  %v4561_v46 = vpop.f32.mrb[118].mxu1  ;;  %v5439_v51 = vpop.permute.xlu0 %5438 }
 0x42a   :  { %v5052_v8 = vmax.bf16 %v5020_v4, %v4988_v26  ;;  %v6604_v43 = vadd.f32 %v4561_v46, %v9545_v60  ;;  %v4563_v48 = vpop.f32.mrb[119].mxu1  ;;  %v5434_v10 = vpop.permute.xlu1 %5433 }
 0x42b   :  { %v5704_v54 = vadd.f32 %v5703_v14, %v5702_v21 }
 0x42c   :  { %v5099_v50 = vunpack.c.l.bf16 %v5052_v8  ;;  %v5100_v12 = vunpack.c.h.bf16 %v5052_v8  ;;  %v4701_v34 = vpack.c.bf16 %v6604_v43, %v6603_v19  ;;  %v9552_v19 = vld [vmem:[#allocation39_spill] sm:$0xff]  ;;  %v9553_v8 = vld [vmem:[#allocation6_spill] sm:$0xff] }
 0x42e   :  { %v5611_v25 = vmul.f32 %v5414_v1, %v5099_v50  ;;  %v5612_v15 = vmul.f32 %v5419_v33, %v5100_v12  ;;  %v4989_v37 = vadd.bf16 %v9546_v55, %v4701_v34  ;;  %v9554_v34 = vld [vmem:[#allocation7_spill] sm:$0xff] }
 0x42f   :  { %v4566_v3 = vpop.f32.mrb[120].mxu1 }
 0x430   :  { %v5705_v24 = vsel %vm5645_vm2, %v5611_v25, 0.0  ;;  %v5021_v52 = vmul.bf16 1045249613, %v4989_v37  ;;  %v6605_v32 = vadd.f32 %v4566_v3, %v9547_v39  ;;  %v4568_v41 = vpop.f32.mrb[121].mxu1  ;;  %v5707_v30 = vsel %vm5645_vm2, %v5612_v15, 0.0  ;;  %v5444_v3 = vpop.permute.xlu1 %5443 }
 0x431   :  { %v5706_v61 = vadd.f32 %v5705_v24, %v5704_v54  ;;  %v4569_v28 = vpop.f32.mrb[122].mxu1  ;;  %v5449_v24 = vpop.permute.xlu0 %5448 }
 0x432   :  { %v5053_v36 = vmax.bf16 %v5021_v52, %v4989_v37  ;;  %v6606_v45 = vadd.f32 %v4569_v28, %v9548_v42  ;;  %v4571_v53 = vpop.f32.mrb[123].mxu1 }
 0x433   :  { %v5708_v62 = vadd.f32 %v5707_v30, %v5706_v61 }
 0x434   :  { %v5101_v7 = vunpack.c.l.bf16 %v5053_v36  ;;  %v5102_v63 = vunpack.c.h.bf16 %v5053_v36  ;;  %v4702_v27 = vpack.c.bf16 %v6606_v45, %v6605_v32  ;;  %v9555_v32 = vld [vmem:[#allocation45_spill] sm:$0xff]  ;;  %v9556_v36 = vld [vmem:[#allocation8_spill] sm:$0xff] }
 0x436   :  { %v5613_v20 = vmul.f32 %v5424_v17, %v5101_v7  ;;  %v5614_v59 = vmul.f32 %v5429_v22, %v5102_v63  ;;  %v4990_v11 = vadd.bf16 %v9549_v38, %v4702_v27  ;;  %v9557_v27 = vld [vmem:[#allocation9_spill] sm:$0xff] }
 0x437   :  { %v4574_v58 = vpop.f32.mrb[124].mxu1 }
 0x438   :  { %v5709_v6 = vsel %vm5645_vm2, %v5613_v20, 0.0  ;;  %v5022_v16 = vmul.bf16 1045249613, %v4990_v11  ;;  %v6607_v56 = vadd.f32 %v4574_v58, %v9550_v47  ;;  %v4576_v40 = vpop.f32.mrb[125].mxu1  ;;  %v5711_v35 = vsel %vm5645_vm2, %v5614_v59, 0.0  ;;  %v5454_v58 = vpop.permute.xlu1 %5453 }
 0x439   :  { %v5710_v18 = vadd.f32 %v5709_v6, %v5708_v62  ;;  %v4577_v49 = vpop.f32.mrb[126].mxu1  ;;  %v5459_v6 = vpop.permute.xlu0 %5458 }
 0x43a   :  { %v5054_v9 = vmax.bf16 %v5022_v16, %v4990_v11  ;;  %v6608_v57 = vadd.f32 %v4577_v49, %v9551_v5  ;;  %v4579_v2 = vpop.f32.mrb[127].mxu1 }
 0x43b   :  { %v5712_v31 = vadd.f32 %v5711_v35, %v5710_v18 }
 0x43c   :  { %v5103_v44 = vunpack.c.l.bf16 %v5054_v9  ;;  %v5104_v23 = vunpack.c.h.bf16 %v5054_v9  ;;  %v4703_v26 = vpack.c.bf16 %v6608_v57, %v6607_v56  ;;  %v9558_v56 = vld [vmem:[#allocation42_spill] sm:$0xff] }
 0x43d   :  { %v9559_v9 = vld [vmem:[#allocation10_spill] sm:$0xff] }
 0x43e   :  { %v5615_v4 = vmul.f32 %v5434_v10, %v5103_v44  ;;  %v5616_v13 = vmul.f32 %v5439_v51, %v5104_v23  ;;  %v4991_v29 = vadd.bf16 %v9552_v19, %v4703_v26  ;;  %v9560_v26 = vld [vmem:[#allocation11_spill] sm:$0xff] }
 0x43f   :  { %v4582_v21 = vpop.f32.mrb[0].mxu1 }
 0x440   :  { %v5713_v46 = vsel %vm5645_vm2, %v5615_v4, 0.0  ;;  %v5023_v14 = vmul.bf16 1045249613, %v4991_v29  ;;  %v6609_v60 = vadd.f32 %v4582_v21, %v9553_v8  ;;  %v4584_v43 = vpop.f32.mrb[1].mxu1  ;;  %v5715_v50 = vsel %vm5645_vm2, %v5616_v13, 0.0  ;;  %v5464_v21 = vpop.permute.xlu1 %5463 }
 0x441   :  { %v5714_v48 = vadd.f32 %v5713_v46, %v5712_v31  ;;  %v4585_v54 = vpop.f32.mrb[2].mxu1  ;;  %v5469_v46 = vpop.permute.xlu0 %5468 }
 0x442   :  { %v5055_v12 = vmax.bf16 %v5023_v14, %v4991_v29  ;;  %v6610_v1 = vadd.f32 %v4585_v54, %v9554_v34  ;;  %v4587_v33 = vpop.f32.mrb[3].mxu1 }
 0x443   :  { %v5716_v25 = vadd.f32 %v5715_v50, %v5714_v48 }
 0x444   :  { %v5105_v15 = vunpack.c.l.bf16 %v5055_v12  ;;  %v5106_v55 = vunpack.c.h.bf16 %v5055_v12  ;;  %v4704_v37 = vpack.c.bf16 %v6610_v1, %v6609_v60  ;;  %v9561_v60 = vld [vmem:[#allocation47_spill] sm:$0xff]  ;;  %v9562_v12 = vld [vmem:[#allocation12_spill] sm:$0xff] }
 0x446   :  { %v5617_v52 = vmul.f32 %v5444_v3, %v5105_v15  ;;  %v5618_v39 = vmul.f32 %v5449_v24, %v5106_v55  ;;  %v4992_v41 = vadd.bf16 %v9555_v32, %v4704_v37  ;;  %v9563_v37 = vld [vmem:[#allocation13_spill] sm:$0xff] }
 0x447   :  { %v4590_v61 = vpop.f32.mrb[4].mxu1 }
 0x448   :  { %v5717_v28 = vsel %vm5645_vm2, %v5617_v52, 0.0  ;;  %v5024_v30 = vmul.bf16 1045249613, %v4992_v41  ;;  %v6611_v42 = vadd.f32 %v4590_v61, %v9556_v36  ;;  %v4592_v45 = vpop.f32.mrb[5].mxu1  ;;  %v5719_v7 = vsel %vm5645_vm2, %v5618_v39, 0.0  ;;  %v5474_v61 = vpop.permute.xlu1 %5473 }
 0x449   :  { %v5718_v53 = vadd.f32 %v5717_v28, %v5716_v25  ;;  %v4593_v62 = vpop.f32.mrb[6].mxu1  ;;  %v5479_v28 = vpop.permute.xlu0 %5478 }
 0x44a   :  { %v5056_v63 = vmax.bf16 %v5024_v30, %v4992_v41  ;;  %v6612_v17 = vadd.f32 %v4593_v62, %v9557_v27  ;;  %v4595_v22 = vpop.f32.mrb[7].mxu1 }
 0x44b   :  { %v5720_v20 = vadd.f32 %v5719_v7, %v5718_v53 }
 0x44c   :  { %v5107_v59 = vunpack.c.l.bf16 %v5056_v63  ;;  %v5108_v38 = vunpack.c.h.bf16 %v5056_v63  ;;  %v4705_v11 = vpack.c.bf16 %v6612_v17, %v6611_v42  ;;  %v9564_v42 = vld [vmem:[#allocation46_spill] sm:$0xff] }
 0x44d   :  { %v9565_v63 = vld [vmem:[#allocation14_spill] sm:$0xff] }
 0x44e   :  { %v5619_v16 = vmul.f32 %v5454_v58, %v5107_v59  ;;  %v5620_v47 = vmul.f32 %v5459_v6, %v5108_v38  ;;  %v4993_v40 = vadd.bf16 %v9558_v56, %v4705_v11  ;;  %v9566_v11 = vld [vmem:[#allocation15_spill] sm:$0xff] }
 0x44f   :  { %v4598_v18 = vpop.f32.mrb[8].mxu1 }
 0x450   :  { %v5721_v49 = vsel %vm5645_vm2, %v5619_v16, 0.0  ;;  %v5025_v35 = vmul.bf16 1045249613, %v4993_v40  ;;  %v6613_v5 = vadd.f32 %v4598_v18, %v9559_v9  ;;  %v4600_v57 = vpop.f32.mrb[9].mxu1  ;;  %v5723_v44 = vsel %vm5645_vm2, %v5620_v47, 0.0  ;;  %v5484_v18 = vpop.permute.xlu1 %5483 }
 0x451   :  { %v5722_v2 = vadd.f32 %v5721_v49, %v5720_v20  ;;  %v4601_v31 = vpop.f32.mrb[10].mxu1  ;;  %v5489_v49 = vpop.permute.xlu0 %5488 }
 0x452   :  { %v5057_v23 = vmax.bf16 %v5025_v35, %v4993_v40  ;;  %v6614_v10 = vadd.f32 %v4601_v31, %v9560_v26  ;;  %v4603_v51 = vpop.f32.mrb[11].mxu1 }
 0x453   :  { %v5724_v4 = vadd.f32 %v5723_v44, %v5722_v2 }
 0x454   :  { %v5109_v13 = vunpack.c.l.bf16 %v5057_v23  ;;  %v5110_v19 = vunpack.c.h.bf16 %v5057_v23  ;;  %v4706_v29 = vpack.c.bf16 %v6614_v10, %v6613_v5  ;;  %v9567_v5 = vld [vmem:[#allocation49_spill] sm:$0xff]  ;;  %v9568_v23 = vld [vmem:[#allocation16_spill] sm:$0xff] }
 0x456   :  { %v5621_v14 = vmul.f32 %v5464_v21, %v5109_v13  ;;  %v5622_v8 = vmul.f32 %v5469_v46, %v5110_v19  ;;  %v4994_v43 = vadd.bf16 %v9561_v60, %v4706_v29  ;;  %v9569_v29 = vld [vmem:[#allocation17_spill] sm:$0xff] }
 0x457   :  { %v4606_v48 = vpop.f32.mrb[12].mxu1 }
 0x458   :  { %v5725_v54 = vsel %vm5645_vm2, %v5621_v14, 0.0  ;;  %v5026_v50 = vmul.bf16 1045249613, %v4994_v43  ;;  %v6615_v34 = vadd.f32 %v4606_v48, %v9562_v12  ;;  %v4608_v1 = vpop.f32.mrb[13].mxu1  ;;  %v5727_v15 = vsel %vm5645_vm2, %v5622_v8, 0.0  ;;  %v5494_v48 = vpop.permute.xlu1 %5493 }
 0x459   :  { %v5726_v33 = vadd.f32 %v5725_v54, %v5724_v4  ;;  %v4609_v25 = vpop.f32.mrb[14].mxu1  ;;  %v5499_v54 = vpop.permute.xlu0 %5498 }
 0x45a   :  { %v5058_v55 = vmax.bf16 %v5026_v50, %v4994_v43  ;;  %v6616_v3 = vadd.f32 %v4609_v25, %v9563_v37  ;;  %v4611_v24 = vpop.f32.mrb[15].mxu1 }
 0x45b   :  { %v5728_v52 = vadd.f32 %v5727_v15, %v5726_v33 }
 0x45c   :  { %v5111_v39 = vunpack.c.l.bf16 %v5058_v55  ;;  %v5112_v32 = vunpack.c.h.bf16 %v5058_v55  ;;  %v4707_v41 = vpack.c.bf16 %v6616_v3, %v6615_v34  ;;  %v9570_v34 = vld [vmem:[#allocation48_spill] sm:$0xff]  ;;  %v9571_v55 = vld [vmem:[#allocation18_spill] sm:$0xff] }
 0x45e   :  { %v5623_v30 = vmul.f32 %v5474_v61, %v5111_v39  ;;  %v5624_v36 = vmul.f32 %v5479_v28, %v5112_v32  ;;  %v4995_v45 = vadd.bf16 %v9564_v42, %v4707_v41  ;;  %v9572_v41 = vld [vmem:[#allocation19_spill] sm:$0xff] }
 0x45f   :  { %v4614_v53 = vpop.f32.mrb[16].mxu1 }
 0x460   :  { %v5729_v62 = vsel %vm5645_vm2, %v5623_v30, 0.0  ;;  %v5027_v7 = vmul.bf16 1045249613, %v4995_v45  ;;  %v6617_v27 = vadd.f32 %v4614_v53, %v9565_v63  ;;  %v4616_v17 = vpop.f32.mrb[17].mxu1  ;;  %v5731_v59 = vsel %vm5645_vm2, %v5624_v36, 0.0  ;;  %v5504_v53 = vpop.permute.xlu1 %5503 }
 0x461   :  { %v5730_v22 = vadd.f32 %v5729_v62, %v5728_v52  ;;  %v4617_v20 = vpop.f32.mrb[18].mxu1  ;;  %v5509_v62 = vpop.permute.xlu0 %5508 }
 0x462   :  { %v5059_v38 = vmax.bf16 %v5027_v7, %v4995_v45  ;;  %v6618_v58 = vadd.f32 %v4617_v20, %v9566_v11  ;;  %v4619_v6 = vpop.f32.mrb[19].mxu1 }
 0x463   :  { %v5732_v16 = vadd.f32 %v5731_v59, %v5730_v22 }
 0x464   :  { %v5113_v47 = vunpack.c.l.bf16 %v5059_v38  ;;  %v5114_v56 = vunpack.c.h.bf16 %v5059_v38  ;;  %v4708_v40 = vpack.c.bf16 %v6618_v58, %v6617_v27  ;;  %v9573_v27 = vld [vmem:[#allocation51_spill] sm:$0xff]  ;;  %v9574_v38 = vld [vmem:[#allocation20_spill] sm:$0xff] }
 0x466   :  { %v5625_v35 = vmul.f32 %v5484_v18, %v5113_v47  ;;  %v5626_v9 = vmul.f32 %v5489_v49, %v5114_v56  ;;  %v4996_v57 = vadd.bf16 %v9567_v5, %v4708_v40  ;;  %v9575_v40 = vld [vmem:[#allocation21_spill] sm:$0xff] }
 0x467   :  { %v4622_v2 = vpop.f32.mrb[20].mxu1 }
 0x468   :  { %v5733_v31 = vsel %vm5645_vm2, %v5625_v35, 0.0  ;;  %v5028_v44 = vmul.bf16 1045249613, %v4996_v57  ;;  %v6619_v26 = vadd.f32 %v4622_v2, %v9568_v23  ;;  %v4624_v10 = vpop.f32.mrb[21].mxu1  ;;  %v5735_v13 = vsel %vm5645_vm2, %v5626_v9, 0.0  ;;  %v5514_v2 = vpop.permute.xlu1 %5513 }
 0x469   :  { %v5734_v51 = vadd.f32 %v5733_v31, %v5732_v16  ;;  %v4625_v4 = vpop.f32.mrb[22].mxu1  ;;  %v5519_v31 = vpop.permute.xlu0 %5518 }
 0x46a   :  { %v5060_v19 = vmax.bf16 %v5028_v44, %v4996_v57  ;;  %v6620_v21 = vadd.f32 %v4625_v4, %v9569_v29  ;;  %v4627_v46 = vpop.f32.mrb[23].mxu1 }
 0x46b   :  { %v5736_v14 = vadd.f32 %v5735_v13, %v5734_v51 }
 0x46c   :  { %v5115_v8 = vunpack.c.l.bf16 %v5060_v19  ;;  %v5116_v60 = vunpack.c.h.bf16 %v5060_v19  ;;  %v4709_v43 = vpack.c.bf16 %v6620_v21, %v6619_v26  ;;  %v9576_v26 = vld [vmem:[#allocation50_spill] sm:$0xff] }
 0x46d   :  { %v9577_v19 = vld [vmem:[#allocation22_spill] sm:$0xff] }
 0x46e   :  { %v5627_v50 = vmul.f32 %v5494_v48, %v5115_v8  ;;  %v5628_v12 = vmul.f32 %v5499_v54, %v5116_v60  ;;  %v4997_v1 = vadd.bf16 %v9570_v34, %v4709_v43  ;;  %v9578_v43 = vld [vmem:[#allocation23_spill] sm:$0xff] }
 0x46f   :  { %v4630_v33 = vpop.f32.mrb[24].mxu1 }
 0x470   :  { %v5737_v25 = vsel %vm5645_vm2, %v5627_v50, 0.0  ;;  %v5029_v15 = vmul.bf16 1045249613, %v4997_v1  ;;  %v6621_v37 = vadd.f32 %v4630_v33, %v9571_v55  ;;  %v4632_v3 = vpop.f32.mrb[25].mxu1  ;;  %v5739_v39 = vsel %vm5645_vm2, %v5628_v12, 0.0  ;;  %v5524_v33 = vpop.permute.xlu1 %5523 }
 0x471   :  { %v5738_v24 = vadd.f32 %v5737_v25, %v5736_v14  ;;  %v4633_v52 = vpop.f32.mrb[26].mxu1  ;;  %v5529_v25 = vpop.permute.xlu0 %5528 }
 0x472   :  { %v5061_v32 = vmax.bf16 %v5029_v15, %v4997_v1  ;;  %v6622_v61 = vadd.f32 %v4633_v52, %v9572_v41  ;;  %v4635_v28 = vpop.f32.mrb[27].mxu1 }
 0x473   :  { %v5740_v30 = vadd.f32 %v5739_v39, %v5738_v24 }
 0x474   :  { %v5117_v36 = vunpack.c.l.bf16 %v5061_v32  ;;  %v5118_v42 = vunpack.c.h.bf16 %v5061_v32  ;;  %v4710_v45 = vpack.c.bf16 %v6622_v61, %v6621_v37  ;;  %v9579_v37 = vld [vmem:[#allocation53_spill] sm:$0xff]  ;;  %v9580_v32 = vld [vmem:[#allocation24_spill] sm:$0xff] }
 0x476   :  { %v5629_v7 = vmul.f32 %v5504_v53, %v5117_v36  ;;  %v5630_v63 = vmul.f32 %v5509_v62, %v5118_v42  ;;  %v4998_v17 = vadd.bf16 %v9573_v27, %v4710_v45  ;;  %v9581_v45 = vld [vmem:[#allocation25_spill] sm:$0xff] }
 0x477   :  { %v4638_v22 = vpop.f32.mrb[28].mxu1 }
 0x478   :  { %v5741_v20 = vsel %vm5645_vm2, %v5629_v7, 0.0  ;;  %v5030_v59 = vmul.bf16 1045249613, %v4998_v17  ;;  %v6623_v11 = vadd.f32 %v4638_v22, %v9574_v38  ;;  %v4640_v58 = vpop.f32.mrb[29].mxu1  ;;  %v5743_v47 = vsel %vm5645_vm2, %v5630_v63, 0.0  ;;  %v5534_v22 = vpop.permute.xlu1 %5533 }
 0x479   :  { %v5742_v6 = vadd.f32 %v5741_v20, %v5740_v30  ;;  %v4641_v16 = vpop.f32.mrb[30].mxu1  ;;  %v5539_v20 = vpop.permute.xlu0 %5538 }
 0x47a   :  { %v5062_v56 = vmax.bf16 %v5030_v59, %v4998_v17  ;;  %v6624_v18 = vadd.f32 %v4641_v16, %v9575_v40  ;;  %v4643_v49 = vpop.f32.mrb[31].mxu1 }
 0x47b   :  { %v5744_v35 = vadd.f32 %v5743_v47, %v5742_v6 }
 0x47c   :  { %v5119_v9 = vunpack.c.l.bf16 %v5062_v56  ;;  %v5120_v5 = vunpack.c.h.bf16 %v5062_v56  ;;  %v4711_v57 = vpack.c.bf16 %v6624_v18, %v6623_v11  ;;  %v9582_v11 = vld [vmem:[#allocation52_spill] sm:$0xff]  ;;  %v9583_v56 = vld [vmem:[#allocation26_spill] sm:$0xff] }
 0x47e   :  { %v5631_v44 = vmul.f32 %v5514_v2, %v5119_v9  ;;  %v5632_v23 = vmul.f32 %v5519_v31, %v5120_v5  ;;  %v4999_v10 = vadd.bf16 %v9576_v26, %v4711_v57  ;;  %v9584_v57 = vld [vmem:[#allocation27_spill] sm:$0xff] }
 0x47f   :  { %v4646_v51 = vpop.f32.mrb[32].mxu1 }
 0x480   :  { %v5745_v4 = vsel %vm5645_vm2, %v5631_v44, 0.0  ;;  %v5031_v13 = vmul.bf16 1045249613, %v4999_v10  ;;  %v6625_v29 = vadd.f32 %v4646_v51, %v9577_v19  ;;  %v4648_v21 = vpop.f32.mrb[33].mxu1  ;;  %v5747_v8 = vsel %vm5645_vm2, %v5632_v23, 0.0  ;;  %v5544_v51 = vpop.permute.xlu1 %5543 }
 0x481   :  { %v5746_v46 = vadd.f32 %v5745_v4, %v5744_v35  ;;  %v4649_v14 = vpop.f32.mrb[34].mxu1  ;;  %v5549_v4 = vpop.permute.xlu0 %5548 }
 0x482   :  { %v5063_v60 = vmax.bf16 %v5031_v13, %v4999_v10  ;;  %v6626_v48 = vadd.f32 %v4649_v14, %v9578_v43  ;;  %v4651_v54 = vpop.f32.mrb[35].mxu1 }
 0x483   :  { %v5748_v50 = vadd.f32 %v5747_v8, %v5746_v46  ;;  %v9585_v8 = vld [vmem:[#allocation28_spill] sm:$0xff] }
 0x484   :  { %v5121_v12 = vunpack.c.l.bf16 %v5063_v60  ;;  %v5122_v34 = vunpack.c.h.bf16 %v5063_v60  ;;  %v4712_v1 = vpack.c.bf16 %v6626_v48, %v6625_v29 }
 0x486   :  { %v5633_v15 = vmul.f32 %v5524_v33, %v5121_v12  ;;  %v5634_v55 = vmul.f32 %v5529_v25, %v5122_v34  ;;  %v5000_v3 = vadd.bf16 %v9579_v37, %v4712_v1  ;;  %v9586_v34 = vld [vmem:[#allocation29_spill] sm:$0xff] }
 0x487   :  { %v4654_v24 = vpop.f32.mrb[36].mxu1 }
 0x488   :  { %v5749_v52 = vsel %vm5645_vm2, %v5633_v15, 0.0  ;;  %v5032_v39 = vmul.bf16 1045249613, %v5000_v3  ;;  %v6627_v41 = vadd.f32 %v4654_v24, %v9580_v32  ;;  %v4656_v61 = vpop.f32.mrb[37].mxu1  ;;  %v5751_v36 = vsel %vm5645_vm2, %v5634_v55, 0.0 }
 0x489   :  { %v5750_v28 = vadd.f32 %v5749_v52, %v5748_v50  ;;  %v4657_v30 = vpop.f32.mrb[38].mxu1 }
 0x48a   :  { %v5064_v42 = vmax.bf16 %v5032_v39, %v5000_v3  ;;  %v6628_v53 = vadd.f32 %v4657_v30, %v9581_v45  ;;  %v4659_v62 = vpop.f32.mrb[39].mxu1  ;;  %v5559_v3 = vpop.permute.xlu0 %5558  ;;  %v9587_v39 = vld [vmem:[#allocation54_spill] sm:$0xff] }
 0x48b   :  { %v5752_v7 = vadd.f32 %v5751_v36, %v5750_v28  ;;  %v9588_v30 = vld [vmem:[#allocation30_spill] sm:$0xff] }
 0x48c   :  { %v5123_v63 = vunpack.c.l.bf16 %v5064_v42  ;;  %v5124_v27 = vunpack.c.h.bf16 %v5064_v42  ;;  %v4713_v17 = vpack.c.bf16 %v6628_v53, %v6627_v41 }
 0x48e   :  { %v5635_v59 = vmul.f32 %v5534_v22, %v5123_v63  ;;  %v5636_v38 = vmul.f32 %v5539_v20, %v5124_v27  ;;  %v5001_v58 = vadd.bf16 %v9582_v11, %v4713_v17  ;;  %v9589_v63 = vld [vmem:[#allocation31_spill] sm:$0xff] }
 0x48f   :  { %v4662_v6 = vpop.f32.mrb[40].mxu1 }
 0x490   :  { %v5753_v16 = vsel %vm5645_vm2, %v5635_v59, 0.0  ;;  %v5033_v47 = vmul.bf16 1045249613, %v5001_v58  ;;  %v6629_v40 = vadd.f32 %v4662_v6, %v9583_v56  ;;  %v4664_v18 = vpop.f32.mrb[41].mxu1  ;;  %v5755_v9 = vsel %vm5645_vm2, %v5636_v38, 0.0 }
 0x491   :  { %v5754_v49 = vadd.f32 %v5753_v16, %v5752_v7  ;;  %v4665_v35 = vpop.f32.mrb[42].mxu1 }
 0x492   :  { %v5065_v5 = vmax.bf16 %v5033_v47, %v5001_v58  ;;  %v6630_v2 = vadd.f32 %v4665_v35, %v9584_v57  ;;  %v4667_v31 = vpop.f32.mrb[43].mxu1  ;;  %v5569_v58 = vpop.permute.xlu0 %5568  ;;  %v9590_v47 = vld [vmem:[#allocation55_spill] sm:$0xff] }
 0x493   :  { %v5756_v44 = vadd.f32 %v5755_v9, %v5754_v49 }
 0x494   :  { %v5125_v23 = vunpack.c.l.bf16 %v5065_v5  ;;  %v5126_v26 = vunpack.c.h.bf16 %v5065_v5  ;;  %v4714_v10 = vpack.c.bf16 %v6630_v2, %v6629_v40 }
 0x496   :  { %v5637_v13 = vmul.f32 %v5544_v51, %v5125_v23  ;;  %v5638_v19 = vmul.f32 %v5549_v4, %v5126_v26  ;;  %v5002_v29 = vadd.bf16 %v9296_v0, %v4714_v10  ;;  %v5554_v0 = vpop.permute.xlu1 %5553 }
 0x497   :  { %v4670_v21 = vpop.f32.mrb[44].mxu1 }
 0x498   :  { %v5757_v46 = vsel %vm5645_vm2, %v5637_v13, 0.0  ;;  %v5034_v14 = vmul.bf16 1045249613, %v5002_v29  ;;  %v6631_v60 = vadd.f32 %v4670_v21, %v9585_v8  ;;  %v4672_v43 = vpop.f32.mrb[45].mxu1  ;;  %v5759_v50 = vsel %vm5645_vm2, %v5638_v19, 0.0 }
 0x499   :  { %v5758_v48 = vadd.f32 %v5757_v46, %v5756_v44  ;;  %v4673_v54 = vpop.f32.mrb[46].mxu1  ;;  %v5579_v44 = vpop.permute.xlu0 %5578  ;;  %v5780_v8 = vstv %s9489_s6 }
 0x49a   :  { %v5066_v12 = vmax.bf16 %v5034_v14, %v5002_v29  ;;  %v6632_v1 = vadd.f32 %v4673_v54, %v9586_v34  ;;  %v4675_v33 = vpop.f32.mrb[47].mxu1  ;;  %v5564_v11 = vpop.permute.xlu1 %5563 }
 0x49b   :  { %v5760_v25 = vadd.f32 %v5759_v50, %v5758_v48 }
 0x49c   :  { %v5127_v15 = vunpack.c.l.bf16 %v5066_v12  ;;  %v5128_v55 = vunpack.c.h.bf16 %v5066_v12  ;;  %v4715_v37 = vpack.c.bf16 %v6632_v1, %v6631_v60 }
 0x49e   :  { %v5639_v24 = vmul.f32 %v5554_v0, %v5127_v15  ;;  %v5640_v52 = vmul.f32 %v5559_v3, %v5128_v55  ;;  %v5003_v32 = vadd.bf16 %v9587_v39, %v4715_v37  ;;  %v5574_v31 = vpop.permute.xlu1 %5573 }
 0x49f   :  { %v4678_v41 = vpop.f32.mrb[48].mxu1 }
 0x4a0   :  { %v5761_v61 = vsel %vm5645_vm2, %v5639_v24, 0.0  ;;  %v5035_v28 = vmul.bf16 1045249613, %v5003_v32  ;;  %v6633_v36 = vadd.f32 %v4678_v41, %v9588_v30  ;;  %v4680_v42 = vpop.f32.mrb[49].mxu1  ;;  %v5763_v62 = vsel %vm5645_vm2, %v5640_v52, 0.0 }
 0x4a1   :  { %v5762_v45 = vadd.f32 %v5761_v61, %v5760_v25  ;;  %v4681_v53 = vpop.f32.mrb[50].mxu1 }
 0x4a2   :  { %v5067_v7 = vmax.bf16 %v5035_v28, %v5003_v32  ;;  %v6634_v27 = vadd.f32 %v4681_v53, %v9589_v63  ;;  %v4683_v17 = vpop.f32.mrb[51].mxu1 }
 0x4a3   :  { %v5764_v22 = vadd.f32 %v5763_v62, %v5762_v45 }
 0x4a4   :  { %v5129_v20 = vunpack.c.l.bf16 %v5067_v7  ;;  %v5130_v59 = vunpack.c.h.bf16 %v5067_v7  ;;  %v4716_v38 = vpack.c.bf16 %v6634_v27, %v6633_v36 }
 0x4a6   :  { %v5641_v6 = vmul.f32 %v5564_v11, %v5129_v20  ;;  %v5642_v16 = vmul.f32 %v5569_v58, %v5130_v59  ;;  %v5004_v56 = vadd.bf16 %v9590_v47, %v4716_v38 }
 0x4a8   :  { %v5765_v40 = vsel %vm5645_vm2, %v5641_v6, 0.0  ;;  %v5036_v18 = vmul.bf16 1045249613, %v5004_v56  ;;  %v5767_v35 = vsel %vm5645_vm2, %v5642_v16, 0.0 }
 0x4a9   :  { %v5766_v49 = vadd.f32 %v5765_v40, %v5764_v22 }
 0x4aa   :  { %v5068_v9 = vmax.bf16 %v5036_v18, %v5004_v56 }
 0x4ab   :  { %v5768_v5 = vadd.f32 %v5767_v35, %v5766_v49 }
 0x4ac   :  { %v5131_v57 = vunpack.c.l.bf16 %v5068_v9  ;;  %v5132_v2 = vunpack.c.h.bf16 %v5068_v9 }
 0x4ae   :  { %v5643_v23 = vmul.f32 %v5574_v31, %v5131_v57  ;;  %v5644_v26 = vmul.f32 %v5579_v44, %v5132_v2 }
 0x4b0   :  { %v5769_v10 = vsel %vm5645_vm2, %v5643_v23, 0.0  ;;  %v5771_v4 = vsel %vm5645_vm2, %v5644_v26, 0.0 }
 0x4b1   :  { %v5770_v51 = vadd.f32 %v5769_v10, %v5768_v5 }
 0x4b3   :  { %v5772_v13 = vadd.f32 %v5771_v4, %v5770_v51 }
 0x4b5   :  { %v5773_v19 = vrot.slane %v5772_v13, 4 }
 0x4b7   :  { %v5774_v29 = vadd.f32 %v5773_v19, %v5772_v13 }
 0x4b9   :  { %v5775_v21 = vrot.slane %v5774_v29, 2 }
 0x4bb   :  { %v5776_v46 = vadd.f32 %v5775_v21, %v5774_v29 }
 0x4bd   :  { %v5777_v14 = vrot.slane %v5776_v46, 1 }
 0x4bf   :  { %v5778_v60 = vadd.f32 %v5777_v14, %v5776_v46 }
 0x4c1   :  { %v5781_v43 = vadd.f32 %v5780_v8, %v5778_v60 }
 0x4c3   :  { %5783 = vst.msk [vmem:[#allocation3] sm:$0x1] %vm5782_vm3, %v5781_v43 }
 0x4c4   :  { %6976 = shalt.err (!%p6973_p4)
}
 0x4c5   :  { %s6977_s28 = scalar_lea.hbm %s9490_s7, 16 }
 0x4c6   :  { %p6978_p5 = scmp.ne.s32.totalorder %s9490_s7, %s6977_s28  ;;  %p6981_p6 = scmp.lt.u32.totalorder %s6977_s28, %s9490_s7 }
 0x4c8   :  { %p6983_p7 = pnand %p6981_p6, %p6978_p5 }
 0x4ca   :  { %6986 = shalt.err (!%p6983_p7)
}
 0x4cb   :  { %5793 = dma.vmem_to_hbm [thread:$0]  %s5791_s24, 16, %s9490_s7, [#allocation4]  }
 0x4cc   :  { %6987 = dma.done.wait [#allocation4], 16  }
 0x4cd   :  { %6988 = vsyncadd [#allocation4], 4294967280 }
 0x4ce   :  { %5797 = vsyncpa [#allocation4], 1 }

</bundles_post_ra>
